<compile_context>
chip_gen: v7x
topology: tpu7x:2x2x1
jax: 0.10.0
libtpu: 0.0.40
codegen_flags: <defaults>
</compile_context>

<pallas_src>
import functools

import jax
import jax.numpy as jnp
from jax.experimental import pallas as pl
from jax.experimental.pallas import tpu as pltpu

IN_FEATURES = 4096
OUT_FEATURES = 1024


def _linear_sigmoid_kernel(x_ref, w_ref, b_ref, o_ref):
    # X tile is tiny (Mp x 4096 f32); cast it to bf16 here so the wrapper can
    # stay f32.  bf16 x bf16 -> f32 accumulate on the MXU.
    z = jnp.dot(
        x_ref[...].astype(jnp.bfloat16),
        w_ref[...],
        preferred_element_type=jnp.float32,
    )
    z = z + b_ref[...]                                   # bias broadcast over rows
    # sigmoid(z) = 1 / (1 + exp(-z)); exp and the approximate reciprocal both
    # run on the EUP slot, keeping the VALU free for larger batches.
    o_ref[...] = pl.reciprocal(1.0 + jnp.exp(-z), approx=True).astype(o_ref.dtype)


@functools.partial(jax.jit, static_argnames=("tn",))
def _forward_padded(x_f32, w_bf16, b2, *, tn):
    """x_f32: [Mp, K] f32 (Mp % 8 == 0), w_bf16: [K, N] bf16, b2: [1, N] f32."""
    Mp, K = x_f32.shape
    Kw, N = w_bf16.shape
    assert K == Kw and N % tn == 0 and tn % 128 == 0 and Mp % 8 == 0

    n_blocks = N // tn
    # Single-step (tn == N) path double-buffers an 8 MiB W block -> raise the
    # scoped-VMEM limit (safe on v5e/v6e with 128 MiB physical VMEM; the 2-TC
    # path never takes this branch).  Multi-block path fits every default.
    vmem_limit = (40 << 20) if n_blocks == 1 else None

    return pl.pallas_call(
        _linear_sigmoid_kernel,
        out_shape=jax.ShapeDtypeStruct((Mp, N), jnp.float32),
        grid_spec=pltpu.PrefetchScalarGridSpec(
            num_scalar_prefetch=0,
            grid=(n_blocks,),
            in_specs=[
                # X: constant block index -> DMA'd once, resident in VMEM.
                pl.BlockSpec((Mp, K), lambda j: (0, 0)),
                # W: full-K bf16 column blocks streamed along N.
                pl.BlockSpec((K, tn), lambda j: (0, j)),
                # bias tile (f32); sublane dim 1 == full array dim, so legal.
                pl.BlockSpec((1, tn), lambda j: (0, j)),
            ],
            # Lane-dense output block (tn is a multiple of 128).
            out_specs=pl.BlockSpec((Mp, tn), lambda j: (0, j)),
        ),
        compiler_params=pltpu.CompilerParams(
            # Independent N blocks -> shard across both TensorCores on 2-TC chips.
            dimension_semantics=("parallel",),
            vmem_limit_bytes=vmem_limit,
        ),
    )(x_f32, w_bf16, b2)


def _default_tn():
    """Pick the N tile per chip generation."""
    try:
        kind = jax.devices()[0].device_kind.lower()
    except Exception:
        return 512
    # Single-TC chips (v5e / v6e): one full-N block (grid=(1,)) removes all
    # per-step overhead.  2-TC chips (v4 / v5p / v7x): keep exactly 2 parallel
    # N blocks so the 8 MiB weight stream splits across both cores' DMA paths.
    single_tc = any(s in kind for s in ("v5 lite", "v5e", "v6 lite", "v6e"))
    return 1024 if single_tc else 512


def prepare_params(w, b):
    """Cast once so repeated forward calls don't re-cast the f32 weight."""
    w_bf16 = jnp.asarray(w).astype(jnp.bfloat16)
    b2 = jnp.asarray(b, jnp.float32).reshape(1, OUT_FEATURES)
    return w_bf16, b2


def siamese_forward(x, w, b, *, tn=None):
    """sigmoid(x @ w + b).  x: [M, 4096], w: [4096, 1024], b: [1024] -> [M, 1024] f32."""
    x = jnp.asarray(x, jnp.float32)
    M, K = x.shape
    assert K == IN_FEATURES

    w_bf16 = jnp.asarray(w).astype(jnp.bfloat16)        # no-op if already prepared
    assert w_bf16.shape == (IN_FEATURES, OUT_FEATURES)
    b2 = jnp.asarray(b, jnp.float32).reshape(1, OUT_FEATURES)

    if tn is None:
        tn = _default_tn()

    # Pad the batch up to a sublane multiple (8) so any batch size works.
    Mp = max(8, ((M + 7) // 8) * 8)
    if Mp != M:
        x = jnp.pad(x, ((0, Mp - M), (0, 0)))

    out = _forward_padded(x, w_bf16, b2, tn=tn)
    return out[:M]


def siamese_forward_pair(x1, x2, w, b, *, tn=None):
    """Both Siamese branches through one pallas_call: W is streamed from HBM once."""
    x1 = jnp.asarray(x1, jnp.float32)
    x2 = jnp.asarray(x2, jnp.float32)
    m1 = x1.shape[0]
    out = siamese_forward(jnp.concatenate([x1, x2], axis=0), w, b, tn=tn)
    return out[:m1], out[m1:]


def init_params(key):
    """Deterministic init matching torch.nn.Linear's default U(-1/sqrt(in), 1/sqrt(in))."""
    kw, kb = jax.random.split(key)
    bound = 1.0 / jnp.sqrt(jnp.float32(IN_FEATURES))
    # Stored as [K, N] (already transposed for x @ w).
    w = jax.random.uniform(
        kw, (IN_FEATURES, OUT_FEATURES), jnp.float32, minval=-bound, maxval=bound
    )
    b = jax.random.uniform(
        kb, (OUT_FEATURES,), jnp.float32, minval=-bound, maxval=bound
    )
    return w, b


if __name__ == "__main__":
    key = jax.random.PRNGKey(0)
    k_x1, k_x2, k_p = jax.random.split(key, 3)
    w, b = init_params(k_p)
    w_bf16, b2 = prepare_params(w, b)

    # Small batch; in_features=4096 is fixed by the module definition.
    # Two Siamese branches batched through a single kernel invocation.
    x1 = jax.random.normal(k_x1, (4, IN_FEATURES), dtype=jnp.float32)
    x2 = jax.random.normal(k_x2, (4, IN_FEATURES), dtype=jnp.float32)

    o1, o2 = siamese_forward_pair(x1, x2, w_bf16, b2)
    o1, o2 = jax.block_until_ready((o1, o2))

    # Reference using the same bf16 quantisation / f32 accumulation as the kernel.
    def ref_fn(xx):
        z = jnp.dot(
            xx.astype(jnp.bfloat16),
            w.astype(jnp.bfloat16),
            preferred_element_type=jnp.float32,
        ) + b
        return 1.0 / (1.0 + jnp.exp(-z))

    assert o1.shape == (4, OUT_FEATURES) and o2.shape == (4, OUT_FEATURES)
    # Tolerance covers the EUP approximate reciprocal in the sigmoid epilogue.
    assert jnp.allclose(o1, ref_fn(x1), atol=1.5e-3, rtol=1.5e-3)
    assert jnp.allclose(o2, ref_fn(x2), atol=1.5e-3, rtol=1.5e-3)
    # Looser check against the original full-f32 math of the PyTorch module
    # (bf16 weight/activation quantisation is an intentional bandwidth tradeoff).
    assert jnp.allclose(o1, 1.0 / (1.0 + jnp.exp(-(x1 @ w + b))), atol=1e-2)
    assert jnp.allclose(o2, 1.0 / (1.0 + jnp.exp(-(x2 @ w + b))), atol=1e-2)

    print("KERNEL_OK")
</pallas_src>

<mosaic_0001>
module attributes {stable_mosaic.version = 11 : i64} {
  func.func @_linear_sigmoid_kernel(%arg0: i32, %arg1: memref<8x4096xf32, #tpu.memory_space<vmem>>, %arg2: memref<4096x512xbf16, #tpu.memory_space<vmem>>, %arg3: memref<1x512xf32, #tpu.memory_space<vmem>>, %arg4: memref<8x512xf32, #tpu.memory_space<vmem>>) attributes {dimension_semantics = [#tpu.dimension_semantics<parallel>], iteration_bounds = array<i64: 2>, scalar_prefetch = 0 : i64, scratch_operands = 0 : i64, tpu.core_type = #tpu.core_type<tc>, window_params = [{pipeline_mode = #tpu.pipeline_mode<synchronous>, transform_indices = @transform_0, window_bounds = array<i64: 8, 4096>}, {transform_indices = @transform_1, window_bounds = array<i64: 4096, 512>}, {transform_indices = @transform_2, window_bounds = array<i64: 1, 512>}, {transform_indices = @transform_3, window_bounds = array<i64: 8, 512>}]} {
    %c0 = arith.constant 0 : index
    %c0_0 = arith.constant 0 : index
    %0 = vector.load %arg1[%c0, %c0_0] : memref<8x4096xf32, #tpu.memory_space<vmem>>, vector<8x4096xf32>
    %1 = arith.truncf %0 : vector<8x4096xf32> to vector<8x4096xbf16>
    %c0_1 = arith.constant 0 : index
    %c0_2 = arith.constant 0 : index
    %2 = vector.load %arg2[%c0_1, %c0_2] : memref<4096x512xbf16, #tpu.memory_space<vmem>>, vector<4096x512xbf16>
    %cst = arith.constant dense<0.000000e+00> : vector<8x512xf32>
    %3 = tpu.matmul %1, %2, %cst {dimension_numbers = #tpu.dot_dimension_numbers<[1], [0], [0], [1], [0, 0, 1, 1], [], []>} : vector<8x4096xbf16>, vector<4096x512xbf16>, vector<8x512xf32> -> vector<8x512xf32>
    %c0_3 = arith.constant 0 : index
    %c0_4 = arith.constant 0 : index
    %4 = vector.load %arg3[%c0_3, %c0_4] : memref<1x512xf32, #tpu.memory_space<vmem>>, vector<1x512xf32>
    %5 = vector.broadcast %4 : vector<1x512xf32> to vector<8x512xf32>
    %6 = arith.addf %3, %5 : vector<8x512xf32>
    %cst_5 = arith.constant 0.000000e+00 : f32
    %7 = vector.broadcast %cst_5 : f32 to vector<8x512xf32>
    %8 = arith.subf %7, %6 : vector<8x512xf32>
    %9 = math.exp %8 : vector<8x512xf32>
    %cst_6 = arith.constant 1.000000e+00 : f32
    %10 = vector.broadcast %cst_6 : f32 to vector<8x512xf32>
    %11 = arith.addf %10, %9 : vector<8x512xf32>
    %12 = tpu.reciprocal %11 {approx = true} : vector<8x512xf32> -> vector<8x512xf32>
    %c0_7 = arith.constant 0 : index
    %c0_8 = arith.constant 0 : index
    %13 = vector.load %arg4[%c0_7, %c0_8] : memref<8x512xf32, #tpu.memory_space<vmem>>, vector<8x512xf32>
    tpu.vector_store %arg4[%c0_7, %c0_8], %12 {strides = array<i32>} : memref<8x512xf32, #tpu.memory_space<vmem>>, vector<8x512xf32>,
    return
  }
  func.func @transform_0(%arg0: i32) -> (i32, i32) {
    %c0_i32 = arith.constant 0 : i32
    %c0_i32_0 = arith.constant 0 : i32
    %c0_i32_1 = arith.constant 0 : i32
    return %c0_i32, %c0_i32_0 : i32, i32
  }
  func.func @transform_1(%arg0: i32) -> (i32, i32) {
    %c0_i32 = arith.constant 0 : i32
    %c0_i32_0 = arith.constant 0 : i32
    return %c0_i32, %arg0 : i32, i32
  }
  func.func @transform_2(%arg0: i32) -> (i32, i32) {
    %c0_i32 = arith.constant 0 : i32
    %c0_i32_0 = arith.constant 0 : i32
    return %c0_i32, %arg0 : i32, i32
  }
  func.func @transform_3(%arg0: i32) -> (i32, i32) {
    %c0_i32 = arith.constant 0 : i32
    %c0_i32_0 = arith.constant 0 : i32
    return %c0_i32, %arg0 : i32, i32
  }
}

</mosaic_0001>

<bundles_post_ra>
// kernel: _forward_padded.1
= control target key start
LH: loop header
LB: loop body
LE: loop exit
PB: predicated region body
PF: predicated region fallthrough
CT: control target
= control target key end

     0   :  { %8 = vsyncpa [#allocation3], 0  ;;  %s12159_s0 = inlined_call_operand.hbm [shape: f32[8,4096], index: 0, kind: input, shape index: {}]   ;;  %s12160_s1 = inlined_call_operand.hbm [shape: bf16[4096,1024], index: 1, kind: input, shape index: {}]   ;;  %s12161_s2 = inlined_call_operand.hbm [shape: f32[1,1024], index: 2, kind: input, shape index: {}]   ;;  %s12162_s3 = inlined_call_operand.hbm [shape: f32[8,1024], index: 3, kind: output, shape index: {}]  }
   0x1   :  { %9 = vsyncpa [#allocation6], 0 }
   0x2   :  { %11 = vsyncpa [#allocation6 + $0x1], 0 }
   0x3   :  { %12 = vsyncpa [#allocation4], 0 }
   0x4   :  { %14 = vsyncpa [#allocation4 + $0x1], 0  ;;  %s10898_s12 = smov 0   ;;  %s10900_s13 = smov 0  }
   0x5   :  { %s10902_s14 = smov 0   ;;  %s10904_s15 = smov 0  }
   0x6 LB: > { %s10919_s16 = sadd.s32 1, %s10869_s15   ;;  %s48_s17 = sadd.s32 1, %s10865_s14  ;;  %s10869_s15 = sphi %s10904_s15, %s12189_s15   ;;  %s10865_s14 = sphi %s10902_s14, %s12188_s14   ;;  %s10861_s13 = sphi %s10900_s13, %s12187_s13   ;;  %s10857_s12 = sphi %s10898_s12, %s12186_s12  }
   0x7   : > { %s45_s18 = ssub.s32 %s10869_s15, %s10919_s16  ;;  %p55_p0 = scmp.ne.s32.totalorder %s10865_s14, %s10861_s13 }
   0x8   : > { %p46_p1 = scmp.eq.s32.totalorder %s45_s18, 0  ;;  %p56_p2 = scmp.eq.s32.totalorder %s10869_s15, 0 }
   0x9   : > { %p9120_p4 = scmp.lt.s32.totalorder %s10869_s15, 2  ;;  %s148_s20 = sand.u32 1, %s10869_s15  }
   0xa   : > { %s10930_s19 = scalar_select %p46_p1, %s10865_s14, %s48_s17  }
   0xb   : > { %p57_p5 = por %p56_p2, %p55_p0  ;;  %s150_s21 = sand.u32 1, %s10865_s14  }
   0xc   : > { %s7927_s22 = sshll.u32 %s150_s21, 13  ;;  %s8967_s23 = sshll.u32 %s10869_s15, 8 }
   0xd   : > { %s10943_s26 = scalar_lea.hbm %s12160_s1, %s8967_s23  ;;  %s152_s27 = scalar_lea.vmem [#allocation5], %s7927_s22 }
   0xe   : > { %s159_s28 = sshll.u32 %s152_s27, 4  ;;  %p10945_p6 = pnand %p9120_p4, %p57_p5  ;;  %s10949_s28 = int_to_ptr.vmem [resolvable:$true] %s159_s28 }
   0xf   : > { %s10951_s30 = scalar_lea.sflag [#allocation6], %s148_s20  ;;  %s10711_s4 = scalar_lea.hbm %s10943_s26, 131072 }
  0x10   : > { %s12170_s29 = scalar_select %p10945_p6, 1, 0 }
  0x11   : > { %p10712_p7 = scmp.ne.s32.totalorder %s10943_s26, %s10711_s4  ;;  %p12164_p8 = pneg %p10945_p6 }
  0x12   : > { %s10716_s7 = scalar_lea.hbm %s12160_s1, 262144  ;;  %p10717_p11 = scmp.lt.u32.totalorder %s10943_s26, %s12160_s1 }
  0x13   : > { %p10714_p9 = pnand %p12164_p8, %p10712_p7  ;;  %p10718_p12 = scmp.lt.u32.totalorder %s10716_s7, %s10711_s4 }
  0x14   : > { %p10720_p1 = scmp.lt.u32.totalorder %s10711_s4, %s10943_s26 }
  0x15   : > { %p10715_p10 = pneg %p10714_p9  ;;  %p10719_p13 = por %p10718_p12, %p10717_p11 }
  0x17   : > { %p10721_p2 = por %p10720_p1, %p10719_p13 }
  0x19   : > { %p10722_p4 = pnand %p10721_p2, %p10715_p10 }
  0x1b   : > { %10725 = shalt.err (!%p10722_p4)
}
  0x1c   : > { %s10726_s10 = scalar_lea.vmem %s10949_s28, 131072  ;;  %s10871_s11 = smov [#allocation5]  }
  0x1d   : > { %p10727_p5 = scmp.ne.s32.totalorder %s10949_s28, %s10726_s10  ;;  %s10731_s17 = sshll.u32 %s10871_s11, 4  ;;  %s10732_s17 = int_to_ptr.vmem [resolvable:$false] %s10731_s17 }
  0x1e   : > { %s10733_s18 = scalar_lea.vmem %s10732_s17, 262144  ;;  %p10734_p3 = scmp.lt.s32.totalorder %s10949_s28, %s10732_s17 }
  0x1f   : > { %p10729_p7 = pnand %p10727_p5, %p12164_p8  ;;  %p10735_p11 = scmp.lt.s32.totalorder %s10733_s18, %s10726_s10 }
  0x21   : > { %p10730_p9 = pneg %p10729_p7  ;;  %p10736_p12 = por %p10735_p11, %p10734_p3 }
  0x23   : > { %p10737_p13 = pnand %p10736_p12, %p10730_p9 }
  0x25   : > { %10740 = shalt.err (!%p10737_p13)
}
  0x26   : > { %s10872_s20 = smov 512   ;;  %s10873_s22 = smov 256  }
  0x27   : > { %s10874_s23 = smov 16   ;;  %s10980_s24 = sadd.s32 4294967295, %s10869_s15  }
  0x28   : > { %9111 = dma.hbm_to_vmem [thread:$0]  (!%p10945_p6), %s10943_s26, 131072, %s10949_s28, %s10951_s30, %s10872_s20, %s10873_s22, %s10874_s23  }
  0x29   : > { %s7923_s25 = sadd.s32 4294967294, %s10869_s15   ;;  %p61_p3 = scmp.ne.s32.totalorder %s10861_s13, %s10857_s12 }
  0x2a   : > { %p12163_p10 = scmp.eq.s32.totalorder %s10980_s24, 0  ;;  %p111_p1 = scmp.eq.s32.totalorder %s10980_s24, 1 }
  0x2b   : > { %p117_p2 = scmp.eq.s32.totalorder %s7923_s25, 1  ;;  %p7924_p4 = scmp.ge.s32.totalorder %s10869_s15, 1 }
  0x2c   : > { %p10990_p5 = por %p12163_p10, %p61_p3  ;;  %p10997_p7 = por %p111_p1, %p55_p0 }
  0x2d   : > { %p11001_p9 = por %p117_p2, %p61_p3  ;;  %p124_p11 = scmp.lt.s32.totalorder %s10869_s15, 3 }
  0x2e   : > { %s12171_s27 = scalar_select %p10990_p5, 1, 0 }
  0x2f   : > { %s12172_s26 = scalar_select %p10997_p7, 1, 0 }
  0x30   : > { %s12173_s28 = scalar_select %p11001_p9, 1, 0 }
  0x31   : > { %p11006_p12 = pnand %p7924_p4, %p124_p11  ;;  %s10875_s5 = smov [#allocation2]  }
  0x32   : > { %s137_s6 = sshll.u32 %s10875_s5, 4  ;;  %s7930_s7 = sshll.u32 %s150_s21, 2  ;;  %s138_s6 = int_to_ptr.vmem [resolvable:$true] %s137_s6 }
  0x33   : > { %s12174_s4 = scalar_select %p11006_p12, 1, 0 }
  0x34   : > { %p9104_p13 = pneg %p11006_p12  ;;  %s8968_s8 = sshll.u32 %s10869_s15, 6 }
  0x35   : > { %s173_s9 = scalar_lea.vmem [#allocation7], %s7930_s7  ;;  %s11024_s20 = scalar_lea.hbm %s12161_s2, %s8968_s8 }
  0x36   : > { %s181_s10 = sshll.u32 %s173_s9, 4  ;;  %p11017_p0 = pnand %p9104_p13, %p12163_p10  ;;  %s11026_s10 = int_to_ptr.vmem [resolvable:$true] %s181_s10 }
  0x37   : > { %s10741_s23 = scalar_lea.hbm %s12159_s0, 4096 }
  0x38   : > { %p10742_p3 = scmp.ne.s32.totalorder %s12159_s0, %s10741_s23  ;;  %p10743_p1 = pneg %p11017_p0 }
  0x39   : > { %p10748_p11 = scmp.lt.u32.totalorder %s10741_s23, %s12159_s0 }
  0x3a   : > { %p10744_p2 = pnand %p10743_p1, %p10742_p3 }
  0x3c   : > { %p10745_p4 = pneg %p10744_p2 }
  0x3e   : > { %p10750_p13 = pnand %p10748_p11, %p10745_p4 }
  0x40   : > { %10753 = shalt.err (!%p10750_p13)
}
  0x41   : > { %s10754_s8 = scalar_lea.vmem %s138_s6, 4096  ;;  %p10762_p7 = scmp.lt.s32.totalorder %s138_s6, %s138_s6 }
  0x42   : > { %p10755_p10 = scmp.ne.s32.totalorder %s138_s6, %s10754_s8  ;;  %p10763_p5 = scmp.lt.s32.totalorder %s10754_s8, %s10754_s8 }
  0x44   : > { %p10757_p8 = pnand %p10755_p10, %p10743_p1  ;;  %p10764_p12 = por %p10763_p5, %p10762_p7 }
  0x46   : > { %p10758_p9 = pneg %p10757_p8 }
  0x48   : > { %p10765_p6 = pnand %p10764_p12, %p10758_p9 }
  0x4a   : > { %10768 = shalt.err (!%p10765_p6)
}
  0x4b   : > { %9107 = dma.hbm_to_vmem [thread:$0]  (!%p11017_p0), %s12159_s0, 4096, %s138_s6, [#allocation3]  }
  0x4c   : > { %s10769_s21 = scalar_lea.hbm %s11024_s20, 64  ;;  %p12176_p10 = scmp.ne.s32.totalorder %s12170_s29, 0 }
  0x4d   : > { %p10770_p3 = scmp.ne.s32.totalorder %s11024_s20, %s10769_s21  ;;  %s10774_s25 = scalar_lea.hbm %s12161_s2, 128 }
  0x4e   : > { %p12177_p8 = pneg %p12176_p10  ;;  %p10775_p6 = scmp.lt.u32.totalorder %s11024_s20, %s12161_s2 }
  0x4f   : > { %p10776_p5 = scmp.lt.u32.totalorder %s10774_s25, %s10769_s21  ;;  %p10778_p9 = scmp.lt.u32.totalorder %s10769_s21, %s11024_s20 }
  0x50   : > { %p10772_p1 = pnand %p10770_p3, %p12177_p8 }
  0x51   : > { %p10777_p7 = por %p10776_p5, %p10775_p6 }
  0x52   : > { %p10773_p2 = pneg %p10772_p1 }
  0x53   : > { %p10779_p12 = por %p10778_p9, %p10777_p7 }
  0x55   : > { %p10780_p4 = pnand %p10779_p12, %p10773_p2 }
  0x57   : > { %10783 = shalt.err (!%p10780_p4)
}
  0x58   : > { %s10784_s6 = scalar_lea.vmem %s11026_s10, 64  ;;  %p12178_p11 = pmov %p12177_p8 }
  0x59   : > { %p10785_p0 = scmp.ne.s32.totalorder %s11026_s10, %s10784_s6  ;;  %s10876_s7 = smov [#allocation7]  }
  0x5a   : > { %s10789_s9 = sshll.u32 %s10876_s7, 4  ;;  %s10790_s9 = int_to_ptr.vmem [resolvable:$false] %s10789_s9 }
  0x5b   : > { %p10787_p13 = pnand %p10785_p0, %p12178_p11  ;;  %s10791_s8 = scalar_lea.vmem %s10790_s9, 128 }
  0x5c   : > { %p10792_p8 = scmp.lt.s32.totalorder %s11026_s10, %s10790_s9  ;;  %p10793_p1 = scmp.lt.s32.totalorder %s10791_s8, %s10784_s6 }
  0x5d   : > { %p10788_p3 = pneg %p10787_p13 }
  0x5e   : > { %p10794_p6 = por %p10793_p1, %p10792_p8 }
  0x60   : > { %p10795_p5 = pnand %p10794_p6, %p10788_p3 }
  0x62   : > { %10798 = shalt.err (!%p10795_p5)
}
  0x63   : > { %9114 = dma.hbm_to_vmem [thread:$0]  (!%p12176_p10), %s11024_s20, 64, %s11026_s10, %s10951_s30  }
  0x64   : > { %p12179_p2 = scmp.ne.s32.totalorder %s12174_s4, 0 }
  0x65   : > { %p12180_p7 = scmp.eq.s32.totalorder (!%p12179_p2), %s10980_s24, 0 }
  0x66   : > { %190 = sbr.rel (%p12179_p2) target bundleno = 1399 (0x577), region = 32 }
  0x6d   : > { %10844 = dma.done.wait (%p12180_p7), [#allocation3], 4096   ;;  %p12181_p9 = pmov %p12180_p7 }
  0x6e   : > { %s196_s17 = sand.u32 1, %s10980_s24   ;;  %s11076_s18 = sand.u32 1, %s10861_s13  }
  0x6f   : > { %10846 = vsyncadd (%p12181_p9), [#allocation3], 4294963200  ;;  %s7935_s29 = sshll.u32 %s11076_s18, 13  ;;  %s197_s21 = scalar_lea.sflag [#allocation6], %s196_s17 }
  0x70   : > { %s11079_s22 = scalar_lea.vmem [#allocation5], %s7935_s29  ;;  %p12182_p10 = scmp.ne.s32.totalorder %s12171_s27, 0 }
  0x72   : > { %10848 = dma.done.wait (%p12182_p10), %s197_s21, 131136  }
  0x73   : > { %10850 = vsyncadd (%p12182_p10), %s197_s21, 4294836160  ;;  %v9159_v0 = vld [vmem:[%s11079_s22 + $0x4] ss:$16 sps:$4 sm:$0xff]   ;;  %v9161_v1 = vld [vmem:[%s11079_s22 + $0xc] ss:$16 sps:$4 sm:$0xff]   ;;  %s7936_s30 = sshll.u32 %s11076_s18, 2 }
  0x74   : > { %6470 = vmatprep.subr.bf16.mxu0 %v9159_v0  ;;  %v9163_v2 = vld [vmem:[%s11079_s22] ss:$16 sps:$4 sm:$0xff]   ;;  %v9164_v3 = vld [vmem:[%s11079_s22 + $0x8] ss:$16 sps:$4 sm:$0xff]   ;;  %7126 = vmatprep.subr.bf16.mxu1 %v9161_v1  ;;  %v9165_v4 = vld [vmem:[%s11079_s22 + $0x24] ss:$16 sps:$4 sm:$0xff]  }
  0x75   : > { %6471 = vmatpush1.bf16.msra.mxu0 %v9163_v2  ;;  %7127 = vmatpush1.bf16.msra.mxu1 %v9164_v3  ;;  %v9167_v5 = vld [vmem:[%s11079_s22 + $0x2c] ss:$16 sps:$4 sm:$0xff]   ;;  %v9169_v6 = vld [vmem:[%s11079_s22 + $0x20] ss:$16 sps:$4 sm:$0xff]   ;;  %v9170_v7 = vld [vmem:[%s11079_s22 + $0x28] ss:$16 sps:$4 sm:$0xff]  }
  0x76   : > { %6472 = vmatprep.subr.bf16.mxu0 %v9165_v4  ;;  %7128 = vmatprep.subr.bf16.mxu1 %v9167_v5  ;;  %v9171_v8 = vld [vmem:[%s11079_s22 + $0x44] ss:$16 sps:$4 sm:$0xff]   ;;  %v9173_v9 = vld [vmem:[%s11079_s22 + $0x4c] ss:$16 sps:$4 sm:$0xff]   ;;  %v9175_v10 = vld [vmem:[%s11079_s22 + $0x40] ss:$16 sps:$4 sm:$0xff]  }
  0x77   : > { %v9176_v11 = vld [vmem:[%s11079_s22 + $0x48] ss:$16 sps:$4 sm:$0xff]   ;;  %v9177_v12 = vld [vmem:[%s11079_s22 + $0x64] ss:$16 sps:$4 sm:$0xff]   ;;  %v9179_v13 = vld [vmem:[%s11079_s22 + $0x6c] ss:$16 sps:$4 sm:$0xff]  }
  0x78   : > { %v9181_v14 = vld [vmem:[%s11079_s22 + $0x60] ss:$16 sps:$4 sm:$0xff]   ;;  %v9182_v15 = vld [vmem:[%s11079_s22 + $0x68] ss:$16 sps:$4 sm:$0xff]   ;;  %v9183_v16 = vld [vmem:[%s11079_s22 + $0x84] ss:$16 sps:$4 sm:$0xff]  }
  0x79   : > { %6473 = vmatpush1.bf16.msra.mxu0 %v9169_v6  ;;  %7129 = vmatpush1.bf16.msra.mxu1 %v9170_v7  ;;  %v9185_v17 = vld [vmem:[%s11079_s22 + $0x8c] ss:$16 sps:$4 sm:$0xff]   ;;  %v9187_v18 = vld [vmem:[%s11079_s22 + $0x80] ss:$16 sps:$4 sm:$0xff]   ;;  %v9188_v19 = vld [vmem:[%s11079_s22 + $0x88] ss:$16 sps:$4 sm:$0xff]  }
  0x7a   : > { %6474 = vmatprep.subr.bf16.mxu0 %v9171_v8  ;;  %7130 = vmatprep.subr.bf16.mxu1 %v9173_v9  ;;  %v9189_v20 = vld [vmem:[%s11079_s22 + $0xa4] ss:$16 sps:$4 sm:$0xff]   ;;  %v9191_v21 = vld [vmem:[%s11079_s22 + $0xac] ss:$16 sps:$4 sm:$0xff]   ;;  %v9193_v22 = vld [vmem:[%s11079_s22 + $0xa0] ss:$16 sps:$4 sm:$0xff]  }
  0x7b   : > { %v9194_v23 = vld [vmem:[%s11079_s22 + $0xa8] ss:$16 sps:$4 sm:$0xff]   ;;  %v9195_v24 = vld [vmem:[%s11079_s22 + $0xc4] ss:$16 sps:$4 sm:$0xff]   ;;  %v9197_v25 = vld [vmem:[%s11079_s22 + $0xcc] ss:$16 sps:$4 sm:$0xff]  }
  0x7c   : > { %v9199_v26 = vld [vmem:[%s11079_s22 + $0xc0] ss:$16 sps:$4 sm:$0xff]   ;;  %v9200_v27 = vld [vmem:[%s11079_s22 + $0xc8] ss:$16 sps:$4 sm:$0xff]   ;;  %v9201_v28 = vld [vmem:[%s11079_s22 + $0xe4] ss:$16 sps:$4 sm:$0xff]  }
  0x7d   : > { %6475 = vmatpush1.bf16.msra.mxu0 %v9175_v10  ;;  %7131 = vmatpush1.bf16.msra.mxu1 %v9176_v11  ;;  %v9203_v29 = vld [vmem:[%s11079_s22 + $0xec] ss:$16 sps:$4 sm:$0xff]   ;;  %v9205_v30 = vld [vmem:[%s11079_s22 + $0xe0] ss:$16 sps:$4 sm:$0xff]   ;;  %v9206_v31 = vld [vmem:[%s11079_s22 + $0xe8] ss:$16 sps:$4 sm:$0xff]  }
  0x7e   : > { %6476 = vmatprep.subr.bf16.mxu0 %v9177_v12  ;;  %7132 = vmatprep.subr.bf16.mxu1 %v9179_v13  ;;  %v9207_v32 = vld [vmem:[%s11079_s22 + $0x104] ss:$16 sps:$4 sm:$0xff]   ;;  %v9209_v33 = vld [vmem:[%s11079_s22 + $0x10c] ss:$16 sps:$4 sm:$0xff]   ;;  %v9211_v34 = vld [vmem:[%s11079_s22 + $0x100] ss:$16 sps:$4 sm:$0xff]  }
  0x7f   : > { %v9212_v35 = vld [vmem:[%s11079_s22 + $0x108] ss:$16 sps:$4 sm:$0xff]   ;;  %v9213_v36 = vld [vmem:[%s11079_s22 + $0x124] ss:$16 sps:$4 sm:$0xff]   ;;  %v9215_v37 = vld [vmem:[%s11079_s22 + $0x12c] ss:$16 sps:$4 sm:$0xff]  }
  0x80   : > { %v9217_v38 = vld [vmem:[%s11079_s22 + $0x120] ss:$16 sps:$4 sm:$0xff]   ;;  %v9218_v39 = vld [vmem:[%s11079_s22 + $0x128] ss:$16 sps:$4 sm:$0xff]   ;;  %v9219_v40 = vld [vmem:[%s11079_s22 + $0x144] ss:$16 sps:$4 sm:$0xff]  }
  0x81   : > { %6477 = vmatpush1.bf16.msra.mxu0 %v9181_v14  ;;  %7133 = vmatpush1.bf16.msra.mxu1 %v9182_v15  ;;  %v9221_v41 = vld [vmem:[%s11079_s22 + $0x14c] ss:$16 sps:$4 sm:$0xff]   ;;  %v9223_v42 = vld [vmem:[%s11079_s22 + $0x140] ss:$16 sps:$4 sm:$0xff]   ;;  %v9224_v43 = vld [vmem:[%s11079_s22 + $0x148] ss:$16 sps:$4 sm:$0xff]  }
  0x82   : > { %6478 = vmatprep.subr.bf16.mxu0 %v9183_v16  ;;  %7134 = vmatprep.subr.bf16.mxu1 %v9185_v17  ;;  %v9225_v44 = vld [vmem:[%s11079_s22 + $0x164] ss:$16 sps:$4 sm:$0xff]   ;;  %v9227_v45 = vld [vmem:[%s11079_s22 + $0x16c] ss:$16 sps:$4 sm:$0xff]   ;;  %v9229_v47 = vld [vmem:[%s11079_s22 + $0x160] ss:$16 sps:$4 sm:$0xff]  }
  0x83   : > { %v241_v46 = vld [vmem:[#allocation2 + $0x8] sm:$0xff]  ;;  %v9231_v50 = vld [vmem:[%s11079_s22 + $0x184] ss:$16 sps:$4 sm:$0xff]   ;;  %v9235_v52 = vld [vmem:[%s11079_s22 + $0x180] ss:$16 sps:$4 sm:$0xff]   ;;  %s209_s27 = scalar_lea.vmem [#allocation7], %s7936_s30 }
  0x84   : > { %v273_v48 = vpack.c.bf16 %v241_v46, %v241_v46  ;;  %v9230_v49 = vld [vmem:[%s11079_s22 + $0x168] ss:$16 sps:$4 sm:$0xff]   ;;  %v9233_v51 = vld [vmem:[%s11079_s22 + $0x18c] ss:$16 sps:$4 sm:$0xff]   ;;  %v9237_v54 = vld [vmem:[%s11079_s22 + $0x1a4] ss:$16 sps:$4 sm:$0xff]  }
  0x85   : > { %6479 = vmatpush1.bf16.msra.mxu0 %v9187_v18  ;;  %7135 = vmatpush1.bf16.msra.mxu1 %v9188_v19  ;;  %v9236_v53 = vld [vmem:[%s11079_s22 + $0x188] ss:$16 sps:$4 sm:$0xff]   ;;  %v9239_v55 = vld [vmem:[%s11079_s22 + $0x1ac] ss:$16 sps:$4 sm:$0xff]   ;;  %v9241_v56 = vld [vmem:[%s11079_s22 + $0x1a0] ss:$16 sps:$4 sm:$0xff]  }
  0x86   : > { %6480 = vmatprep.subr.bf16.mxu0 %v9189_v20  ;;  %7136 = vmatprep.subr.bf16.mxu1 %v9191_v21  ;;  %v9242_v57 = vld [vmem:[%s11079_s22 + $0x1a8] ss:$16 sps:$4 sm:$0xff]   ;;  %v9243_v58 = vld [vmem:[%s11079_s22 + $0x1c4] ss:$16 sps:$4 sm:$0xff]   ;;  %v9245_v59 = vld [vmem:[%s11079_s22 + $0x1cc] ss:$16 sps:$4 sm:$0xff]  }
  0x87   : > { %6502 = vmatprep.mubr.bf16.mxu0 %v273_v48  ;;  %7158 = vmatprep.mubr.bf16.mxu1 %v273_v48  ;;  %v9247_v60 = vld [vmem:[%s11079_s22 + $0x1c0] ss:$16 sps:$4 sm:$0xff]   ;;  %v9248_v61 = vld [vmem:[%s11079_s22 + $0x1c8] ss:$16 sps:$4 sm:$0xff]   ;;  %v9249_v62 = vld [vmem:[%s11079_s22 + $0x1e4] ss:$16 sps:$4 sm:$0xff]  }
  0x88   : > { %v9251_v63 = vld [vmem:[%s11079_s22 + $0x1ec] ss:$16 sps:$4 sm:$0xff]   ;;  %v9253_v0 = vld [vmem:[%s11079_s22 + $0x1e0] ss:$16 sps:$4 sm:$0xff]   ;;  %v9254_v1 = vld [vmem:[%s11079_s22 + $0x1e8] ss:$16 sps:$4 sm:$0xff]  }
  0x89   : > { %6481 = vmatpush1.bf16.msra.mxu0 %v9193_v22  ;;  %7137 = vmatpush1.bf16.msra.mxu1 %v9194_v23  ;;  %v240_v2 = vld [vmem:[#allocation2] sm:$0xff]  ;;  %v9260_v4 = vld [vmem:[%s11079_s22 + $0x20c] ss:$16 sps:$4 sm:$0xff]   ;;  %v9258_v7 = vld [vmem:[%s11079_s22 + $0x208] ss:$16 sps:$4 sm:$0xff]   ;;  %s7937_s4 = sshll.u32 %s11076_s18, 5 }
  0x8a   : > { %6482 = vmatprep.subr.bf16.mxu0 %v9195_v24  ;;  %7138 = vmatprep.subr.bf16.mxu1 %v9197_v25  ;;  %v9257_v3 = vld [vmem:[%s11079_s22 + $0x204] ss:$16 sps:$4 sm:$0xff]   ;;  %v272_v5 = vpack.c.bf16 %v240_v2, %v240_v2  ;;  %v9255_v6 = vld [vmem:[%s11079_s22 + $0x200] ss:$16 sps:$4 sm:$0xff]   ;;  %v9266_v9 = vld [vmem:[%s11079_s22 + $0x22c] ss:$16 sps:$4 sm:$0xff]  }
  0x8b   : > { %v9263_v8 = vld [vmem:[%s11079_s22 + $0x224] ss:$16 sps:$4 sm:$0xff]   ;;  %v9261_v10 = vld [vmem:[%s11079_s22 + $0x220] ss:$16 sps:$4 sm:$0xff]   ;;  %v9264_v11 = vld [vmem:[%s11079_s22 + $0x228] ss:$16 sps:$4 sm:$0xff]  }
  0x8c   : > { %v9269_v12 = vld [vmem:[%s11079_s22 + $0x244] ss:$16 sps:$4 sm:$0xff]   ;;  %v9272_v13 = vld [vmem:[%s11079_s22 + $0x24c] ss:$16 sps:$4 sm:$0xff]   ;;  %v9267_v14 = vld [vmem:[%s11079_s22 + $0x240] ss:$16 sps:$4 sm:$0xff]  }
  0x8d   : > { %6483 = vmatpush1.bf16.msra.mxu0 %v9199_v26  ;;  %7139 = vmatpush1.bf16.msra.mxu1 %v9200_v27  ;;  %v9270_v15 = vld [vmem:[%s11079_s22 + $0x248] ss:$16 sps:$4 sm:$0xff]   ;;  %v9275_v16 = vld [vmem:[%s11079_s22 + $0x264] ss:$16 sps:$4 sm:$0xff]   ;;  %v9278_v17 = vld [vmem:[%s11079_s22 + $0x26c] ss:$16 sps:$4 sm:$0xff]  }
  0x8e   : > { %6484 = vmatprep.subr.bf16.mxu0 %v9201_v28  ;;  %7140 = vmatprep.subr.bf16.mxu1 %v9203_v29  ;;  %v9273_v18 = vld [vmem:[%s11079_s22 + $0x260] ss:$16 sps:$4 sm:$0xff]   ;;  %v9276_v19 = vld [vmem:[%s11079_s22 + $0x268] ss:$16 sps:$4 sm:$0xff]   ;;  %v9281_v20 = vld [vmem:[%s11079_s22 + $0x284] ss:$16 sps:$4 sm:$0xff]  }
  0x8f   : > { %v9284_v21 = vld [vmem:[%s11079_s22 + $0x28c] ss:$16 sps:$4 sm:$0xff]   ;;  %v9279_v22 = vld [vmem:[%s11079_s22 + $0x280] ss:$16 sps:$4 sm:$0xff]   ;;  %v9282_v23 = vld [vmem:[%s11079_s22 + $0x288] ss:$16 sps:$4 sm:$0xff]  }
  0x90   : > { %v9287_v24 = vld [vmem:[%s11079_s22 + $0x2a4] ss:$16 sps:$4 sm:$0xff]   ;;  %v9290_v25 = vld [vmem:[%s11079_s22 + $0x2ac] ss:$16 sps:$4 sm:$0xff]   ;;  %v9285_v26 = vld [vmem:[%s11079_s22 + $0x2a0] ss:$16 sps:$4 sm:$0xff]  }
  0x91   : > { %6485 = vmatpush1.bf16.msra.mxu0 %v9205_v30  ;;  %7141 = vmatpush1.bf16.msra.mxu1 %v9206_v31  ;;  %v9288_v27 = vld [vmem:[%s11079_s22 + $0x2a8] ss:$16 sps:$4 sm:$0xff]   ;;  %v9293_v28 = vld [vmem:[%s11079_s22 + $0x2c4] ss:$16 sps:$4 sm:$0xff]   ;;  %v9296_v29 = vld [vmem:[%s11079_s22 + $0x2cc] ss:$16 sps:$4 sm:$0xff]  }
  0x92   : > { %6486 = vmatprep.subr.bf16.mxu0 %v9207_v32  ;;  %7142 = vmatprep.subr.bf16.mxu1 %v9209_v33  ;;  %v243_v30 = vld [vmem:[#allocation2 + $0x18] sm:$0xff]  ;;  %v9291_v31 = vld [vmem:[%s11079_s22 + $0x2c0] ss:$16 sps:$4 sm:$0xff]   ;;  %v9317_v46 = vld [vmem:[%s11079_s22 + $0x344] ss:$16 sps:$4 sm:$0xff]   ;;  %s8969_s10 = sshll.u32 %s10980_s24, 9 }
  0x93   : > { %v275_v32 = vpack.c.bf16 %v243_v30, %v243_v30  ;;  %v9294_v33 = vld [vmem:[%s11079_s22 + $0x2c8] ss:$16 sps:$4 sm:$0xff]   ;;  %v9315_v48 = vld [vmem:[%s11079_s22 + $0x340] ss:$16 sps:$4 sm:$0xff]   ;;  %v9347_v2 = vld [vmem:[%s11079_s22 + $0x3e4] ss:$16 sps:$4 sm:$0xff]   ;;  %s12115_s5 = scalar_lea.hbm %s12162_s3, %s8969_s10 }
  0x94   : > { %v9383_v30 = vld [vmem:[%s11079_s22 + $0x4a4] ss:$16 sps:$4 sm:$0xff]   ;;  %s236_s20 = scalar_lea.vmem [#allocation8], %s7937_s4  ;;  %s7807_s24 = scalar_lea.sflag [#allocation4], %s11076_s18 }
  0x95   : > { %6487 = vmatpush1.bf16.msra.mxu0 %v9211_v34  ;;  %7143 = vmatpush1.bf16.msra.mxu1 %v9212_v35  ;;  %v9299_v34 = vld [vmem:[%s11079_s22 + $0x2e4] ss:$16 sps:$4 sm:$0xff]   ;;  %v9302_v35 = vld [vmem:[%s11079_s22 + $0x2ec] ss:$16 sps:$4 sm:$0xff]   ;;  %s7821_s23 = sshll.u32 %s236_s20, 4  ;;  %p12183_p4 = scmp.ne.s32.totalorder %s12172_s26, 0  ;;  %s12117_s23 = int_to_ptr.vmem [resolvable:$true] %s7821_s23 }
  0x96   : > { %6488 = vmatprep.subr.bf16.mxu0 %v9213_v36  ;;  %7144 = vmatprep.subr.bf16.mxu1 %v9215_v37  ;;  %v9297_v36 = vld [vmem:[%s11079_s22 + $0x2e0] ss:$16 sps:$4 sm:$0xff]   ;;  %v9300_v37 = vld [vmem:[%s11079_s22 + $0x2e8] ss:$16 sps:$4 sm:$0xff]   ;;  %s10799_s6 = scalar_lea.vmem %s12117_s23, 512  ;;  %s10877_s7 = smov [#allocation8]  }
  0x97   : > { %p10800_p12 = scmp.ne.s32.totalorder %s12117_s23, %s10799_s6  ;;  %s10803_s9 = sshll.u32 %s10877_s7, 4  ;;  %s10804_s9 = int_to_ptr.vmem [resolvable:$false] %s10803_s9 }
  0x98   : > { %s10805_s8 = scalar_lea.vmem %s10804_s9, 1024  ;;  %p10806_p13 = scmp.lt.s32.totalorder %s12117_s23, %s10804_s9 }
  0x99   : > { %6489 = vmatpush1.bf16.msra.mxu0 %v9217_v38  ;;  %7145 = vmatpush1.bf16.msra.mxu1 %v9218_v39  ;;  %v9305_v38 = vld [vmem:[%s11079_s22 + $0x304] ss:$16 sps:$4 sm:$0xff]   ;;  %v9308_v39 = vld [vmem:[%s11079_s22 + $0x30c] ss:$16 sps:$4 sm:$0xff]   ;;  %p10801_p0 = pnand %p10800_p12, %p12183_p4  ;;  %p10807_p3 = scmp.lt.s32.totalorder %s10805_s8, %s10799_s6 }
  0x9a   : > { %6490 = vmatprep.subr.bf16.mxu0 %v9219_v40  ;;  %7146 = vmatprep.subr.bf16.mxu1 %v9221_v41  ;;  %v9303_v40 = vld [vmem:[%s11079_s22 + $0x300] ss:$16 sps:$4 sm:$0xff]   ;;  %v9306_v41 = vld [vmem:[%s11079_s22 + $0x308] ss:$16 sps:$4 sm:$0xff]  }
  0x9b   : > { %p10802_p11 = pneg %p10801_p0  ;;  %p10808_p8 = por %p10807_p3, %p10806_p13 }
  0x9d   : > { %6491 = vmatpush1.bf16.msra.mxu0 %v9223_v42  ;;  %7147 = vmatpush1.bf16.msra.mxu1 %v9224_v43  ;;  %v9311_v42 = vld [vmem:[%s11079_s22 + $0x324] ss:$16 sps:$4 sm:$0xff]   ;;  %v9314_v43 = vld [vmem:[%s11079_s22 + $0x32c] ss:$16 sps:$4 sm:$0xff]   ;;  %p10809_p1 = pnand %p10808_p8, %p10802_p11 }
  0x9e   : > { %6492 = vmatprep.subr.bf16.mxu0 %v9225_v44  ;;  %7148 = vmatprep.subr.bf16.mxu1 %v9227_v45  ;;  %v9309_v44 = vld [vmem:[%s11079_s22 + $0x320] ss:$16 sps:$4 sm:$0xff]   ;;  %v9312_v45 = vld [vmem:[%s11079_s22 + $0x328] ss:$16 sps:$4 sm:$0xff]  }
  0xa1   : > { %6493 = vmatpush1.bf16.msra.mxu0 %v9229_v47  ;;  %7149 = vmatpush1.bf16.msra.mxu1 %v9230_v49  ;;  %v9320_v47 = vld [vmem:[%s11079_s22 + $0x34c] ss:$16 sps:$4 sm:$0xff]   ;;  %v9318_v49 = vld [vmem:[%s11079_s22 + $0x348] ss:$16 sps:$4 sm:$0xff]  }
  0xa2   : > { %6494 = vmatprep.subr.bf16.mxu0 %v9231_v50  ;;  %7150 = vmatprep.subr.bf16.mxu1 %v9233_v51  ;;  %v9323_v50 = vld [vmem:[%s11079_s22 + $0x364] ss:$16 sps:$4 sm:$0xff]   ;;  %v9326_v51 = vld [vmem:[%s11079_s22 + $0x36c] ss:$16 sps:$4 sm:$0xff]  }
  0xa5   : > { %6495 = vmatpush1.bf16.msra.mxu0 %v9235_v52  ;;  %7151 = vmatpush1.bf16.msra.mxu1 %v9236_v53  ;;  %v9321_v52 = vld [vmem:[%s11079_s22 + $0x360] ss:$16 sps:$4 sm:$0xff]   ;;  %v9324_v53 = vld [vmem:[%s11079_s22 + $0x368] ss:$16 sps:$4 sm:$0xff]  }
  0xa6   : > { %6496 = vmatprep.subr.bf16.mxu0 %v9237_v54  ;;  %7152 = vmatprep.subr.bf16.mxu1 %v9239_v55  ;;  %v9329_v54 = vld [vmem:[%s11079_s22 + $0x384] ss:$16 sps:$4 sm:$0xff]   ;;  %v9332_v55 = vld [vmem:[%s11079_s22 + $0x38c] ss:$16 sps:$4 sm:$0xff]  }
  0xa9   : > { %6497 = vmatpush1.bf16.msra.mxu0 %v9241_v56  ;;  %7153 = vmatpush1.bf16.msra.mxu1 %v9242_v57  ;;  %v9327_v56 = vld [vmem:[%s11079_s22 + $0x380] ss:$16 sps:$4 sm:$0xff]   ;;  %v9330_v57 = vld [vmem:[%s11079_s22 + $0x388] ss:$16 sps:$4 sm:$0xff]  }
  0xaa   : > { %6498 = vmatprep.subr.bf16.mxu0 %v9243_v58  ;;  %7154 = vmatprep.subr.bf16.mxu1 %v9245_v59  ;;  %v9335_v58 = vld [vmem:[%s11079_s22 + $0x3a4] ss:$16 sps:$4 sm:$0xff]   ;;  %v9338_v59 = vld [vmem:[%s11079_s22 + $0x3ac] ss:$16 sps:$4 sm:$0xff]  }
  0xad   : > { %6499 = vmatpush1.bf16.msra.mxu0 %v9247_v60  ;;  %7155 = vmatpush1.bf16.msra.mxu1 %v9248_v61  ;;  %v9333_v60 = vld [vmem:[%s11079_s22 + $0x3a0] ss:$16 sps:$4 sm:$0xff]   ;;  %v9336_v61 = vld [vmem:[%s11079_s22 + $0x3a8] ss:$16 sps:$4 sm:$0xff]  }
  0xae   : > { %6500 = vmatprep.subr.bf16.mxu0 %v9249_v62  ;;  %7156 = vmatprep.subr.bf16.mxu1 %v9251_v63  ;;  %v9341_v62 = vld [vmem:[%s11079_s22 + $0x3c4] ss:$16 sps:$4 sm:$0xff]   ;;  %v9344_v63 = vld [vmem:[%s11079_s22 + $0x3cc] ss:$16 sps:$4 sm:$0xff]  }
  0xb1   : > { %6501 = vmatpush1.bf16.msra.mxu0 %v9253_v0  ;;  %7157 = vmatpush1.bf16.msra.mxu1 %v9254_v1  ;;  %v9339_v0 = vld [vmem:[%s11079_s22 + $0x3c0] ss:$16 sps:$4 sm:$0xff]   ;;  %v9342_v1 = vld [vmem:[%s11079_s22 + $0x3c8] ss:$16 sps:$4 sm:$0xff]  }
  0xb2   : > { %6511 = vmatprep.subr.bf16.mxu0 %v9257_v3  ;;  %7167 = vmatprep.subr.bf16.mxu1 %v9260_v4  ;;  %v9350_v3 = vld [vmem:[%s11079_s22 + $0x3ec] ss:$16 sps:$4 sm:$0xff]   ;;  %v9345_v4 = vld [vmem:[%s11079_s22 + $0x3e0] ss:$16 sps:$4 sm:$0xff]  }
  0xb4   : > { %6503 = vmatmul.mubr.bf16.vlgmr.msra.gmra.mrb[0].mxu0 %v272_v5  ;;  %7159 = vmatmul.mubr.bf16.vlgmr.msra.gmra.mrb[0].mxu1 %v272_v5  ;;  %v9348_v5 = vld [vmem:[%s11079_s22 + $0x3e8] ss:$16 sps:$4 sm:$0xff]  }
  0xb5   : > { %6512 = vmatpush1.bf16.msra.mxu0 %v9255_v6  ;;  %7168 = vmatpush1.bf16.msra.mxu1 %v9258_v7  ;;  %v9353_v6 = vld [vmem:[%s11079_s22 + $0x404] ss:$16 sps:$4 sm:$0xff]  }
  0xb6   : > { %6513 = vmatprep.subr.bf16.mxu0 %v9263_v8  ;;  %7169 = vmatprep.subr.bf16.mxu1 %v9266_v9  ;;  %v242_v7 = vld [vmem:[#allocation2 + $0x10] sm:$0xff]  ;;  %v9356_v8 = vld [vmem:[%s11079_s22 + $0x40c] ss:$16 sps:$4 sm:$0xff]  }
  0xb7   : > { %6543 = vmatprep.mubr.bf16.mxu0 %v275_v32  ;;  %7199 = vmatprep.mubr.bf16.mxu1 %v275_v32  ;;  %v9351_v9 = vld [vmem:[%s11079_s22 + $0x400] ss:$16 sps:$4 sm:$0xff]  }
  0xb8   : > { %v9381_v32 = vld [vmem:[%s11079_s22 + $0x4a0] ss:$16 sps:$4 sm:$0xff]  }
  0xb9   : > { %6514 = vmatpush1.bf16.msra.mxu0 %v9261_v10  ;;  %7170 = vmatpush1.bf16.msra.mxu1 %v9264_v11  ;;  %v9354_v10 = vld [vmem:[%s11079_s22 + $0x408] ss:$16 sps:$4 sm:$0xff]   ;;  %v274_v11 = vpack.c.bf16 %v242_v7, %v242_v7  ;;  %v9446_v7 = vld [vmem:[%s11079_s22 + $0x5ec] ss:$16 sps:$4 sm:$0xff]  }
  0xba   : > { %6515 = vmatprep.subr.bf16.mxu0 %v9269_v12  ;;  %7171 = vmatprep.subr.bf16.mxu1 %v9272_v13  ;;  %v9359_v12 = vld [vmem:[%s11079_s22 + $0x424] ss:$16 sps:$4 sm:$0xff]   ;;  %v9362_v13 = vld [vmem:[%s11079_s22 + $0x42c] ss:$16 sps:$4 sm:$0xff]  }
  0xbd   : > { %6516 = vmatpush1.bf16.msra.mxu0 %v9267_v14  ;;  %7172 = vmatpush1.bf16.msra.mxu1 %v9270_v15  ;;  %v245_v14 = vld [vmem:[#allocation2 + $0x28] sm:$0xff] }
  0xbe   : > { %6517 = vmatprep.subr.bf16.mxu0 %v9275_v16  ;;  %7173 = vmatprep.subr.bf16.mxu1 %v9278_v17  ;;  %v277_v15 = vpack.c.bf16 %v245_v14, %v245_v14  ;;  %v9357_v16 = vld [vmem:[%s11079_s22 + $0x420] ss:$16 sps:$4 sm:$0xff]   ;;  %v9360_v17 = vld [vmem:[%s11079_s22 + $0x428] ss:$16 sps:$4 sm:$0xff]  }
  0xbf   : > { %v9450_v14 = vld [vmem:[%s11079_s22 + $0x608] ss:$16 sps:$4 sm:$0xff]  }
  0xc1   : > { %6518 = vmatpush1.bf16.msra.mxu0 %v9273_v18  ;;  %7174 = vmatpush1.bf16.msra.mxu1 %v9276_v19  ;;  %v9365_v18 = vld [vmem:[%s11079_s22 + $0x444] ss:$16 sps:$4 sm:$0xff]   ;;  %v9368_v19 = vld [vmem:[%s11079_s22 + $0x44c] ss:$16 sps:$4 sm:$0xff]  }
  0xc2   : > { %6519 = vmatprep.subr.bf16.mxu0 %v9281_v20  ;;  %7175 = vmatprep.subr.bf16.mxu1 %v9284_v21  ;;  %v9363_v20 = vld [vmem:[%s11079_s22 + $0x440] ss:$16 sps:$4 sm:$0xff]   ;;  %v9366_v21 = vld [vmem:[%s11079_s22 + $0x448] ss:$16 sps:$4 sm:$0xff]  }
  0xc5   : > { %6520 = vmatpush1.bf16.msra.mxu0 %v9279_v22  ;;  %7176 = vmatpush1.bf16.msra.mxu1 %v9282_v23  ;;  %v9371_v22 = vld [vmem:[%s11079_s22 + $0x464] ss:$16 sps:$4 sm:$0xff]   ;;  %v9374_v23 = vld [vmem:[%s11079_s22 + $0x46c] ss:$16 sps:$4 sm:$0xff]  }
  0xc6   : > { %6521 = vmatprep.subr.bf16.mxu0 %v9287_v24  ;;  %7177 = vmatprep.subr.bf16.mxu1 %v9290_v25  ;;  %v9369_v24 = vld [vmem:[%s11079_s22 + $0x460] ss:$16 sps:$4 sm:$0xff]   ;;  %v9372_v25 = vld [vmem:[%s11079_s22 + $0x468] ss:$16 sps:$4 sm:$0xff]  }
  0xc9   : > { %6522 = vmatpush1.bf16.msra.mxu0 %v9285_v26  ;;  %7178 = vmatpush1.bf16.msra.mxu1 %v9288_v27  ;;  %v9377_v26 = vld [vmem:[%s11079_s22 + $0x484] ss:$16 sps:$4 sm:$0xff]   ;;  %v9380_v27 = vld [vmem:[%s11079_s22 + $0x48c] ss:$16 sps:$4 sm:$0xff]  }
  0xca   : > { %6523 = vmatprep.subr.bf16.mxu0 %v9293_v28  ;;  %7179 = vmatprep.subr.bf16.mxu1 %v9296_v29  ;;  %v9375_v28 = vld [vmem:[%s11079_s22 + $0x480] ss:$16 sps:$4 sm:$0xff]   ;;  %v9378_v29 = vld [vmem:[%s11079_s22 + $0x488] ss:$16 sps:$4 sm:$0xff]  }
  0xcd   : > { %6524 = vmatpush1.bf16.msra.mxu0 %v9291_v31  ;;  %7180 = vmatpush1.bf16.msra.mxu1 %v9294_v33  ;;  %v9386_v31 = vld [vmem:[%s11079_s22 + $0x4ac] ss:$16 sps:$4 sm:$0xff]   ;;  %v9384_v33 = vld [vmem:[%s11079_s22 + $0x4a8] ss:$16 sps:$4 sm:$0xff]  }
  0xce   : > { %6525 = vmatprep.subr.bf16.mxu0 %v9299_v34  ;;  %7181 = vmatprep.subr.bf16.mxu1 %v9302_v35  ;;  %v9389_v34 = vld [vmem:[%s11079_s22 + $0x4c4] ss:$16 sps:$4 sm:$0xff]   ;;  %v9392_v35 = vld [vmem:[%s11079_s22 + $0x4cc] ss:$16 sps:$4 sm:$0xff]  }
  0xd1   : > { %6526 = vmatpush1.bf16.msra.mxu0 %v9297_v36  ;;  %7182 = vmatpush1.bf16.msra.mxu1 %v9300_v37  ;;  %v9387_v36 = vld [vmem:[%s11079_s22 + $0x4c0] ss:$16 sps:$4 sm:$0xff]   ;;  %v9390_v37 = vld [vmem:[%s11079_s22 + $0x4c8] ss:$16 sps:$4 sm:$0xff]  }
  0xd2   : > { %6527 = vmatprep.subr.bf16.mxu0 %v9305_v38  ;;  %7183 = vmatprep.subr.bf16.mxu1 %v9308_v39  ;;  %v9395_v38 = vld [vmem:[%s11079_s22 + $0x4e4] ss:$16 sps:$4 sm:$0xff]   ;;  %v9398_v39 = vld [vmem:[%s11079_s22 + $0x4ec] ss:$16 sps:$4 sm:$0xff]  }
  0xd5   : > { %6528 = vmatpush1.bf16.msra.mxu0 %v9303_v40  ;;  %7184 = vmatpush1.bf16.msra.mxu1 %v9306_v41  ;;  %v9393_v40 = vld [vmem:[%s11079_s22 + $0x4e0] ss:$16 sps:$4 sm:$0xff]   ;;  %v9396_v41 = vld [vmem:[%s11079_s22 + $0x4e8] ss:$16 sps:$4 sm:$0xff]  }
  0xd6   : > { %6529 = vmatprep.subr.bf16.mxu0 %v9311_v42  ;;  %7185 = vmatprep.subr.bf16.mxu1 %v9314_v43  ;;  %v9401_v42 = vld [vmem:[%s11079_s22 + $0x504] ss:$16 sps:$4 sm:$0xff]   ;;  %v9404_v43 = vld [vmem:[%s11079_s22 + $0x50c] ss:$16 sps:$4 sm:$0xff]  }
  0xd9   : > { %6530 = vmatpush1.bf16.msra.mxu0 %v9309_v44  ;;  %7186 = vmatpush1.bf16.msra.mxu1 %v9312_v45  ;;  %v9399_v44 = vld [vmem:[%s11079_s22 + $0x500] ss:$16 sps:$4 sm:$0xff]   ;;  %v9402_v45 = vld [vmem:[%s11079_s22 + $0x508] ss:$16 sps:$4 sm:$0xff]  }
  0xda   : > { %6531 = vmatprep.subr.bf16.mxu0 %v9317_v46  ;;  %7187 = vmatprep.subr.bf16.mxu1 %v9320_v47  ;;  %v9407_v46 = vld [vmem:[%s11079_s22 + $0x524] ss:$16 sps:$4 sm:$0xff]   ;;  %v9410_v47 = vld [vmem:[%s11079_s22 + $0x52c] ss:$16 sps:$4 sm:$0xff]  }
  0xdd   : > { %6532 = vmatpush1.bf16.msra.mxu0 %v9315_v48  ;;  %7188 = vmatpush1.bf16.msra.mxu1 %v9318_v49  ;;  %v9405_v48 = vld [vmem:[%s11079_s22 + $0x520] ss:$16 sps:$4 sm:$0xff]   ;;  %v9408_v49 = vld [vmem:[%s11079_s22 + $0x528] ss:$16 sps:$4 sm:$0xff]  }
  0xde   : > { %6533 = vmatprep.subr.bf16.mxu0 %v9323_v50  ;;  %7189 = vmatprep.subr.bf16.mxu1 %v9326_v51  ;;  %v9413_v50 = vld [vmem:[%s11079_s22 + $0x544] ss:$16 sps:$4 sm:$0xff]   ;;  %v9416_v51 = vld [vmem:[%s11079_s22 + $0x54c] ss:$16 sps:$4 sm:$0xff]  }
  0xe1   : > { %6534 = vmatpush1.bf16.msra.mxu0 %v9321_v52  ;;  %7190 = vmatpush1.bf16.msra.mxu1 %v9324_v53  ;;  %v9411_v52 = vld [vmem:[%s11079_s22 + $0x540] ss:$16 sps:$4 sm:$0xff]   ;;  %v9414_v53 = vld [vmem:[%s11079_s22 + $0x548] ss:$16 sps:$4 sm:$0xff]  }
  0xe2   : > { %6535 = vmatprep.subr.bf16.mxu0 %v9329_v54  ;;  %7191 = vmatprep.subr.bf16.mxu1 %v9332_v55  ;;  %v9419_v54 = vld [vmem:[%s11079_s22 + $0x564] ss:$16 sps:$4 sm:$0xff]   ;;  %v9422_v55 = vld [vmem:[%s11079_s22 + $0x56c] ss:$16 sps:$4 sm:$0xff]  }
  0xe5   : > { %6536 = vmatpush1.bf16.msra.mxu0 %v9327_v56  ;;  %7192 = vmatpush1.bf16.msra.mxu1 %v9330_v57  ;;  %v9417_v56 = vld [vmem:[%s11079_s22 + $0x560] ss:$16 sps:$4 sm:$0xff]   ;;  %v9420_v57 = vld [vmem:[%s11079_s22 + $0x568] ss:$16 sps:$4 sm:$0xff]  }
  0xe6   : > { %6537 = vmatprep.subr.bf16.mxu0 %v9335_v58  ;;  %7193 = vmatprep.subr.bf16.mxu1 %v9338_v59  ;;  %v9425_v58 = vld [vmem:[%s11079_s22 + $0x584] ss:$16 sps:$4 sm:$0xff]   ;;  %v9428_v59 = vld [vmem:[%s11079_s22 + $0x58c] ss:$16 sps:$4 sm:$0xff]  }
  0xe9   : > { %6538 = vmatpush1.bf16.msra.mxu0 %v9333_v60  ;;  %7194 = vmatpush1.bf16.msra.mxu1 %v9336_v61  ;;  %v9423_v60 = vld [vmem:[%s11079_s22 + $0x580] ss:$16 sps:$4 sm:$0xff]   ;;  %v9426_v61 = vld [vmem:[%s11079_s22 + $0x588] ss:$16 sps:$4 sm:$0xff]  }
  0xea   : > { %6539 = vmatprep.subr.bf16.mxu0 %v9341_v62  ;;  %7195 = vmatprep.subr.bf16.mxu1 %v9344_v63  ;;  %v9431_v62 = vld [vmem:[%s11079_s22 + $0x5a4] ss:$16 sps:$4 sm:$0xff]   ;;  %v9434_v63 = vld [vmem:[%s11079_s22 + $0x5ac] ss:$16 sps:$4 sm:$0xff]  }
  0xed   : > { %6540 = vmatpush1.bf16.msra.mxu0 %v9339_v0  ;;  %7196 = vmatpush1.bf16.msra.mxu1 %v9342_v1  ;;  %v9429_v0 = vld [vmem:[%s11079_s22 + $0x5a0] ss:$16 sps:$4 sm:$0xff]   ;;  %v9432_v1 = vld [vmem:[%s11079_s22 + $0x5a8] ss:$16 sps:$4 sm:$0xff]  }
  0xee   : > { %6541 = vmatprep.subr.bf16.mxu0 %v9347_v2  ;;  %7197 = vmatprep.subr.bf16.mxu1 %v9350_v3  ;;  %v9437_v2 = vld [vmem:[%s11079_s22 + $0x5c4] ss:$16 sps:$4 sm:$0xff]   ;;  %v9440_v3 = vld [vmem:[%s11079_s22 + $0x5cc] ss:$16 sps:$4 sm:$0xff]  }
  0xf1   : > { %6542 = vmatpush1.bf16.msra.mxu0 %v9345_v4  ;;  %7198 = vmatpush1.bf16.msra.mxu1 %v9348_v5  ;;  %v9435_v4 = vld [vmem:[%s11079_s22 + $0x5c0] ss:$16 sps:$4 sm:$0xff]   ;;  %v9438_v5 = vld [vmem:[%s11079_s22 + $0x5c8] ss:$16 sps:$4 sm:$0xff]  }
  0xf2   : > { %6552 = vmatprep.subr.bf16.mxu0 %v9353_v6  ;;  %7208 = vmatprep.subr.bf16.mxu1 %v9356_v8  ;;  %v9443_v6 = vld [vmem:[%s11079_s22 + $0x5e4] ss:$16 sps:$4 sm:$0xff]   ;;  %v9441_v8 = vld [vmem:[%s11079_s22 + $0x5e0] ss:$16 sps:$4 sm:$0xff]  }
  0xf4   : > { %6544 = vmatmul.mubr.bf16.vlgmr.msra.gmra.mrb[0].mxu0 %v274_v11  ;;  %7200 = vmatmul.mubr.bf16.vlgmr.msra.gmra.mrb[0].mxu1 %v274_v11  ;;  %v244_v11 = vld [vmem:[#allocation2 + $0x20] sm:$0xff] }
  0xf5   : > { %6553 = vmatpush1.bf16.msra.mxu0 %v9351_v9  ;;  %7209 = vmatpush1.bf16.msra.mxu1 %v9354_v10  ;;  %v9444_v9 = vld [vmem:[%s11079_s22 + $0x5e8] ss:$16 sps:$4 sm:$0xff]   ;;  %v9449_v10 = vld [vmem:[%s11079_s22 + $0x604] ss:$16 sps:$4 sm:$0xff]  }
  0xf6   : > { %6554 = vmatprep.subr.bf16.mxu0 %v9359_v12  ;;  %7210 = vmatprep.subr.bf16.mxu1 %v9362_v13  ;;  %v9452_v12 = vld [vmem:[%s11079_s22 + $0x60c] ss:$16 sps:$4 sm:$0xff]   ;;  %v9447_v13 = vld [vmem:[%s11079_s22 + $0x600] ss:$16 sps:$4 sm:$0xff]  }
  0xf7   : > { %6584 = vmatprep.mubr.bf16.mxu0 %v277_v15  ;;  %7240 = vmatprep.mubr.bf16.mxu1 %v277_v15  ;;  %v276_v15 = vpack.c.bf16 %v244_v11, %v244_v11  ;;  %v9542_v11 = vld [vmem:[%s11079_s22 + $0x7ec] ss:$16 sps:$4 sm:$0xff]  }
  0xf9   : > { %6555 = vmatpush1.bf16.msra.mxu0 %v9357_v16  ;;  %7211 = vmatpush1.bf16.msra.mxu1 %v9360_v17  ;;  %v247_v16 = vld [vmem:[#allocation2 + $0x38] sm:$0xff]  ;;  %v9455_v17 = vld [vmem:[%s11079_s22 + $0x624] ss:$16 sps:$4 sm:$0xff]  }
  0xfa   : > { %6556 = vmatprep.subr.bf16.mxu0 %v9365_v18  ;;  %7212 = vmatprep.subr.bf16.mxu1 %v9368_v19  ;;  %v9458_v18 = vld [vmem:[%s11079_s22 + $0x62c] ss:$16 sps:$4 sm:$0xff]   ;;  %v279_v19 = vpack.c.bf16 %v247_v16, %v247_v16 }
  0xfb   : > { %v9548_v16 = vld [vmem:[%s11079_s22 + $0x80c] ss:$16 sps:$4 sm:$0xff]  }
  0xfd   : > { %6557 = vmatpush1.bf16.msra.mxu0 %v9363_v20  ;;  %7213 = vmatpush1.bf16.msra.mxu1 %v9366_v21  ;;  %v9453_v20 = vld [vmem:[%s11079_s22 + $0x620] ss:$16 sps:$4 sm:$0xff]   ;;  %v9456_v21 = vld [vmem:[%s11079_s22 + $0x628] ss:$16 sps:$4 sm:$0xff]  }
  0xfe   : > { %6558 = vmatprep.subr.bf16.mxu0 %v9371_v22  ;;  %7214 = vmatprep.subr.bf16.mxu1 %v9374_v23  ;;  %v9461_v22 = vld [vmem:[%s11079_s22 + $0x644] ss:$16 sps:$4 sm:$0xff]   ;;  %v9464_v23 = vld [vmem:[%s11079_s22 + $0x64c] ss:$16 sps:$4 sm:$0xff]  }
 0x101   : > { %6559 = vmatpush1.bf16.msra.mxu0 %v9369_v24  ;;  %7215 = vmatpush1.bf16.msra.mxu1 %v9372_v25  ;;  %v9459_v24 = vld [vmem:[%s11079_s22 + $0x640] ss:$16 sps:$4 sm:$0xff]   ;;  %v9462_v25 = vld [vmem:[%s11079_s22 + $0x648] ss:$16 sps:$4 sm:$0xff]  }
 0x102   : > { %6560 = vmatprep.subr.bf16.mxu0 %v9377_v26  ;;  %7216 = vmatprep.subr.bf16.mxu1 %v9380_v27  ;;  %v9467_v26 = vld [vmem:[%s11079_s22 + $0x664] ss:$16 sps:$4 sm:$0xff]   ;;  %v9470_v27 = vld [vmem:[%s11079_s22 + $0x66c] ss:$16 sps:$4 sm:$0xff]  }
 0x105   : > { %6561 = vmatpush1.bf16.msra.mxu0 %v9375_v28  ;;  %7217 = vmatpush1.bf16.msra.mxu1 %v9378_v29  ;;  %v9465_v28 = vld [vmem:[%s11079_s22 + $0x660] ss:$16 sps:$4 sm:$0xff]   ;;  %v9468_v29 = vld [vmem:[%s11079_s22 + $0x668] ss:$16 sps:$4 sm:$0xff]  }
 0x106   : > { %6562 = vmatprep.subr.bf16.mxu0 %v9383_v30  ;;  %7218 = vmatprep.subr.bf16.mxu1 %v9386_v31  ;;  %v9473_v30 = vld [vmem:[%s11079_s22 + $0x684] ss:$16 sps:$4 sm:$0xff]   ;;  %v9476_v31 = vld [vmem:[%s11079_s22 + $0x68c] ss:$16 sps:$4 sm:$0xff]  }
 0x109   : > { %6563 = vmatpush1.bf16.msra.mxu0 %v9381_v32  ;;  %7219 = vmatpush1.bf16.msra.mxu1 %v9384_v33  ;;  %v9471_v32 = vld [vmem:[%s11079_s22 + $0x680] ss:$16 sps:$4 sm:$0xff]   ;;  %v9474_v33 = vld [vmem:[%s11079_s22 + $0x688] ss:$16 sps:$4 sm:$0xff]  }
 0x10a   : > { %6564 = vmatprep.subr.bf16.mxu0 %v9389_v34  ;;  %7220 = vmatprep.subr.bf16.mxu1 %v9392_v35  ;;  %v9479_v34 = vld [vmem:[%s11079_s22 + $0x6a4] ss:$16 sps:$4 sm:$0xff]   ;;  %v9482_v35 = vld [vmem:[%s11079_s22 + $0x6ac] ss:$16 sps:$4 sm:$0xff]  }
 0x10d   : > { %6565 = vmatpush1.bf16.msra.mxu0 %v9387_v36  ;;  %7221 = vmatpush1.bf16.msra.mxu1 %v9390_v37  ;;  %v9477_v36 = vld [vmem:[%s11079_s22 + $0x6a0] ss:$16 sps:$4 sm:$0xff]   ;;  %v9480_v37 = vld [vmem:[%s11079_s22 + $0x6a8] ss:$16 sps:$4 sm:$0xff]  }
 0x10e   : > { %6566 = vmatprep.subr.bf16.mxu0 %v9395_v38  ;;  %7222 = vmatprep.subr.bf16.mxu1 %v9398_v39  ;;  %v9485_v38 = vld [vmem:[%s11079_s22 + $0x6c4] ss:$16 sps:$4 sm:$0xff]   ;;  %v9488_v39 = vld [vmem:[%s11079_s22 + $0x6cc] ss:$16 sps:$4 sm:$0xff]  }
 0x111   : > { %6567 = vmatpush1.bf16.msra.mxu0 %v9393_v40  ;;  %7223 = vmatpush1.bf16.msra.mxu1 %v9396_v41  ;;  %v9483_v40 = vld [vmem:[%s11079_s22 + $0x6c0] ss:$16 sps:$4 sm:$0xff]   ;;  %v9486_v41 = vld [vmem:[%s11079_s22 + $0x6c8] ss:$16 sps:$4 sm:$0xff]  }
 0x112   : > { %6568 = vmatprep.subr.bf16.mxu0 %v9401_v42  ;;  %7224 = vmatprep.subr.bf16.mxu1 %v9404_v43  ;;  %v9491_v42 = vld [vmem:[%s11079_s22 + $0x6e4] ss:$16 sps:$4 sm:$0xff]   ;;  %v9494_v43 = vld [vmem:[%s11079_s22 + $0x6ec] ss:$16 sps:$4 sm:$0xff]  }
 0x115   : > { %6569 = vmatpush1.bf16.msra.mxu0 %v9399_v44  ;;  %7225 = vmatpush1.bf16.msra.mxu1 %v9402_v45  ;;  %v9489_v44 = vld [vmem:[%s11079_s22 + $0x6e0] ss:$16 sps:$4 sm:$0xff]   ;;  %v9492_v45 = vld [vmem:[%s11079_s22 + $0x6e8] ss:$16 sps:$4 sm:$0xff]  }
 0x116   : > { %6570 = vmatprep.subr.bf16.mxu0 %v9407_v46  ;;  %7226 = vmatprep.subr.bf16.mxu1 %v9410_v47  ;;  %v9497_v46 = vld [vmem:[%s11079_s22 + $0x704] ss:$16 sps:$4 sm:$0xff]   ;;  %v9500_v47 = vld [vmem:[%s11079_s22 + $0x70c] ss:$16 sps:$4 sm:$0xff]  }
 0x119   : > { %6571 = vmatpush1.bf16.msra.mxu0 %v9405_v48  ;;  %7227 = vmatpush1.bf16.msra.mxu1 %v9408_v49  ;;  %v9495_v48 = vld [vmem:[%s11079_s22 + $0x700] ss:$16 sps:$4 sm:$0xff]   ;;  %v9498_v49 = vld [vmem:[%s11079_s22 + $0x708] ss:$16 sps:$4 sm:$0xff]  }
 0x11a   : > { %6572 = vmatprep.subr.bf16.mxu0 %v9413_v50  ;;  %7228 = vmatprep.subr.bf16.mxu1 %v9416_v51  ;;  %v9503_v50 = vld [vmem:[%s11079_s22 + $0x724] ss:$16 sps:$4 sm:$0xff]   ;;  %v9506_v51 = vld [vmem:[%s11079_s22 + $0x72c] ss:$16 sps:$4 sm:$0xff]  }
 0x11d   : > { %6573 = vmatpush1.bf16.msra.mxu0 %v9411_v52  ;;  %7229 = vmatpush1.bf16.msra.mxu1 %v9414_v53  ;;  %v9501_v52 = vld [vmem:[%s11079_s22 + $0x720] ss:$16 sps:$4 sm:$0xff]   ;;  %v9504_v53 = vld [vmem:[%s11079_s22 + $0x728] ss:$16 sps:$4 sm:$0xff]  }
 0x11e   : > { %6574 = vmatprep.subr.bf16.mxu0 %v9419_v54  ;;  %7230 = vmatprep.subr.bf16.mxu1 %v9422_v55  ;;  %v9509_v54 = vld [vmem:[%s11079_s22 + $0x744] ss:$16 sps:$4 sm:$0xff]   ;;  %v9512_v55 = vld [vmem:[%s11079_s22 + $0x74c] ss:$16 sps:$4 sm:$0xff]  }
 0x121   : > { %6575 = vmatpush1.bf16.msra.mxu0 %v9417_v56  ;;  %7231 = vmatpush1.bf16.msra.mxu1 %v9420_v57  ;;  %v9507_v56 = vld [vmem:[%s11079_s22 + $0x740] ss:$16 sps:$4 sm:$0xff]   ;;  %v9510_v57 = vld [vmem:[%s11079_s22 + $0x748] ss:$16 sps:$4 sm:$0xff]  }
 0x122   : > { %6576 = vmatprep.subr.bf16.mxu0 %v9425_v58  ;;  %7232 = vmatprep.subr.bf16.mxu1 %v9428_v59  ;;  %v9515_v58 = vld [vmem:[%s11079_s22 + $0x764] ss:$16 sps:$4 sm:$0xff]   ;;  %v9518_v59 = vld [vmem:[%s11079_s22 + $0x76c] ss:$16 sps:$4 sm:$0xff]  }
 0x125   : > { %6577 = vmatpush1.bf16.msra.mxu0 %v9423_v60  ;;  %7233 = vmatpush1.bf16.msra.mxu1 %v9426_v61  ;;  %v9513_v60 = vld [vmem:[%s11079_s22 + $0x760] ss:$16 sps:$4 sm:$0xff]   ;;  %v9516_v61 = vld [vmem:[%s11079_s22 + $0x768] ss:$16 sps:$4 sm:$0xff]  }
 0x126   : > { %6578 = vmatprep.subr.bf16.mxu0 %v9431_v62  ;;  %7234 = vmatprep.subr.bf16.mxu1 %v9434_v63  ;;  %v9521_v62 = vld [vmem:[%s11079_s22 + $0x784] ss:$16 sps:$4 sm:$0xff]   ;;  %v9524_v63 = vld [vmem:[%s11079_s22 + $0x78c] ss:$16 sps:$4 sm:$0xff]  }
 0x129   : > { %6579 = vmatpush1.bf16.msra.mxu0 %v9429_v0  ;;  %7235 = vmatpush1.bf16.msra.mxu1 %v9432_v1  ;;  %v9519_v0 = vld [vmem:[%s11079_s22 + $0x780] ss:$16 sps:$4 sm:$0xff]   ;;  %v9522_v1 = vld [vmem:[%s11079_s22 + $0x788] ss:$16 sps:$4 sm:$0xff]  }
 0x12a   : > { %6580 = vmatprep.subr.bf16.mxu0 %v9437_v2  ;;  %7236 = vmatprep.subr.bf16.mxu1 %v9440_v3  ;;  %v9527_v2 = vld [vmem:[%s11079_s22 + $0x7a4] ss:$16 sps:$4 sm:$0xff]   ;;  %v9530_v3 = vld [vmem:[%s11079_s22 + $0x7ac] ss:$16 sps:$4 sm:$0xff]  }
 0x12d   : > { %6581 = vmatpush1.bf16.msra.mxu0 %v9435_v4  ;;  %7237 = vmatpush1.bf16.msra.mxu1 %v9438_v5  ;;  %v9525_v4 = vld [vmem:[%s11079_s22 + $0x7a0] ss:$16 sps:$4 sm:$0xff]   ;;  %v9528_v5 = vld [vmem:[%s11079_s22 + $0x7a8] ss:$16 sps:$4 sm:$0xff]  }
 0x12e   : > { %6582 = vmatprep.subr.bf16.mxu0 %v9443_v6  ;;  %7238 = vmatprep.subr.bf16.mxu1 %v9446_v7  ;;  %v9533_v6 = vld [vmem:[%s11079_s22 + $0x7c4] ss:$16 sps:$4 sm:$0xff]   ;;  %v9536_v7 = vld [vmem:[%s11079_s22 + $0x7cc] ss:$16 sps:$4 sm:$0xff]  }
 0x131   : > { %6583 = vmatpush1.bf16.msra.mxu0 %v9441_v8  ;;  %7239 = vmatpush1.bf16.msra.mxu1 %v9444_v9  ;;  %v9531_v8 = vld [vmem:[%s11079_s22 + $0x7c0] ss:$16 sps:$4 sm:$0xff]   ;;  %v9534_v9 = vld [vmem:[%s11079_s22 + $0x7c8] ss:$16 sps:$4 sm:$0xff]  }
 0x132   : > { %6593 = vmatprep.subr.bf16.mxu0 %v9449_v10  ;;  %7249 = vmatprep.subr.bf16.mxu1 %v9452_v12  ;;  %v9539_v10 = vld [vmem:[%s11079_s22 + $0x7e4] ss:$16 sps:$4 sm:$0xff]   ;;  %v9537_v12 = vld [vmem:[%s11079_s22 + $0x7e0] ss:$16 sps:$4 sm:$0xff]  }
 0x134   : > { %6585 = vmatmul.mubr.bf16.vlgmr.msra.gmra.mrb[0].mxu0 %v276_v15  ;;  %7241 = vmatmul.mubr.bf16.vlgmr.msra.gmra.mrb[0].mxu1 %v276_v15  ;;  %v9545_v15 = vld [vmem:[%s11079_s22 + $0x804] ss:$16 sps:$4 sm:$0xff]  }
 0x135   : > { %6594 = vmatpush1.bf16.msra.mxu0 %v9447_v13  ;;  %7250 = vmatpush1.bf16.msra.mxu1 %v9450_v14  ;;  %v9540_v13 = vld [vmem:[%s11079_s22 + $0x7e8] ss:$16 sps:$4 sm:$0xff]   ;;  %v246_v14 = vld [vmem:[#allocation2 + $0x30] sm:$0xff] }
 0x136   : > { %6595 = vmatprep.subr.bf16.mxu0 %v9455_v17  ;;  %7251 = vmatprep.subr.bf16.mxu1 %v9458_v18  ;;  %v278_v17 = vpack.c.bf16 %v246_v14, %v246_v14  ;;  %v249_v18 = vld [vmem:[#allocation2 + $0x48] sm:$0xff]  ;;  %v9635_v14 = vld [vmem:[%s11079_s22 + $0x9e4] ss:$16 sps:$4 sm:$0xff]  }
 0x137   : > { %6625 = vmatprep.mubr.bf16.mxu0 %v279_v19  ;;  %7281 = vmatprep.mubr.bf16.mxu1 %v279_v19  ;;  %v9543_v19 = vld [vmem:[%s11079_s22 + $0x800] ss:$16 sps:$4 sm:$0xff]  }
 0x139   : > { %6596 = vmatpush1.bf16.msra.mxu0 %v9453_v20  ;;  %7252 = vmatpush1.bf16.msra.mxu1 %v9456_v21  ;;  %v9546_v20 = vld [vmem:[%s11079_s22 + $0x808] ss:$16 sps:$4 sm:$0xff]   ;;  %v9551_v21 = vld [vmem:[%s11079_s22 + $0x824] ss:$16 sps:$4 sm:$0xff]  }
 0x13a   : > { %6597 = vmatprep.subr.bf16.mxu0 %v9461_v22  ;;  %7253 = vmatprep.subr.bf16.mxu1 %v9464_v23  ;;  %v9554_v22 = vld [vmem:[%s11079_s22 + $0x82c] ss:$16 sps:$4 sm:$0xff]   ;;  %v281_v23 = vpack.c.bf16 %v249_v18, %v249_v18  ;;  %v9641_v18 = vld [vmem:[%s11079_s22 + $0xa04] ss:$16 sps:$4 sm:$0xff]  }
 0x13d   : > { %6598 = vmatpush1.bf16.msra.mxu0 %v9459_v24  ;;  %7254 = vmatpush1.bf16.msra.mxu1 %v9462_v25  ;;  %v9549_v24 = vld [vmem:[%s11079_s22 + $0x820] ss:$16 sps:$4 sm:$0xff]   ;;  %v9552_v25 = vld [vmem:[%s11079_s22 + $0x828] ss:$16 sps:$4 sm:$0xff]  }
 0x13e   : > { %6599 = vmatprep.subr.bf16.mxu0 %v9467_v26  ;;  %7255 = vmatprep.subr.bf16.mxu1 %v9470_v27  ;;  %v9557_v26 = vld [vmem:[%s11079_s22 + $0x844] ss:$16 sps:$4 sm:$0xff]   ;;  %v9560_v27 = vld [vmem:[%s11079_s22 + $0x84c] ss:$16 sps:$4 sm:$0xff]  }
 0x141   : > { %6600 = vmatpush1.bf16.msra.mxu0 %v9465_v28  ;;  %7256 = vmatpush1.bf16.msra.mxu1 %v9468_v29  ;;  %v9555_v28 = vld [vmem:[%s11079_s22 + $0x840] ss:$16 sps:$4 sm:$0xff]   ;;  %v9558_v29 = vld [vmem:[%s11079_s22 + $0x848] ss:$16 sps:$4 sm:$0xff]  }
 0x142   : > { %6601 = vmatprep.subr.bf16.mxu0 %v9473_v30  ;;  %7257 = vmatprep.subr.bf16.mxu1 %v9476_v31  ;;  %v9563_v30 = vld [vmem:[%s11079_s22 + $0x864] ss:$16 sps:$4 sm:$0xff]   ;;  %v9566_v31 = vld [vmem:[%s11079_s22 + $0x86c] ss:$16 sps:$4 sm:$0xff]  }
 0x145   : > { %6602 = vmatpush1.bf16.msra.mxu0 %v9471_v32  ;;  %7258 = vmatpush1.bf16.msra.mxu1 %v9474_v33  ;;  %v9561_v32 = vld [vmem:[%s11079_s22 + $0x860] ss:$16 sps:$4 sm:$0xff]   ;;  %v9564_v33 = vld [vmem:[%s11079_s22 + $0x868] ss:$16 sps:$4 sm:$0xff]  }
 0x146   : > { %6603 = vmatprep.subr.bf16.mxu0 %v9479_v34  ;;  %7259 = vmatprep.subr.bf16.mxu1 %v9482_v35  ;;  %v9569_v34 = vld [vmem:[%s11079_s22 + $0x884] ss:$16 sps:$4 sm:$0xff]   ;;  %v9572_v35 = vld [vmem:[%s11079_s22 + $0x88c] ss:$16 sps:$4 sm:$0xff]  }
 0x149   : > { %6604 = vmatpush1.bf16.msra.mxu0 %v9477_v36  ;;  %7260 = vmatpush1.bf16.msra.mxu1 %v9480_v37  ;;  %v9567_v36 = vld [vmem:[%s11079_s22 + $0x880] ss:$16 sps:$4 sm:$0xff]   ;;  %v9570_v37 = vld [vmem:[%s11079_s22 + $0x888] ss:$16 sps:$4 sm:$0xff]  }
 0x14a   : > { %6605 = vmatprep.subr.bf16.mxu0 %v9485_v38  ;;  %7261 = vmatprep.subr.bf16.mxu1 %v9488_v39  ;;  %v9575_v38 = vld [vmem:[%s11079_s22 + $0x8a4] ss:$16 sps:$4 sm:$0xff]   ;;  %v9578_v39 = vld [vmem:[%s11079_s22 + $0x8ac] ss:$16 sps:$4 sm:$0xff]  }
 0x14d   : > { %6606 = vmatpush1.bf16.msra.mxu0 %v9483_v40  ;;  %7262 = vmatpush1.bf16.msra.mxu1 %v9486_v41  ;;  %v9573_v40 = vld [vmem:[%s11079_s22 + $0x8a0] ss:$16 sps:$4 sm:$0xff]   ;;  %v9576_v41 = vld [vmem:[%s11079_s22 + $0x8a8] ss:$16 sps:$4 sm:$0xff]  }
 0x14e   : > { %6607 = vmatprep.subr.bf16.mxu0 %v9491_v42  ;;  %7263 = vmatprep.subr.bf16.mxu1 %v9494_v43  ;;  %v9581_v42 = vld [vmem:[%s11079_s22 + $0x8c4] ss:$16 sps:$4 sm:$0xff]   ;;  %v9584_v43 = vld [vmem:[%s11079_s22 + $0x8cc] ss:$16 sps:$4 sm:$0xff]  }
 0x151   : > { %6608 = vmatpush1.bf16.msra.mxu0 %v9489_v44  ;;  %7264 = vmatpush1.bf16.msra.mxu1 %v9492_v45  ;;  %v9579_v44 = vld [vmem:[%s11079_s22 + $0x8c0] ss:$16 sps:$4 sm:$0xff]   ;;  %v9582_v45 = vld [vmem:[%s11079_s22 + $0x8c8] ss:$16 sps:$4 sm:$0xff]  }
 0x152   : > { %6609 = vmatprep.subr.bf16.mxu0 %v9497_v46  ;;  %7265 = vmatprep.subr.bf16.mxu1 %v9500_v47  ;;  %v9587_v46 = vld [vmem:[%s11079_s22 + $0x8e4] ss:$16 sps:$4 sm:$0xff]   ;;  %v9590_v47 = vld [vmem:[%s11079_s22 + $0x8ec] ss:$16 sps:$4 sm:$0xff]  }
 0x155   : > { %6610 = vmatpush1.bf16.msra.mxu0 %v9495_v48  ;;  %7266 = vmatpush1.bf16.msra.mxu1 %v9498_v49  ;;  %v9585_v48 = vld [vmem:[%s11079_s22 + $0x8e0] ss:$16 sps:$4 sm:$0xff]   ;;  %v9588_v49 = vld [vmem:[%s11079_s22 + $0x8e8] ss:$16 sps:$4 sm:$0xff]  }
 0x156   : > { %6611 = vmatprep.subr.bf16.mxu0 %v9503_v50  ;;  %7267 = vmatprep.subr.bf16.mxu1 %v9506_v51  ;;  %v9593_v50 = vld [vmem:[%s11079_s22 + $0x904] ss:$16 sps:$4 sm:$0xff]   ;;  %v9596_v51 = vld [vmem:[%s11079_s22 + $0x90c] ss:$16 sps:$4 sm:$0xff]  }
 0x159   : > { %6612 = vmatpush1.bf16.msra.mxu0 %v9501_v52  ;;  %7268 = vmatpush1.bf16.msra.mxu1 %v9504_v53  ;;  %v9591_v52 = vld [vmem:[%s11079_s22 + $0x900] ss:$16 sps:$4 sm:$0xff]   ;;  %v9594_v53 = vld [vmem:[%s11079_s22 + $0x908] ss:$16 sps:$4 sm:$0xff]  }
 0x15a   : > { %6613 = vmatprep.subr.bf16.mxu0 %v9509_v54  ;;  %7269 = vmatprep.subr.bf16.mxu1 %v9512_v55  ;;  %v9599_v54 = vld [vmem:[%s11079_s22 + $0x924] ss:$16 sps:$4 sm:$0xff]   ;;  %v9602_v55 = vld [vmem:[%s11079_s22 + $0x92c] ss:$16 sps:$4 sm:$0xff]  }
 0x15d   : > { %6614 = vmatpush1.bf16.msra.mxu0 %v9507_v56  ;;  %7270 = vmatpush1.bf16.msra.mxu1 %v9510_v57  ;;  %v9597_v56 = vld [vmem:[%s11079_s22 + $0x920] ss:$16 sps:$4 sm:$0xff]   ;;  %v9600_v57 = vld [vmem:[%s11079_s22 + $0x928] ss:$16 sps:$4 sm:$0xff]  }
 0x15e   : > { %6615 = vmatprep.subr.bf16.mxu0 %v9515_v58  ;;  %7271 = vmatprep.subr.bf16.mxu1 %v9518_v59  ;;  %v9605_v58 = vld [vmem:[%s11079_s22 + $0x944] ss:$16 sps:$4 sm:$0xff]   ;;  %v9608_v59 = vld [vmem:[%s11079_s22 + $0x94c] ss:$16 sps:$4 sm:$0xff]  }
 0x161   : > { %6616 = vmatpush1.bf16.msra.mxu0 %v9513_v60  ;;  %7272 = vmatpush1.bf16.msra.mxu1 %v9516_v61  ;;  %v9603_v60 = vld [vmem:[%s11079_s22 + $0x940] ss:$16 sps:$4 sm:$0xff]   ;;  %v9606_v61 = vld [vmem:[%s11079_s22 + $0x948] ss:$16 sps:$4 sm:$0xff]  }
 0x162   : > { %6617 = vmatprep.subr.bf16.mxu0 %v9521_v62  ;;  %7273 = vmatprep.subr.bf16.mxu1 %v9524_v63  ;;  %v9611_v62 = vld [vmem:[%s11079_s22 + $0x964] ss:$16 sps:$4 sm:$0xff]   ;;  %v9614_v63 = vld [vmem:[%s11079_s22 + $0x96c] ss:$16 sps:$4 sm:$0xff]  }
 0x165   : > { %6618 = vmatpush1.bf16.msra.mxu0 %v9519_v0  ;;  %7274 = vmatpush1.bf16.msra.mxu1 %v9522_v1  ;;  %v9609_v0 = vld [vmem:[%s11079_s22 + $0x960] ss:$16 sps:$4 sm:$0xff]   ;;  %v9612_v1 = vld [vmem:[%s11079_s22 + $0x968] ss:$16 sps:$4 sm:$0xff]  }
 0x166   : > { %6619 = vmatprep.subr.bf16.mxu0 %v9527_v2  ;;  %7275 = vmatprep.subr.bf16.mxu1 %v9530_v3  ;;  %v9617_v2 = vld [vmem:[%s11079_s22 + $0x984] ss:$16 sps:$4 sm:$0xff]   ;;  %v9620_v3 = vld [vmem:[%s11079_s22 + $0x98c] ss:$16 sps:$4 sm:$0xff]  }
 0x169   : > { %6620 = vmatpush1.bf16.msra.mxu0 %v9525_v4  ;;  %7276 = vmatpush1.bf16.msra.mxu1 %v9528_v5  ;;  %v9615_v4 = vld [vmem:[%s11079_s22 + $0x980] ss:$16 sps:$4 sm:$0xff]   ;;  %v9618_v5 = vld [vmem:[%s11079_s22 + $0x988] ss:$16 sps:$4 sm:$0xff]  }
 0x16a   : > { %6621 = vmatprep.subr.bf16.mxu0 %v9533_v6  ;;  %7277 = vmatprep.subr.bf16.mxu1 %v9536_v7  ;;  %v9623_v6 = vld [vmem:[%s11079_s22 + $0x9a4] ss:$16 sps:$4 sm:$0xff]   ;;  %v9626_v7 = vld [vmem:[%s11079_s22 + $0x9ac] ss:$16 sps:$4 sm:$0xff]  }
 0x16d   : > { %6622 = vmatpush1.bf16.msra.mxu0 %v9531_v8  ;;  %7278 = vmatpush1.bf16.msra.mxu1 %v9534_v9  ;;  %v9621_v8 = vld [vmem:[%s11079_s22 + $0x9a0] ss:$16 sps:$4 sm:$0xff]   ;;  %v9624_v9 = vld [vmem:[%s11079_s22 + $0x9a8] ss:$16 sps:$4 sm:$0xff]  }
 0x16e   : > { %6623 = vmatprep.subr.bf16.mxu0 %v9539_v10  ;;  %7279 = vmatprep.subr.bf16.mxu1 %v9542_v11  ;;  %v9629_v10 = vld [vmem:[%s11079_s22 + $0x9c4] ss:$16 sps:$4 sm:$0xff]   ;;  %v9632_v11 = vld [vmem:[%s11079_s22 + $0x9cc] ss:$16 sps:$4 sm:$0xff]  }
 0x171   : > { %6624 = vmatpush1.bf16.msra.mxu0 %v9537_v12  ;;  %7280 = vmatpush1.bf16.msra.mxu1 %v9540_v13  ;;  %v9627_v12 = vld [vmem:[%s11079_s22 + $0x9c0] ss:$16 sps:$4 sm:$0xff]   ;;  %v9630_v13 = vld [vmem:[%s11079_s22 + $0x9c8] ss:$16 sps:$4 sm:$0xff]  }
 0x172   : > { %6634 = vmatprep.subr.bf16.mxu0 %v9545_v15  ;;  %7290 = vmatprep.subr.bf16.mxu1 %v9548_v16  ;;  %v9638_v15 = vld [vmem:[%s11079_s22 + $0x9ec] ss:$16 sps:$4 sm:$0xff]   ;;  %v9633_v16 = vld [vmem:[%s11079_s22 + $0x9e0] ss:$16 sps:$4 sm:$0xff]  }
 0x174   : > { %6626 = vmatmul.mubr.bf16.vlgmr.msra.gmra.mrb[0].mxu0 %v278_v17  ;;  %7282 = vmatmul.mubr.bf16.vlgmr.msra.gmra.mrb[0].mxu1 %v278_v17  ;;  %v9636_v17 = vld [vmem:[%s11079_s22 + $0x9e8] ss:$16 sps:$4 sm:$0xff]  }
 0x175   : > { %6635 = vmatpush1.bf16.msra.mxu0 %v9543_v19  ;;  %7291 = vmatpush1.bf16.msra.mxu1 %v9546_v20  ;;  %v248_v19 = vld [vmem:[#allocation2 + $0x40] sm:$0xff]  ;;  %v9644_v20 = vld [vmem:[%s11079_s22 + $0xa0c] ss:$16 sps:$4 sm:$0xff]  }
 0x176   : > { %6636 = vmatprep.subr.bf16.mxu0 %v9551_v21  ;;  %7292 = vmatprep.subr.bf16.mxu1 %v9554_v22  ;;  %v251_v21 = vld [vmem:[#allocation2 + $0x58] sm:$0xff]  ;;  %v280_v22 = vpack.c.bf16 %v248_v19, %v248_v19 }
 0x177   : > { %6666 = vmatprep.mubr.bf16.mxu0 %v281_v23  ;;  %7322 = vmatprep.mubr.bf16.mxu1 %v281_v23  ;;  %v9639_v23 = vld [vmem:[%s11079_s22 + $0xa00] ss:$16 sps:$4 sm:$0xff]   ;;  %v9734_v19 = vld [vmem:[%s11079_s22 + $0xbec] ss:$16 sps:$4 sm:$0xff]  }
 0x179   : > { %6637 = vmatpush1.bf16.msra.mxu0 %v9549_v24  ;;  %7293 = vmatpush1.bf16.msra.mxu1 %v9552_v25  ;;  %v9642_v24 = vld [vmem:[%s11079_s22 + $0xa08] ss:$16 sps:$4 sm:$0xff]   ;;  %v9647_v25 = vld [vmem:[%s11079_s22 + $0xa24] ss:$16 sps:$4 sm:$0xff]  }
 0x17a   : > { %6638 = vmatprep.subr.bf16.mxu0 %v9557_v26  ;;  %7294 = vmatprep.subr.bf16.mxu1 %v9560_v27  ;;  %v9650_v26 = vld [vmem:[%s11079_s22 + $0xa2c] ss:$16 sps:$4 sm:$0xff]   ;;  %v283_v27 = vpack.c.bf16 %v251_v21, %v251_v21  ;;  %v9732_v21 = vld [vmem:[%s11079_s22 + $0xbe8] ss:$16 sps:$4 sm:$0xff]  }
 0x17d   : > { %6639 = vmatpush1.bf16.msra.mxu0 %v9555_v28  ;;  %7295 = vmatpush1.bf16.msra.mxu1 %v9558_v29  ;;  %v9645_v28 = vld [vmem:[%s11079_s22 + $0xa20] ss:$16 sps:$4 sm:$0xff]   ;;  %v9648_v29 = vld [vmem:[%s11079_s22 + $0xa28] ss:$16 sps:$4 sm:$0xff]  }
 0x17e   : > { %6640 = vmatprep.subr.bf16.mxu0 %v9563_v30  ;;  %7296 = vmatprep.subr.bf16.mxu1 %v9566_v31  ;;  %v9653_v30 = vld [vmem:[%s11079_s22 + $0xa44] ss:$16 sps:$4 sm:$0xff]   ;;  %v9656_v31 = vld [vmem:[%s11079_s22 + $0xa4c] ss:$16 sps:$4 sm:$0xff]  }
 0x181   : > { %6641 = vmatpush1.bf16.msra.mxu0 %v9561_v32  ;;  %7297 = vmatpush1.bf16.msra.mxu1 %v9564_v33  ;;  %v9651_v32 = vld [vmem:[%s11079_s22 + $0xa40] ss:$16 sps:$4 sm:$0xff]   ;;  %v9654_v33 = vld [vmem:[%s11079_s22 + $0xa48] ss:$16 sps:$4 sm:$0xff]  }
 0x182   : > { %6642 = vmatprep.subr.bf16.mxu0 %v9569_v34  ;;  %7298 = vmatprep.subr.bf16.mxu1 %v9572_v35  ;;  %v9659_v34 = vld [vmem:[%s11079_s22 + $0xa64] ss:$16 sps:$4 sm:$0xff]   ;;  %v9662_v35 = vld [vmem:[%s11079_s22 + $0xa6c] ss:$16 sps:$4 sm:$0xff]  }
 0x185   : > { %6643 = vmatpush1.bf16.msra.mxu0 %v9567_v36  ;;  %7299 = vmatpush1.bf16.msra.mxu1 %v9570_v37  ;;  %v9657_v36 = vld [vmem:[%s11079_s22 + $0xa60] ss:$16 sps:$4 sm:$0xff]   ;;  %v9660_v37 = vld [vmem:[%s11079_s22 + $0xa68] ss:$16 sps:$4 sm:$0xff]  }
 0x186   : > { %6644 = vmatprep.subr.bf16.mxu0 %v9575_v38  ;;  %7300 = vmatprep.subr.bf16.mxu1 %v9578_v39  ;;  %v9665_v38 = vld [vmem:[%s11079_s22 + $0xa84] ss:$16 sps:$4 sm:$0xff]   ;;  %v9668_v39 = vld [vmem:[%s11079_s22 + $0xa8c] ss:$16 sps:$4 sm:$0xff]  }
 0x189   : > { %6645 = vmatpush1.bf16.msra.mxu0 %v9573_v40  ;;  %7301 = vmatpush1.bf16.msra.mxu1 %v9576_v41  ;;  %v9663_v40 = vld [vmem:[%s11079_s22 + $0xa80] ss:$16 sps:$4 sm:$0xff]   ;;  %v9666_v41 = vld [vmem:[%s11079_s22 + $0xa88] ss:$16 sps:$4 sm:$0xff]  }
 0x18a   : > { %6646 = vmatprep.subr.bf16.mxu0 %v9581_v42  ;;  %7302 = vmatprep.subr.bf16.mxu1 %v9584_v43  ;;  %v9671_v42 = vld [vmem:[%s11079_s22 + $0xaa4] ss:$16 sps:$4 sm:$0xff]   ;;  %v9674_v43 = vld [vmem:[%s11079_s22 + $0xaac] ss:$16 sps:$4 sm:$0xff]  }
 0x18d   : > { %6647 = vmatpush1.bf16.msra.mxu0 %v9579_v44  ;;  %7303 = vmatpush1.bf16.msra.mxu1 %v9582_v45  ;;  %v9669_v44 = vld [vmem:[%s11079_s22 + $0xaa0] ss:$16 sps:$4 sm:$0xff]   ;;  %v9672_v45 = vld [vmem:[%s11079_s22 + $0xaa8] ss:$16 sps:$4 sm:$0xff]  }
 0x18e   : > { %6648 = vmatprep.subr.bf16.mxu0 %v9587_v46  ;;  %7304 = vmatprep.subr.bf16.mxu1 %v9590_v47  ;;  %v9677_v46 = vld [vmem:[%s11079_s22 + $0xac4] ss:$16 sps:$4 sm:$0xff]   ;;  %v9680_v47 = vld [vmem:[%s11079_s22 + $0xacc] ss:$16 sps:$4 sm:$0xff]  }
 0x191   : > { %6649 = vmatpush1.bf16.msra.mxu0 %v9585_v48  ;;  %7305 = vmatpush1.bf16.msra.mxu1 %v9588_v49  ;;  %v9675_v48 = vld [vmem:[%s11079_s22 + $0xac0] ss:$16 sps:$4 sm:$0xff]   ;;  %v9678_v49 = vld [vmem:[%s11079_s22 + $0xac8] ss:$16 sps:$4 sm:$0xff]  }
 0x192   : > { %6650 = vmatprep.subr.bf16.mxu0 %v9593_v50  ;;  %7306 = vmatprep.subr.bf16.mxu1 %v9596_v51  ;;  %v9683_v50 = vld [vmem:[%s11079_s22 + $0xae4] ss:$16 sps:$4 sm:$0xff]   ;;  %v9686_v51 = vld [vmem:[%s11079_s22 + $0xaec] ss:$16 sps:$4 sm:$0xff]  }
 0x195   : > { %6651 = vmatpush1.bf16.msra.mxu0 %v9591_v52  ;;  %7307 = vmatpush1.bf16.msra.mxu1 %v9594_v53  ;;  %v9681_v52 = vld [vmem:[%s11079_s22 + $0xae0] ss:$16 sps:$4 sm:$0xff]   ;;  %v9684_v53 = vld [vmem:[%s11079_s22 + $0xae8] ss:$16 sps:$4 sm:$0xff]  }
 0x196   : > { %6652 = vmatprep.subr.bf16.mxu0 %v9599_v54  ;;  %7308 = vmatprep.subr.bf16.mxu1 %v9602_v55  ;;  %v9689_v54 = vld [vmem:[%s11079_s22 + $0xb04] ss:$16 sps:$4 sm:$0xff]   ;;  %v9692_v55 = vld [vmem:[%s11079_s22 + $0xb0c] ss:$16 sps:$4 sm:$0xff]  }
 0x199   : > { %6653 = vmatpush1.bf16.msra.mxu0 %v9597_v56  ;;  %7309 = vmatpush1.bf16.msra.mxu1 %v9600_v57  ;;  %v9687_v56 = vld [vmem:[%s11079_s22 + $0xb00] ss:$16 sps:$4 sm:$0xff]   ;;  %v9690_v57 = vld [vmem:[%s11079_s22 + $0xb08] ss:$16 sps:$4 sm:$0xff]  }
 0x19a   : > { %6654 = vmatprep.subr.bf16.mxu0 %v9605_v58  ;;  %7310 = vmatprep.subr.bf16.mxu1 %v9608_v59  ;;  %v9695_v58 = vld [vmem:[%s11079_s22 + $0xb24] ss:$16 sps:$4 sm:$0xff]   ;;  %v9698_v59 = vld [vmem:[%s11079_s22 + $0xb2c] ss:$16 sps:$4 sm:$0xff]  }
 0x19d   : > { %6655 = vmatpush1.bf16.msra.mxu0 %v9603_v60  ;;  %7311 = vmatpush1.bf16.msra.mxu1 %v9606_v61  ;;  %v9693_v60 = vld [vmem:[%s11079_s22 + $0xb20] ss:$16 sps:$4 sm:$0xff]   ;;  %v9696_v61 = vld [vmem:[%s11079_s22 + $0xb28] ss:$16 sps:$4 sm:$0xff]  }
 0x19e   : > { %6656 = vmatprep.subr.bf16.mxu0 %v9611_v62  ;;  %7312 = vmatprep.subr.bf16.mxu1 %v9614_v63  ;;  %v9701_v62 = vld [vmem:[%s11079_s22 + $0xb44] ss:$16 sps:$4 sm:$0xff]   ;;  %v9704_v63 = vld [vmem:[%s11079_s22 + $0xb4c] ss:$16 sps:$4 sm:$0xff]  }
 0x1a1   : > { %6657 = vmatpush1.bf16.msra.mxu0 %v9609_v0  ;;  %7313 = vmatpush1.bf16.msra.mxu1 %v9612_v1  ;;  %v9699_v0 = vld [vmem:[%s11079_s22 + $0xb40] ss:$16 sps:$4 sm:$0xff]   ;;  %v9702_v1 = vld [vmem:[%s11079_s22 + $0xb48] ss:$16 sps:$4 sm:$0xff]  }
 0x1a2   : > { %6658 = vmatprep.subr.bf16.mxu0 %v9617_v2  ;;  %7314 = vmatprep.subr.bf16.mxu1 %v9620_v3  ;;  %v9707_v2 = vld [vmem:[%s11079_s22 + $0xb64] ss:$16 sps:$4 sm:$0xff]   ;;  %v9710_v3 = vld [vmem:[%s11079_s22 + $0xb6c] ss:$16 sps:$4 sm:$0xff]  }
 0x1a5   : > { %6659 = vmatpush1.bf16.msra.mxu0 %v9615_v4  ;;  %7315 = vmatpush1.bf16.msra.mxu1 %v9618_v5  ;;  %v9705_v4 = vld [vmem:[%s11079_s22 + $0xb60] ss:$16 sps:$4 sm:$0xff]   ;;  %v9708_v5 = vld [vmem:[%s11079_s22 + $0xb68] ss:$16 sps:$4 sm:$0xff]  }
 0x1a6   : > { %6660 = vmatprep.subr.bf16.mxu0 %v9623_v6  ;;  %7316 = vmatprep.subr.bf16.mxu1 %v9626_v7  ;;  %v9713_v6 = vld [vmem:[%s11079_s22 + $0xb84] ss:$16 sps:$4 sm:$0xff]   ;;  %v9716_v7 = vld [vmem:[%s11079_s22 + $0xb8c] ss:$16 sps:$4 sm:$0xff]  }
 0x1a9   : > { %6661 = vmatpush1.bf16.msra.mxu0 %v9621_v8  ;;  %7317 = vmatpush1.bf16.msra.mxu1 %v9624_v9  ;;  %v9711_v8 = vld [vmem:[%s11079_s22 + $0xb80] ss:$16 sps:$4 sm:$0xff]   ;;  %v9714_v9 = vld [vmem:[%s11079_s22 + $0xb88] ss:$16 sps:$4 sm:$0xff]  }
 0x1aa   : > { %6662 = vmatprep.subr.bf16.mxu0 %v9629_v10  ;;  %7318 = vmatprep.subr.bf16.mxu1 %v9632_v11  ;;  %v9719_v10 = vld [vmem:[%s11079_s22 + $0xba4] ss:$16 sps:$4 sm:$0xff]   ;;  %v9722_v11 = vld [vmem:[%s11079_s22 + $0xbac] ss:$16 sps:$4 sm:$0xff]  }
 0x1ad   : > { %6663 = vmatpush1.bf16.msra.mxu0 %v9627_v12  ;;  %7319 = vmatpush1.bf16.msra.mxu1 %v9630_v13  ;;  %v9717_v12 = vld [vmem:[%s11079_s22 + $0xba0] ss:$16 sps:$4 sm:$0xff]   ;;  %v9720_v13 = vld [vmem:[%s11079_s22 + $0xba8] ss:$16 sps:$4 sm:$0xff]  }
 0x1ae   : > { %6664 = vmatprep.subr.bf16.mxu0 %v9635_v14  ;;  %7320 = vmatprep.subr.bf16.mxu1 %v9638_v15  ;;  %v9725_v14 = vld [vmem:[%s11079_s22 + $0xbc4] ss:$16 sps:$4 sm:$0xff]   ;;  %v9728_v15 = vld [vmem:[%s11079_s22 + $0xbcc] ss:$16 sps:$4 sm:$0xff]  }
 0x1b1   : > { %6665 = vmatpush1.bf16.msra.mxu0 %v9633_v16  ;;  %7321 = vmatpush1.bf16.msra.mxu1 %v9636_v17  ;;  %v9723_v16 = vld [vmem:[%s11079_s22 + $0xbc0] ss:$16 sps:$4 sm:$0xff]   ;;  %v9726_v17 = vld [vmem:[%s11079_s22 + $0xbc8] ss:$16 sps:$4 sm:$0xff]  }
 0x1b2   : > { %6675 = vmatprep.subr.bf16.mxu0 %v9641_v18  ;;  %7331 = vmatprep.subr.bf16.mxu1 %v9644_v20  ;;  %v9731_v18 = vld [vmem:[%s11079_s22 + $0xbe4] ss:$16 sps:$4 sm:$0xff]   ;;  %v9729_v20 = vld [vmem:[%s11079_s22 + $0xbe0] ss:$16 sps:$4 sm:$0xff]  }
 0x1b4   : > { %6667 = vmatmul.mubr.bf16.vlgmr.msra.gmra.mrb[0].mxu0 %v280_v22  ;;  %7323 = vmatmul.mubr.bf16.vlgmr.msra.gmra.mrb[0].mxu1 %v280_v22  ;;  %v9737_v22 = vld [vmem:[%s11079_s22 + $0xc04] ss:$16 sps:$4 sm:$0xff]  }
 0x1b5   : > { %6676 = vmatpush1.bf16.msra.mxu0 %v9639_v23  ;;  %7332 = vmatpush1.bf16.msra.mxu1 %v9642_v24  ;;  %v250_v23 = vld [vmem:[#allocation2 + $0x50] sm:$0xff]  ;;  %v9740_v24 = vld [vmem:[%s11079_s22 + $0xc0c] ss:$16 sps:$4 sm:$0xff]  }
 0x1b6   : > { %6677 = vmatprep.subr.bf16.mxu0 %v9647_v25  ;;  %7333 = vmatprep.subr.bf16.mxu1 %v9650_v26  ;;  %v253_v25 = vld [vmem:[#allocation2 + $0x68] sm:$0xff]  ;;  %v282_v26 = vpack.c.bf16 %v250_v23, %v250_v23 }
 0x1b7   : > { %6707 = vmatprep.mubr.bf16.mxu0 %v283_v27  ;;  %7363 = vmatprep.mubr.bf16.mxu1 %v283_v27  ;;  %v9735_v27 = vld [vmem:[%s11079_s22 + $0xc00] ss:$16 sps:$4 sm:$0xff]   ;;  %v9830_v23 = vld [vmem:[%s11079_s22 + $0xdec] ss:$16 sps:$4 sm:$0xff]  }
 0x1b9   : > { %6678 = vmatpush1.bf16.msra.mxu0 %v9645_v28  ;;  %7334 = vmatpush1.bf16.msra.mxu1 %v9648_v29  ;;  %v9738_v28 = vld [vmem:[%s11079_s22 + $0xc08] ss:$16 sps:$4 sm:$0xff]   ;;  %v9743_v29 = vld [vmem:[%s11079_s22 + $0xc24] ss:$16 sps:$4 sm:$0xff]  }
 0x1ba   : > { %6679 = vmatprep.subr.bf16.mxu0 %v9653_v30  ;;  %7335 = vmatprep.subr.bf16.mxu1 %v9656_v31  ;;  %v9746_v30 = vld [vmem:[%s11079_s22 + $0xc2c] ss:$16 sps:$4 sm:$0xff]   ;;  %v285_v31 = vpack.c.bf16 %v253_v25, %v253_v25  ;;  %v9828_v25 = vld [vmem:[%s11079_s22 + $0xde8] ss:$16 sps:$4 sm:$0xff]  }
 0x1bd   : > { %6680 = vmatpush1.bf16.msra.mxu0 %v9651_v32  ;;  %7336 = vmatpush1.bf16.msra.mxu1 %v9654_v33  ;;  %v9741_v32 = vld [vmem:[%s11079_s22 + $0xc20] ss:$16 sps:$4 sm:$0xff]   ;;  %v9744_v33 = vld [vmem:[%s11079_s22 + $0xc28] ss:$16 sps:$4 sm:$0xff]  }
 0x1be   : > { %6681 = vmatprep.subr.bf16.mxu0 %v9659_v34  ;;  %7337 = vmatprep.subr.bf16.mxu1 %v9662_v35  ;;  %v9749_v34 = vld [vmem:[%s11079_s22 + $0xc44] ss:$16 sps:$4 sm:$0xff]   ;;  %v9752_v35 = vld [vmem:[%s11079_s22 + $0xc4c] ss:$16 sps:$4 sm:$0xff]  }
 0x1c1   : > { %6682 = vmatpush1.bf16.msra.mxu0 %v9657_v36  ;;  %7338 = vmatpush1.bf16.msra.mxu1 %v9660_v37  ;;  %v9747_v36 = vld [vmem:[%s11079_s22 + $0xc40] ss:$16 sps:$4 sm:$0xff]   ;;  %v9750_v37 = vld [vmem:[%s11079_s22 + $0xc48] ss:$16 sps:$4 sm:$0xff]  }
 0x1c2   : > { %6683 = vmatprep.subr.bf16.mxu0 %v9665_v38  ;;  %7339 = vmatprep.subr.bf16.mxu1 %v9668_v39  ;;  %v9755_v38 = vld [vmem:[%s11079_s22 + $0xc64] ss:$16 sps:$4 sm:$0xff]   ;;  %v9758_v39 = vld [vmem:[%s11079_s22 + $0xc6c] ss:$16 sps:$4 sm:$0xff]  }
 0x1c5   : > { %6684 = vmatpush1.bf16.msra.mxu0 %v9663_v40  ;;  %7340 = vmatpush1.bf16.msra.mxu1 %v9666_v41  ;;  %v9753_v40 = vld [vmem:[%s11079_s22 + $0xc60] ss:$16 sps:$4 sm:$0xff]   ;;  %v9756_v41 = vld [vmem:[%s11079_s22 + $0xc68] ss:$16 sps:$4 sm:$0xff]  }
 0x1c6   : > { %6685 = vmatprep.subr.bf16.mxu0 %v9671_v42  ;;  %7341 = vmatprep.subr.bf16.mxu1 %v9674_v43  ;;  %v9761_v42 = vld [vmem:[%s11079_s22 + $0xc84] ss:$16 sps:$4 sm:$0xff]   ;;  %v9764_v43 = vld [vmem:[%s11079_s22 + $0xc8c] ss:$16 sps:$4 sm:$0xff]  }
 0x1c9   : > { %6686 = vmatpush1.bf16.msra.mxu0 %v9669_v44  ;;  %7342 = vmatpush1.bf16.msra.mxu1 %v9672_v45  ;;  %v9759_v44 = vld [vmem:[%s11079_s22 + $0xc80] ss:$16 sps:$4 sm:$0xff]   ;;  %v9762_v45 = vld [vmem:[%s11079_s22 + $0xc88] ss:$16 sps:$4 sm:$0xff]  }
 0x1ca   : > { %6687 = vmatprep.subr.bf16.mxu0 %v9677_v46  ;;  %7343 = vmatprep.subr.bf16.mxu1 %v9680_v47  ;;  %v9767_v46 = vld [vmem:[%s11079_s22 + $0xca4] ss:$16 sps:$4 sm:$0xff]   ;;  %v9770_v47 = vld [vmem:[%s11079_s22 + $0xcac] ss:$16 sps:$4 sm:$0xff]  }
 0x1cd   : > { %6688 = vmatpush1.bf16.msra.mxu0 %v9675_v48  ;;  %7344 = vmatpush1.bf16.msra.mxu1 %v9678_v49  ;;  %v9765_v48 = vld [vmem:[%s11079_s22 + $0xca0] ss:$16 sps:$4 sm:$0xff]   ;;  %v9768_v49 = vld [vmem:[%s11079_s22 + $0xca8] ss:$16 sps:$4 sm:$0xff]  }
 0x1ce   : > { %6689 = vmatprep.subr.bf16.mxu0 %v9683_v50  ;;  %7345 = vmatprep.subr.bf16.mxu1 %v9686_v51  ;;  %v9773_v50 = vld [vmem:[%s11079_s22 + $0xcc4] ss:$16 sps:$4 sm:$0xff]   ;;  %v9776_v51 = vld [vmem:[%s11079_s22 + $0xccc] ss:$16 sps:$4 sm:$0xff]  }
 0x1d1   : > { %6690 = vmatpush1.bf16.msra.mxu0 %v9681_v52  ;;  %7346 = vmatpush1.bf16.msra.mxu1 %v9684_v53  ;;  %v9771_v52 = vld [vmem:[%s11079_s22 + $0xcc0] ss:$16 sps:$4 sm:$0xff]   ;;  %v9774_v53 = vld [vmem:[%s11079_s22 + $0xcc8] ss:$16 sps:$4 sm:$0xff]  }
 0x1d2   : > { %6691 = vmatprep.subr.bf16.mxu0 %v9689_v54  ;;  %7347 = vmatprep.subr.bf16.mxu1 %v9692_v55  ;;  %v9779_v54 = vld [vmem:[%s11079_s22 + $0xce4] ss:$16 sps:$4 sm:$0xff]   ;;  %v9782_v55 = vld [vmem:[%s11079_s22 + $0xcec] ss:$16 sps:$4 sm:$0xff]  }
 0x1d5   : > { %6692 = vmatpush1.bf16.msra.mxu0 %v9687_v56  ;;  %7348 = vmatpush1.bf16.msra.mxu1 %v9690_v57  ;;  %v9777_v56 = vld [vmem:[%s11079_s22 + $0xce0] ss:$16 sps:$4 sm:$0xff]   ;;  %v9780_v57 = vld [vmem:[%s11079_s22 + $0xce8] ss:$16 sps:$4 sm:$0xff]  }
 0x1d6   : > { %6693 = vmatprep.subr.bf16.mxu0 %v9695_v58  ;;  %7349 = vmatprep.subr.bf16.mxu1 %v9698_v59  ;;  %v9785_v58 = vld [vmem:[%s11079_s22 + $0xd04] ss:$16 sps:$4 sm:$0xff]   ;;  %v9788_v59 = vld [vmem:[%s11079_s22 + $0xd0c] ss:$16 sps:$4 sm:$0xff]  }
 0x1d9   : > { %6694 = vmatpush1.bf16.msra.mxu0 %v9693_v60  ;;  %7350 = vmatpush1.bf16.msra.mxu1 %v9696_v61  ;;  %v9783_v60 = vld [vmem:[%s11079_s22 + $0xd00] ss:$16 sps:$4 sm:$0xff]   ;;  %v9786_v61 = vld [vmem:[%s11079_s22 + $0xd08] ss:$16 sps:$4 sm:$0xff]  }
 0x1da   : > { %6695 = vmatprep.subr.bf16.mxu0 %v9701_v62  ;;  %7351 = vmatprep.subr.bf16.mxu1 %v9704_v63  ;;  %v9791_v62 = vld [vmem:[%s11079_s22 + $0xd24] ss:$16 sps:$4 sm:$0xff]   ;;  %v9794_v63 = vld [vmem:[%s11079_s22 + $0xd2c] ss:$16 sps:$4 sm:$0xff]  }
 0x1dd   : > { %6696 = vmatpush1.bf16.msra.mxu0 %v9699_v0  ;;  %7352 = vmatpush1.bf16.msra.mxu1 %v9702_v1  ;;  %v9789_v0 = vld [vmem:[%s11079_s22 + $0xd20] ss:$16 sps:$4 sm:$0xff]   ;;  %v9792_v1 = vld [vmem:[%s11079_s22 + $0xd28] ss:$16 sps:$4 sm:$0xff]  }
 0x1de   : > { %6697 = vmatprep.subr.bf16.mxu0 %v9707_v2  ;;  %7353 = vmatprep.subr.bf16.mxu1 %v9710_v3  ;;  %v9797_v2 = vld [vmem:[%s11079_s22 + $0xd44] ss:$16 sps:$4 sm:$0xff]   ;;  %v9800_v3 = vld [vmem:[%s11079_s22 + $0xd4c] ss:$16 sps:$4 sm:$0xff]  }
 0x1e1   : > { %6698 = vmatpush1.bf16.msra.mxu0 %v9705_v4  ;;  %7354 = vmatpush1.bf16.msra.mxu1 %v9708_v5  ;;  %v9795_v4 = vld [vmem:[%s11079_s22 + $0xd40] ss:$16 sps:$4 sm:$0xff]   ;;  %v9798_v5 = vld [vmem:[%s11079_s22 + $0xd48] ss:$16 sps:$4 sm:$0xff]  }
 0x1e2   : > { %6699 = vmatprep.subr.bf16.mxu0 %v9713_v6  ;;  %7355 = vmatprep.subr.bf16.mxu1 %v9716_v7  ;;  %v9803_v6 = vld [vmem:[%s11079_s22 + $0xd64] ss:$16 sps:$4 sm:$0xff]   ;;  %v9806_v7 = vld [vmem:[%s11079_s22 + $0xd6c] ss:$16 sps:$4 sm:$0xff]  }
 0x1e5   : > { %6700 = vmatpush1.bf16.msra.mxu0 %v9711_v8  ;;  %7356 = vmatpush1.bf16.msra.mxu1 %v9714_v9  ;;  %v9801_v8 = vld [vmem:[%s11079_s22 + $0xd60] ss:$16 sps:$4 sm:$0xff]   ;;  %v9804_v9 = vld [vmem:[%s11079_s22 + $0xd68] ss:$16 sps:$4 sm:$0xff]  }
 0x1e6   : > { %6701 = vmatprep.subr.bf16.mxu0 %v9719_v10  ;;  %7357 = vmatprep.subr.bf16.mxu1 %v9722_v11  ;;  %v9809_v10 = vld [vmem:[%s11079_s22 + $0xd84] ss:$16 sps:$4 sm:$0xff]   ;;  %v9812_v11 = vld [vmem:[%s11079_s22 + $0xd8c] ss:$16 sps:$4 sm:$0xff]  }
 0x1e9   : > { %6702 = vmatpush1.bf16.msra.mxu0 %v9717_v12  ;;  %7358 = vmatpush1.bf16.msra.mxu1 %v9720_v13  ;;  %v9807_v12 = vld [vmem:[%s11079_s22 + $0xd80] ss:$16 sps:$4 sm:$0xff]   ;;  %v9810_v13 = vld [vmem:[%s11079_s22 + $0xd88] ss:$16 sps:$4 sm:$0xff]  }
 0x1ea   : > { %6703 = vmatprep.subr.bf16.mxu0 %v9725_v14  ;;  %7359 = vmatprep.subr.bf16.mxu1 %v9728_v15  ;;  %v9815_v14 = vld [vmem:[%s11079_s22 + $0xda4] ss:$16 sps:$4 sm:$0xff]   ;;  %v9818_v15 = vld [vmem:[%s11079_s22 + $0xdac] ss:$16 sps:$4 sm:$0xff]  }
 0x1ed   : > { %6704 = vmatpush1.bf16.msra.mxu0 %v9723_v16  ;;  %7360 = vmatpush1.bf16.msra.mxu1 %v9726_v17  ;;  %v9813_v16 = vld [vmem:[%s11079_s22 + $0xda0] ss:$16 sps:$4 sm:$0xff]   ;;  %v9816_v17 = vld [vmem:[%s11079_s22 + $0xda8] ss:$16 sps:$4 sm:$0xff]  }
 0x1ee   : > { %6705 = vmatprep.subr.bf16.mxu0 %v9731_v18  ;;  %7361 = vmatprep.subr.bf16.mxu1 %v9734_v19  ;;  %v9821_v18 = vld [vmem:[%s11079_s22 + $0xdc4] ss:$16 sps:$4 sm:$0xff]   ;;  %v9824_v19 = vld [vmem:[%s11079_s22 + $0xdcc] ss:$16 sps:$4 sm:$0xff]  }
 0x1f1   : > { %6706 = vmatpush1.bf16.msra.mxu0 %v9729_v20  ;;  %7362 = vmatpush1.bf16.msra.mxu1 %v9732_v21  ;;  %v9819_v20 = vld [vmem:[%s11079_s22 + $0xdc0] ss:$16 sps:$4 sm:$0xff]   ;;  %v9822_v21 = vld [vmem:[%s11079_s22 + $0xdc8] ss:$16 sps:$4 sm:$0xff]  }
 0x1f2   : > { %6716 = vmatprep.subr.bf16.mxu0 %v9737_v22  ;;  %7372 = vmatprep.subr.bf16.mxu1 %v9740_v24  ;;  %v9827_v22 = vld [vmem:[%s11079_s22 + $0xde4] ss:$16 sps:$4 sm:$0xff]   ;;  %v9825_v24 = vld [vmem:[%s11079_s22 + $0xde0] ss:$16 sps:$4 sm:$0xff]  }
 0x1f4   : > { %6708 = vmatmul.mubr.bf16.vlgmr.msra.gmra.mrb[0].mxu0 %v282_v26  ;;  %7364 = vmatmul.mubr.bf16.vlgmr.msra.gmra.mrb[0].mxu1 %v282_v26  ;;  %v9833_v26 = vld [vmem:[%s11079_s22 + $0xe04] ss:$16 sps:$4 sm:$0xff]  }
 0x1f5   : > { %6717 = vmatpush1.bf16.msra.mxu0 %v9735_v27  ;;  %7373 = vmatpush1.bf16.msra.mxu1 %v9738_v28  ;;  %v252_v27 = vld [vmem:[#allocation2 + $0x60] sm:$0xff]  ;;  %v9836_v28 = vld [vmem:[%s11079_s22 + $0xe0c] ss:$16 sps:$4 sm:$0xff]  }
 0x1f6   : > { %6718 = vmatprep.subr.bf16.mxu0 %v9743_v29  ;;  %7374 = vmatprep.subr.bf16.mxu1 %v9746_v30  ;;  %v255_v29 = vld [vmem:[#allocation2 + $0x78] sm:$0xff]  ;;  %v284_v30 = vpack.c.bf16 %v252_v27, %v252_v27 }
 0x1f7   : > { %6748 = vmatprep.mubr.bf16.mxu0 %v285_v31  ;;  %7404 = vmatprep.mubr.bf16.mxu1 %v285_v31  ;;  %v9831_v31 = vld [vmem:[%s11079_s22 + $0xe00] ss:$16 sps:$4 sm:$0xff]   ;;  %v9926_v27 = vld [vmem:[%s11079_s22 + $0xfec] ss:$16 sps:$4 sm:$0xff]  }
 0x1f9   : > { %6719 = vmatpush1.bf16.msra.mxu0 %v9741_v32  ;;  %7375 = vmatpush1.bf16.msra.mxu1 %v9744_v33  ;;  %v9834_v32 = vld [vmem:[%s11079_s22 + $0xe08] ss:$16 sps:$4 sm:$0xff]   ;;  %v9839_v33 = vld [vmem:[%s11079_s22 + $0xe24] ss:$16 sps:$4 sm:$0xff]  }
 0x1fa   : > { %6720 = vmatprep.subr.bf16.mxu0 %v9749_v34  ;;  %7376 = vmatprep.subr.bf16.mxu1 %v9752_v35  ;;  %v9842_v34 = vld [vmem:[%s11079_s22 + $0xe2c] ss:$16 sps:$4 sm:$0xff]   ;;  %v287_v35 = vpack.c.bf16 %v255_v29, %v255_v29  ;;  %v9924_v29 = vld [vmem:[%s11079_s22 + $0xfe8] ss:$16 sps:$4 sm:$0xff]  }
 0x1fd   : > { %6721 = vmatpush1.bf16.msra.mxu0 %v9747_v36  ;;  %7377 = vmatpush1.bf16.msra.mxu1 %v9750_v37  ;;  %v9837_v36 = vld [vmem:[%s11079_s22 + $0xe20] ss:$16 sps:$4 sm:$0xff]   ;;  %v9840_v37 = vld [vmem:[%s11079_s22 + $0xe28] ss:$16 sps:$4 sm:$0xff]  }
 0x1fe   : > { %6722 = vmatprep.subr.bf16.mxu0 %v9755_v38  ;;  %7378 = vmatprep.subr.bf16.mxu1 %v9758_v39  ;;  %v9845_v38 = vld [vmem:[%s11079_s22 + $0xe44] ss:$16 sps:$4 sm:$0xff]   ;;  %v9848_v39 = vld [vmem:[%s11079_s22 + $0xe4c] ss:$16 sps:$4 sm:$0xff]  }
 0x201   : > { %6723 = vmatpush1.bf16.msra.mxu0 %v9753_v40  ;;  %7379 = vmatpush1.bf16.msra.mxu1 %v9756_v41  ;;  %v9843_v40 = vld [vmem:[%s11079_s22 + $0xe40] ss:$16 sps:$4 sm:$0xff]   ;;  %v9846_v41 = vld [vmem:[%s11079_s22 + $0xe48] ss:$16 sps:$4 sm:$0xff]  }
 0x202   : > { %6724 = vmatprep.subr.bf16.mxu0 %v9761_v42  ;;  %7380 = vmatprep.subr.bf16.mxu1 %v9764_v43  ;;  %v9851_v42 = vld [vmem:[%s11079_s22 + $0xe64] ss:$16 sps:$4 sm:$0xff]   ;;  %v9854_v43 = vld [vmem:[%s11079_s22 + $0xe6c] ss:$16 sps:$4 sm:$0xff]  }
 0x205   : > { %6725 = vmatpush1.bf16.msra.mxu0 %v9759_v44  ;;  %7381 = vmatpush1.bf16.msra.mxu1 %v9762_v45  ;;  %v9849_v44 = vld [vmem:[%s11079_s22 + $0xe60] ss:$16 sps:$4 sm:$0xff]   ;;  %v9852_v45 = vld [vmem:[%s11079_s22 + $0xe68] ss:$16 sps:$4 sm:$0xff]  }
 0x206   : > { %6726 = vmatprep.subr.bf16.mxu0 %v9767_v46  ;;  %7382 = vmatprep.subr.bf16.mxu1 %v9770_v47  ;;  %v9857_v46 = vld [vmem:[%s11079_s22 + $0xe84] ss:$16 sps:$4 sm:$0xff]   ;;  %v9860_v47 = vld [vmem:[%s11079_s22 + $0xe8c] ss:$16 sps:$4 sm:$0xff]  }
 0x209   : > { %6727 = vmatpush1.bf16.msra.mxu0 %v9765_v48  ;;  %7383 = vmatpush1.bf16.msra.mxu1 %v9768_v49  ;;  %v9855_v48 = vld [vmem:[%s11079_s22 + $0xe80] ss:$16 sps:$4 sm:$0xff]   ;;  %v9858_v49 = vld [vmem:[%s11079_s22 + $0xe88] ss:$16 sps:$4 sm:$0xff]  }
 0x20a   : > { %6728 = vmatprep.subr.bf16.mxu0 %v9773_v50  ;;  %7384 = vmatprep.subr.bf16.mxu1 %v9776_v51  ;;  %v9863_v50 = vld [vmem:[%s11079_s22 + $0xea4] ss:$16 sps:$4 sm:$0xff]   ;;  %v9866_v51 = vld [vmem:[%s11079_s22 + $0xeac] ss:$16 sps:$4 sm:$0xff]  }
 0x20d   : > { %6729 = vmatpush1.bf16.msra.mxu0 %v9771_v52  ;;  %7385 = vmatpush1.bf16.msra.mxu1 %v9774_v53  ;;  %v9861_v52 = vld [vmem:[%s11079_s22 + $0xea0] ss:$16 sps:$4 sm:$0xff]   ;;  %v9864_v53 = vld [vmem:[%s11079_s22 + $0xea8] ss:$16 sps:$4 sm:$0xff]  }
 0x20e   : > { %6730 = vmatprep.subr.bf16.mxu0 %v9779_v54  ;;  %7386 = vmatprep.subr.bf16.mxu1 %v9782_v55  ;;  %v9869_v54 = vld [vmem:[%s11079_s22 + $0xec4] ss:$16 sps:$4 sm:$0xff]   ;;  %v9872_v55 = vld [vmem:[%s11079_s22 + $0xecc] ss:$16 sps:$4 sm:$0xff]  }
 0x211   : > { %6731 = vmatpush1.bf16.msra.mxu0 %v9777_v56  ;;  %7387 = vmatpush1.bf16.msra.mxu1 %v9780_v57  ;;  %v9867_v56 = vld [vmem:[%s11079_s22 + $0xec0] ss:$16 sps:$4 sm:$0xff]   ;;  %v9870_v57 = vld [vmem:[%s11079_s22 + $0xec8] ss:$16 sps:$4 sm:$0xff]  }
 0x212   : > { %6732 = vmatprep.subr.bf16.mxu0 %v9785_v58  ;;  %7388 = vmatprep.subr.bf16.mxu1 %v9788_v59  ;;  %v9875_v58 = vld [vmem:[%s11079_s22 + $0xee4] ss:$16 sps:$4 sm:$0xff]   ;;  %v9878_v59 = vld [vmem:[%s11079_s22 + $0xeec] ss:$16 sps:$4 sm:$0xff]  }
 0x215   : > { %6733 = vmatpush1.bf16.msra.mxu0 %v9783_v60  ;;  %7389 = vmatpush1.bf16.msra.mxu1 %v9786_v61  ;;  %v9873_v60 = vld [vmem:[%s11079_s22 + $0xee0] ss:$16 sps:$4 sm:$0xff]   ;;  %v9876_v61 = vld [vmem:[%s11079_s22 + $0xee8] ss:$16 sps:$4 sm:$0xff]  }
 0x216   : > { %6734 = vmatprep.subr.bf16.mxu0 %v9791_v62  ;;  %7390 = vmatprep.subr.bf16.mxu1 %v9794_v63  ;;  %v9881_v62 = vld [vmem:[%s11079_s22 + $0xf04] ss:$16 sps:$4 sm:$0xff]   ;;  %v9884_v63 = vld [vmem:[%s11079_s22 + $0xf0c] ss:$16 sps:$4 sm:$0xff]  }
 0x219   : > { %6735 = vmatpush1.bf16.msra.mxu0 %v9789_v0  ;;  %7391 = vmatpush1.bf16.msra.mxu1 %v9792_v1  ;;  %v9879_v0 = vld [vmem:[%s11079_s22 + $0xf00] ss:$16 sps:$4 sm:$0xff]   ;;  %v9882_v1 = vld [vmem:[%s11079_s22 + $0xf08] ss:$16 sps:$4 sm:$0xff]  }
 0x21a   : > { %6736 = vmatprep.subr.bf16.mxu0 %v9797_v2  ;;  %7392 = vmatprep.subr.bf16.mxu1 %v9800_v3  ;;  %v9887_v2 = vld [vmem:[%s11079_s22 + $0xf24] ss:$16 sps:$4 sm:$0xff]   ;;  %v9890_v3 = vld [vmem:[%s11079_s22 + $0xf2c] ss:$16 sps:$4 sm:$0xff]  }
 0x21d   : > { %6737 = vmatpush1.bf16.msra.mxu0 %v9795_v4  ;;  %7393 = vmatpush1.bf16.msra.mxu1 %v9798_v5  ;;  %v9885_v4 = vld [vmem:[%s11079_s22 + $0xf20] ss:$16 sps:$4 sm:$0xff]   ;;  %v9888_v5 = vld [vmem:[%s11079_s22 + $0xf28] ss:$16 sps:$4 sm:$0xff]  }
 0x21e   : > { %6738 = vmatprep.subr.bf16.mxu0 %v9803_v6  ;;  %7394 = vmatprep.subr.bf16.mxu1 %v9806_v7  ;;  %v9893_v6 = vld [vmem:[%s11079_s22 + $0xf44] ss:$16 sps:$4 sm:$0xff]   ;;  %v9896_v7 = vld [vmem:[%s11079_s22 + $0xf4c] ss:$16 sps:$4 sm:$0xff]  }
 0x221   : > { %6739 = vmatpush1.bf16.msra.mxu0 %v9801_v8  ;;  %7395 = vmatpush1.bf16.msra.mxu1 %v9804_v9  ;;  %v9891_v8 = vld [vmem:[%s11079_s22 + $0xf40] ss:$16 sps:$4 sm:$0xff]   ;;  %v9894_v9 = vld [vmem:[%s11079_s22 + $0xf48] ss:$16 sps:$4 sm:$0xff]  }
 0x222   : > { %6740 = vmatprep.subr.bf16.mxu0 %v9809_v10  ;;  %7396 = vmatprep.subr.bf16.mxu1 %v9812_v11  ;;  %v9899_v10 = vld [vmem:[%s11079_s22 + $0xf64] ss:$16 sps:$4 sm:$0xff]   ;;  %v9902_v11 = vld [vmem:[%s11079_s22 + $0xf6c] ss:$16 sps:$4 sm:$0xff]  }
 0x225   : > { %6741 = vmatpush1.bf16.msra.mxu0 %v9807_v12  ;;  %7397 = vmatpush1.bf16.msra.mxu1 %v9810_v13  ;;  %v9897_v12 = vld [vmem:[%s11079_s22 + $0xf60] ss:$16 sps:$4 sm:$0xff]   ;;  %v9900_v13 = vld [vmem:[%s11079_s22 + $0xf68] ss:$16 sps:$4 sm:$0xff]  }
 0x226   : > { %6742 = vmatprep.subr.bf16.mxu0 %v9815_v14  ;;  %7398 = vmatprep.subr.bf16.mxu1 %v9818_v15  ;;  %v9905_v14 = vld [vmem:[%s11079_s22 + $0xf84] ss:$16 sps:$4 sm:$0xff]   ;;  %v9908_v15 = vld [vmem:[%s11079_s22 + $0xf8c] ss:$16 sps:$4 sm:$0xff]  }
 0x229   : > { %6743 = vmatpush1.bf16.msra.mxu0 %v9813_v16  ;;  %7399 = vmatpush1.bf16.msra.mxu1 %v9816_v17  ;;  %v9903_v16 = vld [vmem:[%s11079_s22 + $0xf80] ss:$16 sps:$4 sm:$0xff]   ;;  %v9906_v17 = vld [vmem:[%s11079_s22 + $0xf88] ss:$16 sps:$4 sm:$0xff]  }
 0x22a   : > { %6744 = vmatprep.subr.bf16.mxu0 %v9821_v18  ;;  %7400 = vmatprep.subr.bf16.mxu1 %v9824_v19  ;;  %v9911_v18 = vld [vmem:[%s11079_s22 + $0xfa4] ss:$16 sps:$4 sm:$0xff]   ;;  %v9914_v19 = vld [vmem:[%s11079_s22 + $0xfac] ss:$16 sps:$4 sm:$0xff]  }
 0x22d   : > { %6745 = vmatpush1.bf16.msra.mxu0 %v9819_v20  ;;  %7401 = vmatpush1.bf16.msra.mxu1 %v9822_v21  ;;  %v9909_v20 = vld [vmem:[%s11079_s22 + $0xfa0] ss:$16 sps:$4 sm:$0xff]   ;;  %v9912_v21 = vld [vmem:[%s11079_s22 + $0xfa8] ss:$16 sps:$4 sm:$0xff]  }
 0x22e   : > { %6746 = vmatprep.subr.bf16.mxu0 %v9827_v22  ;;  %7402 = vmatprep.subr.bf16.mxu1 %v9830_v23  ;;  %v9917_v22 = vld [vmem:[%s11079_s22 + $0xfc4] ss:$16 sps:$4 sm:$0xff]   ;;  %v9920_v23 = vld [vmem:[%s11079_s22 + $0xfcc] ss:$16 sps:$4 sm:$0xff]  }
 0x231   : > { %6747 = vmatpush1.bf16.msra.mxu0 %v9825_v24  ;;  %7403 = vmatpush1.bf16.msra.mxu1 %v9828_v25  ;;  %v9915_v24 = vld [vmem:[%s11079_s22 + $0xfc0] ss:$16 sps:$4 sm:$0xff]   ;;  %v9918_v25 = vld [vmem:[%s11079_s22 + $0xfc8] ss:$16 sps:$4 sm:$0xff]  }
 0x232   : > { %6757 = vmatprep.subr.bf16.mxu0 %v9833_v26  ;;  %7413 = vmatprep.subr.bf16.mxu1 %v9836_v28  ;;  %v9923_v26 = vld [vmem:[%s11079_s22 + $0xfe4] ss:$16 sps:$4 sm:$0xff]   ;;  %v9921_v28 = vld [vmem:[%s11079_s22 + $0xfe0] ss:$16 sps:$4 sm:$0xff]  }
 0x234   : > { %6749 = vmatmul.mubr.bf16.vlgmr.msra.gmra.mrb[0].mxu0 %v284_v30  ;;  %7405 = vmatmul.mubr.bf16.vlgmr.msra.gmra.mrb[0].mxu1 %v284_v30  ;;  %v9929_v30 = vld [vmem:[%s11079_s22 + $0x1004] ss:$16 sps:$4 sm:$0xff]  }
 0x235   : > { %6758 = vmatpush1.bf16.msra.mxu0 %v9831_v31  ;;  %7414 = vmatpush1.bf16.msra.mxu1 %v9834_v32  ;;  %v254_v31 = vld [vmem:[#allocation2 + $0x70] sm:$0xff]  ;;  %v9932_v32 = vld [vmem:[%s11079_s22 + $0x100c] ss:$16 sps:$4 sm:$0xff]  }
 0x236   : > { %6759 = vmatprep.subr.bf16.mxu0 %v9839_v33  ;;  %7415 = vmatprep.subr.bf16.mxu1 %v9842_v34  ;;  %v257_v33 = vld [vmem:[#allocation2 + $0x88] sm:$0xff]  ;;  %v286_v34 = vpack.c.bf16 %v254_v31, %v254_v31 }
 0x237   : > { %6789 = vmatprep.mubr.bf16.mxu0 %v287_v35  ;;  %7445 = vmatprep.mubr.bf16.mxu1 %v287_v35  ;;  %v9927_v35 = vld [vmem:[%s11079_s22 + $0x1000] ss:$16 sps:$4 sm:$0xff]   ;;  %v10022_v31 = vld [vmem:[%s11079_s22 + $0x11ec] ss:$16 sps:$4 sm:$0xff]  }
 0x239   : > { %6760 = vmatpush1.bf16.msra.mxu0 %v9837_v36  ;;  %7416 = vmatpush1.bf16.msra.mxu1 %v9840_v37  ;;  %v9930_v36 = vld [vmem:[%s11079_s22 + $0x1008] ss:$16 sps:$4 sm:$0xff]   ;;  %v9935_v37 = vld [vmem:[%s11079_s22 + $0x1024] ss:$16 sps:$4 sm:$0xff]  }
 0x23a   : > { %6761 = vmatprep.subr.bf16.mxu0 %v9845_v38  ;;  %7417 = vmatprep.subr.bf16.mxu1 %v9848_v39  ;;  %v9938_v38 = vld [vmem:[%s11079_s22 + $0x102c] ss:$16 sps:$4 sm:$0xff]   ;;  %v289_v39 = vpack.c.bf16 %v257_v33, %v257_v33  ;;  %v10020_v33 = vld [vmem:[%s11079_s22 + $0x11e8] ss:$16 sps:$4 sm:$0xff]  }
 0x23d   : > { %6762 = vmatpush1.bf16.msra.mxu0 %v9843_v40  ;;  %7418 = vmatpush1.bf16.msra.mxu1 %v9846_v41  ;;  %v9933_v40 = vld [vmem:[%s11079_s22 + $0x1020] ss:$16 sps:$4 sm:$0xff]   ;;  %v9936_v41 = vld [vmem:[%s11079_s22 + $0x1028] ss:$16 sps:$4 sm:$0xff]  }
 0x23e   : > { %6763 = vmatprep.subr.bf16.mxu0 %v9851_v42  ;;  %7419 = vmatprep.subr.bf16.mxu1 %v9854_v43  ;;  %v9941_v42 = vld [vmem:[%s11079_s22 + $0x1044] ss:$16 sps:$4 sm:$0xff]   ;;  %v9944_v43 = vld [vmem:[%s11079_s22 + $0x104c] ss:$16 sps:$4 sm:$0xff]  }
 0x241   : > { %6764 = vmatpush1.bf16.msra.mxu0 %v9849_v44  ;;  %7420 = vmatpush1.bf16.msra.mxu1 %v9852_v45  ;;  %v9939_v44 = vld [vmem:[%s11079_s22 + $0x1040] ss:$16 sps:$4 sm:$0xff]   ;;  %v9942_v45 = vld [vmem:[%s11079_s22 + $0x1048] ss:$16 sps:$4 sm:$0xff]  }
 0x242   : > { %6765 = vmatprep.subr.bf16.mxu0 %v9857_v46  ;;  %7421 = vmatprep.subr.bf16.mxu1 %v9860_v47  ;;  %v9947_v46 = vld [vmem:[%s11079_s22 + $0x1064] ss:$16 sps:$4 sm:$0xff]   ;;  %v9950_v47 = vld [vmem:[%s11079_s22 + $0x106c] ss:$16 sps:$4 sm:$0xff]  }
 0x245   : > { %6766 = vmatpush1.bf16.msra.mxu0 %v9855_v48  ;;  %7422 = vmatpush1.bf16.msra.mxu1 %v9858_v49  ;;  %v9945_v48 = vld [vmem:[%s11079_s22 + $0x1060] ss:$16 sps:$4 sm:$0xff]   ;;  %v9948_v49 = vld [vmem:[%s11079_s22 + $0x1068] ss:$16 sps:$4 sm:$0xff]  }
 0x246   : > { %6767 = vmatprep.subr.bf16.mxu0 %v9863_v50  ;;  %7423 = vmatprep.subr.bf16.mxu1 %v9866_v51  ;;  %v9953_v50 = vld [vmem:[%s11079_s22 + $0x1084] ss:$16 sps:$4 sm:$0xff]   ;;  %v9956_v51 = vld [vmem:[%s11079_s22 + $0x108c] ss:$16 sps:$4 sm:$0xff]  }
 0x249   : > { %6768 = vmatpush1.bf16.msra.mxu0 %v9861_v52  ;;  %7424 = vmatpush1.bf16.msra.mxu1 %v9864_v53  ;;  %v9951_v52 = vld [vmem:[%s11079_s22 + $0x1080] ss:$16 sps:$4 sm:$0xff]   ;;  %v9954_v53 = vld [vmem:[%s11079_s22 + $0x1088] ss:$16 sps:$4 sm:$0xff]  }
 0x24a   : > { %6769 = vmatprep.subr.bf16.mxu0 %v9869_v54  ;;  %7425 = vmatprep.subr.bf16.mxu1 %v9872_v55  ;;  %v9959_v54 = vld [vmem:[%s11079_s22 + $0x10a4] ss:$16 sps:$4 sm:$0xff]   ;;  %v9962_v55 = vld [vmem:[%s11079_s22 + $0x10ac] ss:$16 sps:$4 sm:$0xff]  }
 0x24d   : > { %6770 = vmatpush1.bf16.msra.mxu0 %v9867_v56  ;;  %7426 = vmatpush1.bf16.msra.mxu1 %v9870_v57  ;;  %v9957_v56 = vld [vmem:[%s11079_s22 + $0x10a0] ss:$16 sps:$4 sm:$0xff]   ;;  %v9960_v57 = vld [vmem:[%s11079_s22 + $0x10a8] ss:$16 sps:$4 sm:$0xff]  }
 0x24e   : > { %6771 = vmatprep.subr.bf16.mxu0 %v9875_v58  ;;  %7427 = vmatprep.subr.bf16.mxu1 %v9878_v59  ;;  %v9965_v58 = vld [vmem:[%s11079_s22 + $0x10c4] ss:$16 sps:$4 sm:$0xff]   ;;  %v9968_v59 = vld [vmem:[%s11079_s22 + $0x10cc] ss:$16 sps:$4 sm:$0xff]  }
 0x251   : > { %6772 = vmatpush1.bf16.msra.mxu0 %v9873_v60  ;;  %7428 = vmatpush1.bf16.msra.mxu1 %v9876_v61  ;;  %v9963_v60 = vld [vmem:[%s11079_s22 + $0x10c0] ss:$16 sps:$4 sm:$0xff]   ;;  %v9966_v61 = vld [vmem:[%s11079_s22 + $0x10c8] ss:$16 sps:$4 sm:$0xff]  }
 0x252   : > { %6773 = vmatprep.subr.bf16.mxu0 %v9881_v62  ;;  %7429 = vmatprep.subr.bf16.mxu1 %v9884_v63  ;;  %v9971_v62 = vld [vmem:[%s11079_s22 + $0x10e4] ss:$16 sps:$4 sm:$0xff]   ;;  %v9974_v63 = vld [vmem:[%s11079_s22 + $0x10ec] ss:$16 sps:$4 sm:$0xff]  }
 0x255   : > { %6774 = vmatpush1.bf16.msra.mxu0 %v9879_v0  ;;  %7430 = vmatpush1.bf16.msra.mxu1 %v9882_v1  ;;  %v9969_v0 = vld [vmem:[%s11079_s22 + $0x10e0] ss:$16 sps:$4 sm:$0xff]   ;;  %v9972_v1 = vld [vmem:[%s11079_s22 + $0x10e8] ss:$16 sps:$4 sm:$0xff]  }
 0x256   : > { %6775 = vmatprep.subr.bf16.mxu0 %v9887_v2  ;;  %7431 = vmatprep.subr.bf16.mxu1 %v9890_v3  ;;  %v9977_v2 = vld [vmem:[%s11079_s22 + $0x1104] ss:$16 sps:$4 sm:$0xff]   ;;  %v9980_v3 = vld [vmem:[%s11079_s22 + $0x110c] ss:$16 sps:$4 sm:$0xff]  }
 0x259   : > { %6776 = vmatpush1.bf16.msra.mxu0 %v9885_v4  ;;  %7432 = vmatpush1.bf16.msra.mxu1 %v9888_v5  ;;  %v9975_v4 = vld [vmem:[%s11079_s22 + $0x1100] ss:$16 sps:$4 sm:$0xff]   ;;  %v9978_v5 = vld [vmem:[%s11079_s22 + $0x1108] ss:$16 sps:$4 sm:$0xff]  }
 0x25a   : > { %6777 = vmatprep.subr.bf16.mxu0 %v9893_v6  ;;  %7433 = vmatprep.subr.bf16.mxu1 %v9896_v7  ;;  %v9983_v6 = vld [vmem:[%s11079_s22 + $0x1124] ss:$16 sps:$4 sm:$0xff]   ;;  %v9986_v7 = vld [vmem:[%s11079_s22 + $0x112c] ss:$16 sps:$4 sm:$0xff]  }
 0x25d   : > { %6778 = vmatpush1.bf16.msra.mxu0 %v9891_v8  ;;  %7434 = vmatpush1.bf16.msra.mxu1 %v9894_v9  ;;  %v9981_v8 = vld [vmem:[%s11079_s22 + $0x1120] ss:$16 sps:$4 sm:$0xff]   ;;  %v9984_v9 = vld [vmem:[%s11079_s22 + $0x1128] ss:$16 sps:$4 sm:$0xff]  }
 0x25e   : > { %6779 = vmatprep.subr.bf16.mxu0 %v9899_v10  ;;  %7435 = vmatprep.subr.bf16.mxu1 %v9902_v11  ;;  %v9989_v10 = vld [vmem:[%s11079_s22 + $0x1144] ss:$16 sps:$4 sm:$0xff]   ;;  %v9992_v11 = vld [vmem:[%s11079_s22 + $0x114c] ss:$16 sps:$4 sm:$0xff]  }
 0x261   : > { %6780 = vmatpush1.bf16.msra.mxu0 %v9897_v12  ;;  %7436 = vmatpush1.bf16.msra.mxu1 %v9900_v13  ;;  %v9987_v12 = vld [vmem:[%s11079_s22 + $0x1140] ss:$16 sps:$4 sm:$0xff]   ;;  %v9990_v13 = vld [vmem:[%s11079_s22 + $0x1148] ss:$16 sps:$4 sm:$0xff]  }
 0x262   : > { %6781 = vmatprep.subr.bf16.mxu0 %v9905_v14  ;;  %7437 = vmatprep.subr.bf16.mxu1 %v9908_v15  ;;  %v9995_v14 = vld [vmem:[%s11079_s22 + $0x1164] ss:$16 sps:$4 sm:$0xff]   ;;  %v9998_v15 = vld [vmem:[%s11079_s22 + $0x116c] ss:$16 sps:$4 sm:$0xff]  }
 0x265   : > { %6782 = vmatpush1.bf16.msra.mxu0 %v9903_v16  ;;  %7438 = vmatpush1.bf16.msra.mxu1 %v9906_v17  ;;  %v9993_v16 = vld [vmem:[%s11079_s22 + $0x1160] ss:$16 sps:$4 sm:$0xff]   ;;  %v9996_v17 = vld [vmem:[%s11079_s22 + $0x1168] ss:$16 sps:$4 sm:$0xff]  }
 0x266   : > { %6783 = vmatprep.subr.bf16.mxu0 %v9911_v18  ;;  %7439 = vmatprep.subr.bf16.mxu1 %v9914_v19  ;;  %v10001_v18 = vld [vmem:[%s11079_s22 + $0x1184] ss:$16 sps:$4 sm:$0xff]   ;;  %v10004_v19 = vld [vmem:[%s11079_s22 + $0x118c] ss:$16 sps:$4 sm:$0xff]  }
 0x269   : > { %6784 = vmatpush1.bf16.msra.mxu0 %v9909_v20  ;;  %7440 = vmatpush1.bf16.msra.mxu1 %v9912_v21  ;;  %v9999_v20 = vld [vmem:[%s11079_s22 + $0x1180] ss:$16 sps:$4 sm:$0xff]   ;;  %v10002_v21 = vld [vmem:[%s11079_s22 + $0x1188] ss:$16 sps:$4 sm:$0xff]  }
 0x26a   : > { %6785 = vmatprep.subr.bf16.mxu0 %v9917_v22  ;;  %7441 = vmatprep.subr.bf16.mxu1 %v9920_v23  ;;  %v10007_v22 = vld [vmem:[%s11079_s22 + $0x11a4] ss:$16 sps:$4 sm:$0xff]   ;;  %v10010_v23 = vld [vmem:[%s11079_s22 + $0x11ac] ss:$16 sps:$4 sm:$0xff]  }
 0x26d   : > { %6786 = vmatpush1.bf16.msra.mxu0 %v9915_v24  ;;  %7442 = vmatpush1.bf16.msra.mxu1 %v9918_v25  ;;  %v10005_v24 = vld [vmem:[%s11079_s22 + $0x11a0] ss:$16 sps:$4 sm:$0xff]   ;;  %v10008_v25 = vld [vmem:[%s11079_s22 + $0x11a8] ss:$16 sps:$4 sm:$0xff]  }
 0x26e   : > { %6787 = vmatprep.subr.bf16.mxu0 %v9923_v26  ;;  %7443 = vmatprep.subr.bf16.mxu1 %v9926_v27  ;;  %v10013_v26 = vld [vmem:[%s11079_s22 + $0x11c4] ss:$16 sps:$4 sm:$0xff]   ;;  %v10016_v27 = vld [vmem:[%s11079_s22 + $0x11cc] ss:$16 sps:$4 sm:$0xff]  }
 0x271   : > { %6788 = vmatpush1.bf16.msra.mxu0 %v9921_v28  ;;  %7444 = vmatpush1.bf16.msra.mxu1 %v9924_v29  ;;  %v10011_v28 = vld [vmem:[%s11079_s22 + $0x11c0] ss:$16 sps:$4 sm:$0xff]   ;;  %v10014_v29 = vld [vmem:[%s11079_s22 + $0x11c8] ss:$16 sps:$4 sm:$0xff]  }
 0x272   : > { %6798 = vmatprep.subr.bf16.mxu0 %v9929_v30  ;;  %7454 = vmatprep.subr.bf16.mxu1 %v9932_v32  ;;  %v10019_v30 = vld [vmem:[%s11079_s22 + $0x11e4] ss:$16 sps:$4 sm:$0xff]   ;;  %v10017_v32 = vld [vmem:[%s11079_s22 + $0x11e0] ss:$16 sps:$4 sm:$0xff]  }
 0x274   : > { %6790 = vmatmul.mubr.bf16.vlgmr.msra.gmra.mrb[0].mxu0 %v286_v34  ;;  %7446 = vmatmul.mubr.bf16.vlgmr.msra.gmra.mrb[0].mxu1 %v286_v34  ;;  %v10025_v34 = vld [vmem:[%s11079_s22 + $0x1204] ss:$16 sps:$4 sm:$0xff]  }
 0x275   : > { %6799 = vmatpush1.bf16.msra.mxu0 %v9927_v35  ;;  %7455 = vmatpush1.bf16.msra.mxu1 %v9930_v36  ;;  %v256_v35 = vld [vmem:[#allocation2 + $0x80] sm:$0xff]  ;;  %v10028_v36 = vld [vmem:[%s11079_s22 + $0x120c] ss:$16 sps:$4 sm:$0xff]  }
 0x276   : > { %6800 = vmatprep.subr.bf16.mxu0 %v9935_v37  ;;  %7456 = vmatprep.subr.bf16.mxu1 %v9938_v38  ;;  %v259_v37 = vld [vmem:[#allocation2 + $0x98] sm:$0xff]  ;;  %v288_v38 = vpack.c.bf16 %v256_v35, %v256_v35 }
 0x277   : > { %6830 = vmatprep.mubr.bf16.mxu0 %v289_v39  ;;  %7486 = vmatprep.mubr.bf16.mxu1 %v289_v39  ;;  %v10023_v39 = vld [vmem:[%s11079_s22 + $0x1200] ss:$16 sps:$4 sm:$0xff]   ;;  %v10118_v35 = vld [vmem:[%s11079_s22 + $0x13ec] ss:$16 sps:$4 sm:$0xff]  }
 0x279   : > { %6801 = vmatpush1.bf16.msra.mxu0 %v9933_v40  ;;  %7457 = vmatpush1.bf16.msra.mxu1 %v9936_v41  ;;  %v10026_v40 = vld [vmem:[%s11079_s22 + $0x1208] ss:$16 sps:$4 sm:$0xff]   ;;  %v10031_v41 = vld [vmem:[%s11079_s22 + $0x1224] ss:$16 sps:$4 sm:$0xff]  }
 0x27a   : > { %6802 = vmatprep.subr.bf16.mxu0 %v9941_v42  ;;  %7458 = vmatprep.subr.bf16.mxu1 %v9944_v43  ;;  %v10034_v42 = vld [vmem:[%s11079_s22 + $0x122c] ss:$16 sps:$4 sm:$0xff]   ;;  %v291_v43 = vpack.c.bf16 %v259_v37, %v259_v37  ;;  %v10116_v37 = vld [vmem:[%s11079_s22 + $0x13e8] ss:$16 sps:$4 sm:$0xff]  }
 0x27d   : > { %6803 = vmatpush1.bf16.msra.mxu0 %v9939_v44  ;;  %7459 = vmatpush1.bf16.msra.mxu1 %v9942_v45  ;;  %v10029_v44 = vld [vmem:[%s11079_s22 + $0x1220] ss:$16 sps:$4 sm:$0xff]   ;;  %v10032_v45 = vld [vmem:[%s11079_s22 + $0x1228] ss:$16 sps:$4 sm:$0xff]  }
 0x27e   : > { %6804 = vmatprep.subr.bf16.mxu0 %v9947_v46  ;;  %7460 = vmatprep.subr.bf16.mxu1 %v9950_v47  ;;  %v10037_v46 = vld [vmem:[%s11079_s22 + $0x1244] ss:$16 sps:$4 sm:$0xff]   ;;  %v10040_v47 = vld [vmem:[%s11079_s22 + $0x124c] ss:$16 sps:$4 sm:$0xff]  }
 0x281   : > { %6805 = vmatpush1.bf16.msra.mxu0 %v9945_v48  ;;  %7461 = vmatpush1.bf16.msra.mxu1 %v9948_v49  ;;  %v10035_v48 = vld [vmem:[%s11079_s22 + $0x1240] ss:$16 sps:$4 sm:$0xff]   ;;  %v10038_v49 = vld [vmem:[%s11079_s22 + $0x1248] ss:$16 sps:$4 sm:$0xff]  }
 0x282   : > { %6806 = vmatprep.subr.bf16.mxu0 %v9953_v50  ;;  %7462 = vmatprep.subr.bf16.mxu1 %v9956_v51  ;;  %v10043_v50 = vld [vmem:[%s11079_s22 + $0x1264] ss:$16 sps:$4 sm:$0xff]   ;;  %v10046_v51 = vld [vmem:[%s11079_s22 + $0x126c] ss:$16 sps:$4 sm:$0xff]  }
 0x285   : > { %6807 = vmatpush1.bf16.msra.mxu0 %v9951_v52  ;;  %7463 = vmatpush1.bf16.msra.mxu1 %v9954_v53  ;;  %v10041_v52 = vld [vmem:[%s11079_s22 + $0x1260] ss:$16 sps:$4 sm:$0xff]   ;;  %v10044_v53 = vld [vmem:[%s11079_s22 + $0x1268] ss:$16 sps:$4 sm:$0xff]  }
 0x286   : > { %6808 = vmatprep.subr.bf16.mxu0 %v9959_v54  ;;  %7464 = vmatprep.subr.bf16.mxu1 %v9962_v55  ;;  %v10049_v54 = vld [vmem:[%s11079_s22 + $0x1284] ss:$16 sps:$4 sm:$0xff]   ;;  %v10052_v55 = vld [vmem:[%s11079_s22 + $0x128c] ss:$16 sps:$4 sm:$0xff]  }
 0x289   : > { %6809 = vmatpush1.bf16.msra.mxu0 %v9957_v56  ;;  %7465 = vmatpush1.bf16.msra.mxu1 %v9960_v57  ;;  %v10047_v56 = vld [vmem:[%s11079_s22 + $0x1280] ss:$16 sps:$4 sm:$0xff]   ;;  %v10050_v57 = vld [vmem:[%s11079_s22 + $0x1288] ss:$16 sps:$4 sm:$0xff]  }
 0x28a   : > { %6810 = vmatprep.subr.bf16.mxu0 %v9965_v58  ;;  %7466 = vmatprep.subr.bf16.mxu1 %v9968_v59  ;;  %v10055_v58 = vld [vmem:[%s11079_s22 + $0x12a4] ss:$16 sps:$4 sm:$0xff]   ;;  %v10058_v59 = vld [vmem:[%s11079_s22 + $0x12ac] ss:$16 sps:$4 sm:$0xff]  }
 0x28d   : > { %6811 = vmatpush1.bf16.msra.mxu0 %v9963_v60  ;;  %7467 = vmatpush1.bf16.msra.mxu1 %v9966_v61  ;;  %v10053_v60 = vld [vmem:[%s11079_s22 + $0x12a0] ss:$16 sps:$4 sm:$0xff]   ;;  %v10056_v61 = vld [vmem:[%s11079_s22 + $0x12a8] ss:$16 sps:$4 sm:$0xff]  }
 0x28e   : > { %6812 = vmatprep.subr.bf16.mxu0 %v9971_v62  ;;  %7468 = vmatprep.subr.bf16.mxu1 %v9974_v63  ;;  %v10061_v62 = vld [vmem:[%s11079_s22 + $0x12c4] ss:$16 sps:$4 sm:$0xff]   ;;  %v10064_v63 = vld [vmem:[%s11079_s22 + $0x12cc] ss:$16 sps:$4 sm:$0xff]  }
 0x291   : > { %6813 = vmatpush1.bf16.msra.mxu0 %v9969_v0  ;;  %7469 = vmatpush1.bf16.msra.mxu1 %v9972_v1  ;;  %v10059_v0 = vld [vmem:[%s11079_s22 + $0x12c0] ss:$16 sps:$4 sm:$0xff]   ;;  %v10062_v1 = vld [vmem:[%s11079_s22 + $0x12c8] ss:$16 sps:$4 sm:$0xff]  }
 0x292   : > { %6814 = vmatprep.subr.bf16.mxu0 %v9977_v2  ;;  %7470 = vmatprep.subr.bf16.mxu1 %v9980_v3  ;;  %v10067_v2 = vld [vmem:[%s11079_s22 + $0x12e4] ss:$16 sps:$4 sm:$0xff]   ;;  %v10070_v3 = vld [vmem:[%s11079_s22 + $0x12ec] ss:$16 sps:$4 sm:$0xff]  }
 0x295   : > { %6815 = vmatpush1.bf16.msra.mxu0 %v9975_v4  ;;  %7471 = vmatpush1.bf16.msra.mxu1 %v9978_v5  ;;  %v10065_v4 = vld [vmem:[%s11079_s22 + $0x12e0] ss:$16 sps:$4 sm:$0xff]   ;;  %v10068_v5 = vld [vmem:[%s11079_s22 + $0x12e8] ss:$16 sps:$4 sm:$0xff]  }
 0x296   : > { %6816 = vmatprep.subr.bf16.mxu0 %v9983_v6  ;;  %7472 = vmatprep.subr.bf16.mxu1 %v9986_v7  ;;  %v10073_v6 = vld [vmem:[%s11079_s22 + $0x1304] ss:$16 sps:$4 sm:$0xff]   ;;  %v10076_v7 = vld [vmem:[%s11079_s22 + $0x130c] ss:$16 sps:$4 sm:$0xff]  }
 0x299   : > { %6817 = vmatpush1.bf16.msra.mxu0 %v9981_v8  ;;  %7473 = vmatpush1.bf16.msra.mxu1 %v9984_v9  ;;  %v10071_v8 = vld [vmem:[%s11079_s22 + $0x1300] ss:$16 sps:$4 sm:$0xff]   ;;  %v10074_v9 = vld [vmem:[%s11079_s22 + $0x1308] ss:$16 sps:$4 sm:$0xff]  }
 0x29a   : > { %6818 = vmatprep.subr.bf16.mxu0 %v9989_v10  ;;  %7474 = vmatprep.subr.bf16.mxu1 %v9992_v11  ;;  %v10079_v10 = vld [vmem:[%s11079_s22 + $0x1324] ss:$16 sps:$4 sm:$0xff]   ;;  %v10082_v11 = vld [vmem:[%s11079_s22 + $0x132c] ss:$16 sps:$4 sm:$0xff]  }
 0x29d   : > { %6819 = vmatpush1.bf16.msra.mxu0 %v9987_v12  ;;  %7475 = vmatpush1.bf16.msra.mxu1 %v9990_v13  ;;  %v10077_v12 = vld [vmem:[%s11079_s22 + $0x1320] ss:$16 sps:$4 sm:$0xff]   ;;  %v10080_v13 = vld [vmem:[%s11079_s22 + $0x1328] ss:$16 sps:$4 sm:$0xff]  }
 0x29e   : > { %6820 = vmatprep.subr.bf16.mxu0 %v9995_v14  ;;  %7476 = vmatprep.subr.bf16.mxu1 %v9998_v15  ;;  %v10085_v14 = vld [vmem:[%s11079_s22 + $0x1344] ss:$16 sps:$4 sm:$0xff]   ;;  %v10088_v15 = vld [vmem:[%s11079_s22 + $0x134c] ss:$16 sps:$4 sm:$0xff]  }
 0x2a1   : > { %6821 = vmatpush1.bf16.msra.mxu0 %v9993_v16  ;;  %7477 = vmatpush1.bf16.msra.mxu1 %v9996_v17  ;;  %v10083_v16 = vld [vmem:[%s11079_s22 + $0x1340] ss:$16 sps:$4 sm:$0xff]   ;;  %v10086_v17 = vld [vmem:[%s11079_s22 + $0x1348] ss:$16 sps:$4 sm:$0xff]  }
 0x2a2   : > { %6822 = vmatprep.subr.bf16.mxu0 %v10001_v18  ;;  %7478 = vmatprep.subr.bf16.mxu1 %v10004_v19  ;;  %v10091_v18 = vld [vmem:[%s11079_s22 + $0x1364] ss:$16 sps:$4 sm:$0xff]   ;;  %v10094_v19 = vld [vmem:[%s11079_s22 + $0x136c] ss:$16 sps:$4 sm:$0xff]  }
 0x2a5   : > { %6823 = vmatpush1.bf16.msra.mxu0 %v9999_v20  ;;  %7479 = vmatpush1.bf16.msra.mxu1 %v10002_v21  ;;  %v10089_v20 = vld [vmem:[%s11079_s22 + $0x1360] ss:$16 sps:$4 sm:$0xff]   ;;  %v10092_v21 = vld [vmem:[%s11079_s22 + $0x1368] ss:$16 sps:$4 sm:$0xff]  }
 0x2a6   : > { %6824 = vmatprep.subr.bf16.mxu0 %v10007_v22  ;;  %7480 = vmatprep.subr.bf16.mxu1 %v10010_v23  ;;  %v10097_v22 = vld [vmem:[%s11079_s22 + $0x1384] ss:$16 sps:$4 sm:$0xff]   ;;  %v10100_v23 = vld [vmem:[%s11079_s22 + $0x138c] ss:$16 sps:$4 sm:$0xff]  }
 0x2a9   : > { %6825 = vmatpush1.bf16.msra.mxu0 %v10005_v24  ;;  %7481 = vmatpush1.bf16.msra.mxu1 %v10008_v25  ;;  %v10095_v24 = vld [vmem:[%s11079_s22 + $0x1380] ss:$16 sps:$4 sm:$0xff]   ;;  %v10098_v25 = vld [vmem:[%s11079_s22 + $0x1388] ss:$16 sps:$4 sm:$0xff]  }
 0x2aa   : > { %6826 = vmatprep.subr.bf16.mxu0 %v10013_v26  ;;  %7482 = vmatprep.subr.bf16.mxu1 %v10016_v27  ;;  %v10103_v26 = vld [vmem:[%s11079_s22 + $0x13a4] ss:$16 sps:$4 sm:$0xff]   ;;  %v10106_v27 = vld [vmem:[%s11079_s22 + $0x13ac] ss:$16 sps:$4 sm:$0xff]  }
 0x2ad   : > { %6827 = vmatpush1.bf16.msra.mxu0 %v10011_v28  ;;  %7483 = vmatpush1.bf16.msra.mxu1 %v10014_v29  ;;  %v10101_v28 = vld [vmem:[%s11079_s22 + $0x13a0] ss:$16 sps:$4 sm:$0xff]   ;;  %v10104_v29 = vld [vmem:[%s11079_s22 + $0x13a8] ss:$16 sps:$4 sm:$0xff]  }
 0x2ae   : > { %6828 = vmatprep.subr.bf16.mxu0 %v10019_v30  ;;  %7484 = vmatprep.subr.bf16.mxu1 %v10022_v31  ;;  %v10109_v30 = vld [vmem:[%s11079_s22 + $0x13c4] ss:$16 sps:$4 sm:$0xff]   ;;  %v10112_v31 = vld [vmem:[%s11079_s22 + $0x13cc] ss:$16 sps:$4 sm:$0xff]  }
 0x2b1   : > { %6829 = vmatpush1.bf16.msra.mxu0 %v10017_v32  ;;  %7485 = vmatpush1.bf16.msra.mxu1 %v10020_v33  ;;  %v10107_v32 = vld [vmem:[%s11079_s22 + $0x13c0] ss:$16 sps:$4 sm:$0xff]   ;;  %v10110_v33 = vld [vmem:[%s11079_s22 + $0x13c8] ss:$16 sps:$4 sm:$0xff]  }
 0x2b2   : > { %6839 = vmatprep.subr.bf16.mxu0 %v10025_v34  ;;  %7495 = vmatprep.subr.bf16.mxu1 %v10028_v36  ;;  %v10115_v34 = vld [vmem:[%s11079_s22 + $0x13e4] ss:$16 sps:$4 sm:$0xff]   ;;  %v10113_v36 = vld [vmem:[%s11079_s22 + $0x13e0] ss:$16 sps:$4 sm:$0xff]  }
 0x2b4   : > { %6831 = vmatmul.mubr.bf16.vlgmr.msra.gmra.mrb[0].mxu0 %v288_v38  ;;  %7487 = vmatmul.mubr.bf16.vlgmr.msra.gmra.mrb[0].mxu1 %v288_v38  ;;  %v258_v38 = vld [vmem:[#allocation2 + $0x90] sm:$0xff] }
 0x2b5   : > { %6840 = vmatpush1.bf16.msra.mxu0 %v10023_v39  ;;  %7496 = vmatpush1.bf16.msra.mxu1 %v10026_v40  ;;  %v10121_v39 = vld [vmem:[%s11079_s22 + $0x1404] ss:$16 sps:$4 sm:$0xff]   ;;  %v10124_v40 = vld [vmem:[%s11079_s22 + $0x140c] ss:$16 sps:$4 sm:$0xff]  }
 0x2b6   : > { %6841 = vmatprep.subr.bf16.mxu0 %v10031_v41  ;;  %7497 = vmatprep.subr.bf16.mxu1 %v10034_v42  ;;  %v290_v41 = vpack.c.bf16 %v258_v38, %v258_v38  ;;  %v261_v42 = vld [vmem:[#allocation2 + $0xa8] sm:$0xff]  ;;  %v10211_v38 = vld [vmem:[%s11079_s22 + $0x15e4] ss:$16 sps:$4 sm:$0xff]  }
 0x2b7   : > { %6871 = vmatprep.mubr.bf16.mxu0 %v291_v43  ;;  %7527 = vmatprep.mubr.bf16.mxu1 %v291_v43  ;;  %v10119_v43 = vld [vmem:[%s11079_s22 + $0x1400] ss:$16 sps:$4 sm:$0xff]  }
 0x2b9   : > { %6842 = vmatpush1.bf16.msra.mxu0 %v10029_v44  ;;  %7498 = vmatpush1.bf16.msra.mxu1 %v10032_v45  ;;  %v10122_v44 = vld [vmem:[%s11079_s22 + $0x1408] ss:$16 sps:$4 sm:$0xff]   ;;  %v10127_v45 = vld [vmem:[%s11079_s22 + $0x1424] ss:$16 sps:$4 sm:$0xff]  }
 0x2ba   : > { %6843 = vmatprep.subr.bf16.mxu0 %v10037_v46  ;;  %7499 = vmatprep.subr.bf16.mxu1 %v10040_v47  ;;  %v10130_v46 = vld [vmem:[%s11079_s22 + $0x142c] ss:$16 sps:$4 sm:$0xff]   ;;  %v293_v47 = vpack.c.bf16 %v261_v42, %v261_v42  ;;  %v260_v42 = vld [vmem:[#allocation2 + $0xa0] sm:$0xff] }
 0x2bd   : > { %6844 = vmatpush1.bf16.msra.mxu0 %v10035_v48  ;;  %7500 = vmatpush1.bf16.msra.mxu1 %v10038_v49  ;;  %v10125_v48 = vld [vmem:[%s11079_s22 + $0x1420] ss:$16 sps:$4 sm:$0xff]   ;;  %v10128_v49 = vld [vmem:[%s11079_s22 + $0x1428] ss:$16 sps:$4 sm:$0xff]  }
 0x2be   : > { %6845 = vmatprep.subr.bf16.mxu0 %v10043_v50  ;;  %7501 = vmatprep.subr.bf16.mxu1 %v10046_v51  ;;  %v10133_v50 = vld [vmem:[%s11079_s22 + $0x1444] ss:$16 sps:$4 sm:$0xff]   ;;  %v10136_v51 = vld [vmem:[%s11079_s22 + $0x144c] ss:$16 sps:$4 sm:$0xff]  }
 0x2c1   : > { %6846 = vmatpush1.bf16.msra.mxu0 %v10041_v52  ;;  %7502 = vmatpush1.bf16.msra.mxu1 %v10044_v53  ;;  %v10131_v52 = vld [vmem:[%s11079_s22 + $0x1440] ss:$16 sps:$4 sm:$0xff]   ;;  %v10134_v53 = vld [vmem:[%s11079_s22 + $0x1448] ss:$16 sps:$4 sm:$0xff]  }
 0x2c2   : > { %6847 = vmatprep.subr.bf16.mxu0 %v10049_v54  ;;  %7503 = vmatprep.subr.bf16.mxu1 %v10052_v55  ;;  %v10139_v54 = vld [vmem:[%s11079_s22 + $0x1464] ss:$16 sps:$4 sm:$0xff]   ;;  %v10142_v55 = vld [vmem:[%s11079_s22 + $0x146c] ss:$16 sps:$4 sm:$0xff]  }
 0x2c5   : > { %6848 = vmatpush1.bf16.msra.mxu0 %v10047_v56  ;;  %7504 = vmatpush1.bf16.msra.mxu1 %v10050_v57  ;;  %v10137_v56 = vld [vmem:[%s11079_s22 + $0x1460] ss:$16 sps:$4 sm:$0xff]   ;;  %v10140_v57 = vld [vmem:[%s11079_s22 + $0x1468] ss:$16 sps:$4 sm:$0xff]  }
 0x2c6   : > { %6849 = vmatprep.subr.bf16.mxu0 %v10055_v58  ;;  %7505 = vmatprep.subr.bf16.mxu1 %v10058_v59  ;;  %v10145_v58 = vld [vmem:[%s11079_s22 + $0x1484] ss:$16 sps:$4 sm:$0xff]   ;;  %v10148_v59 = vld [vmem:[%s11079_s22 + $0x148c] ss:$16 sps:$4 sm:$0xff]  }
 0x2c9   : > { %6850 = vmatpush1.bf16.msra.mxu0 %v10053_v60  ;;  %7506 = vmatpush1.bf16.msra.mxu1 %v10056_v61  ;;  %v10143_v60 = vld [vmem:[%s11079_s22 + $0x1480] ss:$16 sps:$4 sm:$0xff]   ;;  %v10146_v61 = vld [vmem:[%s11079_s22 + $0x1488] ss:$16 sps:$4 sm:$0xff]  }
 0x2ca   : > { %6851 = vmatprep.subr.bf16.mxu0 %v10061_v62  ;;  %7507 = vmatprep.subr.bf16.mxu1 %v10064_v63  ;;  %v10151_v62 = vld [vmem:[%s11079_s22 + $0x14a4] ss:$16 sps:$4 sm:$0xff]   ;;  %v10154_v63 = vld [vmem:[%s11079_s22 + $0x14ac] ss:$16 sps:$4 sm:$0xff]  }
 0x2cd   : > { %6852 = vmatpush1.bf16.msra.mxu0 %v10059_v0  ;;  %7508 = vmatpush1.bf16.msra.mxu1 %v10062_v1  ;;  %v10149_v0 = vld [vmem:[%s11079_s22 + $0x14a0] ss:$16 sps:$4 sm:$0xff]   ;;  %v10152_v1 = vld [vmem:[%s11079_s22 + $0x14a8] ss:$16 sps:$4 sm:$0xff]  }
 0x2ce   : > { %6853 = vmatprep.subr.bf16.mxu0 %v10067_v2  ;;  %7509 = vmatprep.subr.bf16.mxu1 %v10070_v3  ;;  %v10157_v2 = vld [vmem:[%s11079_s22 + $0x14c4] ss:$16 sps:$4 sm:$0xff]   ;;  %v10160_v3 = vld [vmem:[%s11079_s22 + $0x14cc] ss:$16 sps:$4 sm:$0xff]  }
 0x2d1   : > { %6854 = vmatpush1.bf16.msra.mxu0 %v10065_v4  ;;  %7510 = vmatpush1.bf16.msra.mxu1 %v10068_v5  ;;  %v10155_v4 = vld [vmem:[%s11079_s22 + $0x14c0] ss:$16 sps:$4 sm:$0xff]   ;;  %v10158_v5 = vld [vmem:[%s11079_s22 + $0x14c8] ss:$16 sps:$4 sm:$0xff]  }
 0x2d2   : > { %6855 = vmatprep.subr.bf16.mxu0 %v10073_v6  ;;  %7511 = vmatprep.subr.bf16.mxu1 %v10076_v7  ;;  %v10163_v6 = vld [vmem:[%s11079_s22 + $0x14e4] ss:$16 sps:$4 sm:$0xff]   ;;  %v10166_v7 = vld [vmem:[%s11079_s22 + $0x14ec] ss:$16 sps:$4 sm:$0xff]  }
 0x2d5   : > { %6856 = vmatpush1.bf16.msra.mxu0 %v10071_v8  ;;  %7512 = vmatpush1.bf16.msra.mxu1 %v10074_v9  ;;  %v10161_v8 = vld [vmem:[%s11079_s22 + $0x14e0] ss:$16 sps:$4 sm:$0xff]   ;;  %v10164_v9 = vld [vmem:[%s11079_s22 + $0x14e8] ss:$16 sps:$4 sm:$0xff]  }
 0x2d6   : > { %6857 = vmatprep.subr.bf16.mxu0 %v10079_v10  ;;  %7513 = vmatprep.subr.bf16.mxu1 %v10082_v11  ;;  %v10169_v10 = vld [vmem:[%s11079_s22 + $0x1504] ss:$16 sps:$4 sm:$0xff]   ;;  %v10172_v11 = vld [vmem:[%s11079_s22 + $0x150c] ss:$16 sps:$4 sm:$0xff]  }
 0x2d9   : > { %6858 = vmatpush1.bf16.msra.mxu0 %v10077_v12  ;;  %7514 = vmatpush1.bf16.msra.mxu1 %v10080_v13  ;;  %v10167_v12 = vld [vmem:[%s11079_s22 + $0x1500] ss:$16 sps:$4 sm:$0xff]   ;;  %v10170_v13 = vld [vmem:[%s11079_s22 + $0x1508] ss:$16 sps:$4 sm:$0xff]  }
 0x2da   : > { %6859 = vmatprep.subr.bf16.mxu0 %v10085_v14  ;;  %7515 = vmatprep.subr.bf16.mxu1 %v10088_v15  ;;  %v10175_v14 = vld [vmem:[%s11079_s22 + $0x1524] ss:$16 sps:$4 sm:$0xff]   ;;  %v10178_v15 = vld [vmem:[%s11079_s22 + $0x152c] ss:$16 sps:$4 sm:$0xff]  }
 0x2dd   : > { %6860 = vmatpush1.bf16.msra.mxu0 %v10083_v16  ;;  %7516 = vmatpush1.bf16.msra.mxu1 %v10086_v17  ;;  %v10173_v16 = vld [vmem:[%s11079_s22 + $0x1520] ss:$16 sps:$4 sm:$0xff]   ;;  %v10176_v17 = vld [vmem:[%s11079_s22 + $0x1528] ss:$16 sps:$4 sm:$0xff]  }
 0x2de   : > { %6861 = vmatprep.subr.bf16.mxu0 %v10091_v18  ;;  %7517 = vmatprep.subr.bf16.mxu1 %v10094_v19  ;;  %v10181_v18 = vld [vmem:[%s11079_s22 + $0x1544] ss:$16 sps:$4 sm:$0xff]   ;;  %v10184_v19 = vld [vmem:[%s11079_s22 + $0x154c] ss:$16 sps:$4 sm:$0xff]  }
 0x2e1   : > { %6862 = vmatpush1.bf16.msra.mxu0 %v10089_v20  ;;  %7518 = vmatpush1.bf16.msra.mxu1 %v10092_v21  ;;  %v10179_v20 = vld [vmem:[%s11079_s22 + $0x1540] ss:$16 sps:$4 sm:$0xff]   ;;  %v10182_v21 = vld [vmem:[%s11079_s22 + $0x1548] ss:$16 sps:$4 sm:$0xff]  }
 0x2e2   : > { %6863 = vmatprep.subr.bf16.mxu0 %v10097_v22  ;;  %7519 = vmatprep.subr.bf16.mxu1 %v10100_v23  ;;  %v10187_v22 = vld [vmem:[%s11079_s22 + $0x1564] ss:$16 sps:$4 sm:$0xff]   ;;  %v10190_v23 = vld [vmem:[%s11079_s22 + $0x156c] ss:$16 sps:$4 sm:$0xff]  }
 0x2e5   : > { %6864 = vmatpush1.bf16.msra.mxu0 %v10095_v24  ;;  %7520 = vmatpush1.bf16.msra.mxu1 %v10098_v25  ;;  %v10185_v24 = vld [vmem:[%s11079_s22 + $0x1560] ss:$16 sps:$4 sm:$0xff]   ;;  %v10188_v25 = vld [vmem:[%s11079_s22 + $0x1568] ss:$16 sps:$4 sm:$0xff]  }
 0x2e6   : > { %6865 = vmatprep.subr.bf16.mxu0 %v10103_v26  ;;  %7521 = vmatprep.subr.bf16.mxu1 %v10106_v27  ;;  %v10193_v26 = vld [vmem:[%s11079_s22 + $0x1584] ss:$16 sps:$4 sm:$0xff]   ;;  %v10196_v27 = vld [vmem:[%s11079_s22 + $0x158c] ss:$16 sps:$4 sm:$0xff]  }
 0x2e9   : > { %6866 = vmatpush1.bf16.msra.mxu0 %v10101_v28  ;;  %7522 = vmatpush1.bf16.msra.mxu1 %v10104_v29  ;;  %v10191_v28 = vld [vmem:[%s11079_s22 + $0x1580] ss:$16 sps:$4 sm:$0xff]   ;;  %v10194_v29 = vld [vmem:[%s11079_s22 + $0x1588] ss:$16 sps:$4 sm:$0xff]  }
 0x2ea   : > { %6867 = vmatprep.subr.bf16.mxu0 %v10109_v30  ;;  %7523 = vmatprep.subr.bf16.mxu1 %v10112_v31  ;;  %v10199_v30 = vld [vmem:[%s11079_s22 + $0x15a4] ss:$16 sps:$4 sm:$0xff]   ;;  %v10202_v31 = vld [vmem:[%s11079_s22 + $0x15ac] ss:$16 sps:$4 sm:$0xff]  }
 0x2ed   : > { %6868 = vmatpush1.bf16.msra.mxu0 %v10107_v32  ;;  %7524 = vmatpush1.bf16.msra.mxu1 %v10110_v33  ;;  %v10197_v32 = vld [vmem:[%s11079_s22 + $0x15a0] ss:$16 sps:$4 sm:$0xff]   ;;  %v10200_v33 = vld [vmem:[%s11079_s22 + $0x15a8] ss:$16 sps:$4 sm:$0xff]  }
 0x2ee   : > { %6869 = vmatprep.subr.bf16.mxu0 %v10115_v34  ;;  %7525 = vmatprep.subr.bf16.mxu1 %v10118_v35  ;;  %v10205_v34 = vld [vmem:[%s11079_s22 + $0x15c4] ss:$16 sps:$4 sm:$0xff]   ;;  %v10208_v35 = vld [vmem:[%s11079_s22 + $0x15cc] ss:$16 sps:$4 sm:$0xff]  }
 0x2f1   : > { %6870 = vmatpush1.bf16.msra.mxu0 %v10113_v36  ;;  %7526 = vmatpush1.bf16.msra.mxu1 %v10116_v37  ;;  %v10203_v36 = vld [vmem:[%s11079_s22 + $0x15c0] ss:$16 sps:$4 sm:$0xff]   ;;  %v10206_v37 = vld [vmem:[%s11079_s22 + $0x15c8] ss:$16 sps:$4 sm:$0xff]  }
 0x2f2   : > { %6880 = vmatprep.subr.bf16.mxu0 %v10121_v39  ;;  %7536 = vmatprep.subr.bf16.mxu1 %v10124_v40  ;;  %v10214_v39 = vld [vmem:[%s11079_s22 + $0x15ec] ss:$16 sps:$4 sm:$0xff]   ;;  %v10209_v40 = vld [vmem:[%s11079_s22 + $0x15e0] ss:$16 sps:$4 sm:$0xff]  }
 0x2f4   : > { %6872 = vmatmul.mubr.bf16.vlgmr.msra.gmra.mrb[0].mxu0 %v290_v41  ;;  %7528 = vmatmul.mubr.bf16.vlgmr.msra.gmra.mrb[0].mxu1 %v290_v41  ;;  %v10212_v41 = vld [vmem:[%s11079_s22 + $0x15e8] ss:$16 sps:$4 sm:$0xff]  }
 0x2f5   : > { %6881 = vmatpush1.bf16.msra.mxu0 %v10119_v43  ;;  %7537 = vmatpush1.bf16.msra.mxu1 %v10122_v44  ;;  %v10217_v43 = vld [vmem:[%s11079_s22 + $0x1604] ss:$16 sps:$4 sm:$0xff]   ;;  %v10220_v44 = vld [vmem:[%s11079_s22 + $0x160c] ss:$16 sps:$4 sm:$0xff]  }
 0x2f6   : > { %6882 = vmatprep.subr.bf16.mxu0 %v10127_v45  ;;  %7538 = vmatprep.subr.bf16.mxu1 %v10130_v46  ;;  %v292_v45 = vpack.c.bf16 %v260_v42, %v260_v42  ;;  %v263_v46 = vld [vmem:[#allocation2 + $0xb8] sm:$0xff]  ;;  %v10307_v42 = vld [vmem:[%s11079_s22 + $0x17e4] ss:$16 sps:$4 sm:$0xff]  }
 0x2f7   : > { %6912 = vmatprep.mubr.bf16.mxu0 %v293_v47  ;;  %7568 = vmatprep.mubr.bf16.mxu1 %v293_v47  ;;  %v10215_v47 = vld [vmem:[%s11079_s22 + $0x1600] ss:$16 sps:$4 sm:$0xff]  }
 0x2f9   : > { %6883 = vmatpush1.bf16.msra.mxu0 %v10125_v48  ;;  %7539 = vmatpush1.bf16.msra.mxu1 %v10128_v49  ;;  %v10218_v48 = vld [vmem:[%s11079_s22 + $0x1608] ss:$16 sps:$4 sm:$0xff]   ;;  %v10223_v49 = vld [vmem:[%s11079_s22 + $0x1624] ss:$16 sps:$4 sm:$0xff]  }
 0x2fa   : > { %6884 = vmatprep.subr.bf16.mxu0 %v10133_v50  ;;  %7540 = vmatprep.subr.bf16.mxu1 %v10136_v51  ;;  %v10226_v50 = vld [vmem:[%s11079_s22 + $0x162c] ss:$16 sps:$4 sm:$0xff]   ;;  %v295_v51 = vpack.c.bf16 %v263_v46, %v263_v46  ;;  %v262_v46 = vld [vmem:[#allocation2 + $0xb0] sm:$0xff] }
 0x2fd   : > { %6885 = vmatpush1.bf16.msra.mxu0 %v10131_v52  ;;  %7541 = vmatpush1.bf16.msra.mxu1 %v10134_v53  ;;  %v10221_v52 = vld [vmem:[%s11079_s22 + $0x1620] ss:$16 sps:$4 sm:$0xff]   ;;  %v10224_v53 = vld [vmem:[%s11079_s22 + $0x1628] ss:$16 sps:$4 sm:$0xff]  }
 0x2fe   : > { %6886 = vmatprep.subr.bf16.mxu0 %v10139_v54  ;;  %7542 = vmatprep.subr.bf16.mxu1 %v10142_v55  ;;  %v10229_v54 = vld [vmem:[%s11079_s22 + $0x1644] ss:$16 sps:$4 sm:$0xff]   ;;  %v10232_v55 = vld [vmem:[%s11079_s22 + $0x164c] ss:$16 sps:$4 sm:$0xff]  }
 0x301   : > { %6887 = vmatpush1.bf16.msra.mxu0 %v10137_v56  ;;  %7543 = vmatpush1.bf16.msra.mxu1 %v10140_v57  ;;  %v10227_v56 = vld [vmem:[%s11079_s22 + $0x1640] ss:$16 sps:$4 sm:$0xff]   ;;  %v10230_v57 = vld [vmem:[%s11079_s22 + $0x1648] ss:$16 sps:$4 sm:$0xff]  }
 0x302   : > { %6888 = vmatprep.subr.bf16.mxu0 %v10145_v58  ;;  %7544 = vmatprep.subr.bf16.mxu1 %v10148_v59  ;;  %v10235_v58 = vld [vmem:[%s11079_s22 + $0x1664] ss:$16 sps:$4 sm:$0xff]   ;;  %v10238_v59 = vld [vmem:[%s11079_s22 + $0x166c] ss:$16 sps:$4 sm:$0xff]  }
 0x305   : > { %6889 = vmatpush1.bf16.msra.mxu0 %v10143_v60  ;;  %7545 = vmatpush1.bf16.msra.mxu1 %v10146_v61  ;;  %v10233_v60 = vld [vmem:[%s11079_s22 + $0x1660] ss:$16 sps:$4 sm:$0xff]   ;;  %v10236_v61 = vld [vmem:[%s11079_s22 + $0x1668] ss:$16 sps:$4 sm:$0xff]  }
 0x306   : > { %6890 = vmatprep.subr.bf16.mxu0 %v10151_v62  ;;  %7546 = vmatprep.subr.bf16.mxu1 %v10154_v63  ;;  %v10241_v62 = vld [vmem:[%s11079_s22 + $0x1684] ss:$16 sps:$4 sm:$0xff]   ;;  %v10244_v63 = vld [vmem:[%s11079_s22 + $0x168c] ss:$16 sps:$4 sm:$0xff]  }
 0x309   : > { %6891 = vmatpush1.bf16.msra.mxu0 %v10149_v0  ;;  %7547 = vmatpush1.bf16.msra.mxu1 %v10152_v1  ;;  %v10239_v0 = vld [vmem:[%s11079_s22 + $0x1680] ss:$16 sps:$4 sm:$0xff]   ;;  %v10242_v1 = vld [vmem:[%s11079_s22 + $0x1688] ss:$16 sps:$4 sm:$0xff]  }
 0x30a   : > { %6892 = vmatprep.subr.bf16.mxu0 %v10157_v2  ;;  %7548 = vmatprep.subr.bf16.mxu1 %v10160_v3  ;;  %v10247_v2 = vld [vmem:[%s11079_s22 + $0x16a4] ss:$16 sps:$4 sm:$0xff]   ;;  %v10250_v3 = vld [vmem:[%s11079_s22 + $0x16ac] ss:$16 sps:$4 sm:$0xff]  }
 0x30d   : > { %6893 = vmatpush1.bf16.msra.mxu0 %v10155_v4  ;;  %7549 = vmatpush1.bf16.msra.mxu1 %v10158_v5  ;;  %v10245_v4 = vld [vmem:[%s11079_s22 + $0x16a0] ss:$16 sps:$4 sm:$0xff]   ;;  %v10248_v5 = vld [vmem:[%s11079_s22 + $0x16a8] ss:$16 sps:$4 sm:$0xff]  }
 0x30e   : > { %6894 = vmatprep.subr.bf16.mxu0 %v10163_v6  ;;  %7550 = vmatprep.subr.bf16.mxu1 %v10166_v7  ;;  %v10253_v6 = vld [vmem:[%s11079_s22 + $0x16c4] ss:$16 sps:$4 sm:$0xff]   ;;  %v10256_v7 = vld [vmem:[%s11079_s22 + $0x16cc] ss:$16 sps:$4 sm:$0xff]  }
 0x311   : > { %6895 = vmatpush1.bf16.msra.mxu0 %v10161_v8  ;;  %7551 = vmatpush1.bf16.msra.mxu1 %v10164_v9  ;;  %v10251_v8 = vld [vmem:[%s11079_s22 + $0x16c0] ss:$16 sps:$4 sm:$0xff]   ;;  %v10254_v9 = vld [vmem:[%s11079_s22 + $0x16c8] ss:$16 sps:$4 sm:$0xff]  }
 0x312   : > { %6896 = vmatprep.subr.bf16.mxu0 %v10169_v10  ;;  %7552 = vmatprep.subr.bf16.mxu1 %v10172_v11  ;;  %v10259_v10 = vld [vmem:[%s11079_s22 + $0x16e4] ss:$16 sps:$4 sm:$0xff]   ;;  %v10262_v11 = vld [vmem:[%s11079_s22 + $0x16ec] ss:$16 sps:$4 sm:$0xff]  }
 0x315   : > { %6897 = vmatpush1.bf16.msra.mxu0 %v10167_v12  ;;  %7553 = vmatpush1.bf16.msra.mxu1 %v10170_v13  ;;  %v10257_v12 = vld [vmem:[%s11079_s22 + $0x16e0] ss:$16 sps:$4 sm:$0xff]   ;;  %v10260_v13 = vld [vmem:[%s11079_s22 + $0x16e8] ss:$16 sps:$4 sm:$0xff]  }
 0x316   : > { %6898 = vmatprep.subr.bf16.mxu0 %v10175_v14  ;;  %7554 = vmatprep.subr.bf16.mxu1 %v10178_v15  ;;  %v10265_v14 = vld [vmem:[%s11079_s22 + $0x1704] ss:$16 sps:$4 sm:$0xff]   ;;  %v10268_v15 = vld [vmem:[%s11079_s22 + $0x170c] ss:$16 sps:$4 sm:$0xff]  }
 0x319   : > { %6899 = vmatpush1.bf16.msra.mxu0 %v10173_v16  ;;  %7555 = vmatpush1.bf16.msra.mxu1 %v10176_v17  ;;  %v10263_v16 = vld [vmem:[%s11079_s22 + $0x1700] ss:$16 sps:$4 sm:$0xff]   ;;  %v10266_v17 = vld [vmem:[%s11079_s22 + $0x1708] ss:$16 sps:$4 sm:$0xff]  }
 0x31a   : > { %6900 = vmatprep.subr.bf16.mxu0 %v10181_v18  ;;  %7556 = vmatprep.subr.bf16.mxu1 %v10184_v19  ;;  %v10271_v18 = vld [vmem:[%s11079_s22 + $0x1724] ss:$16 sps:$4 sm:$0xff]   ;;  %v10274_v19 = vld [vmem:[%s11079_s22 + $0x172c] ss:$16 sps:$4 sm:$0xff]  }
 0x31d   : > { %6901 = vmatpush1.bf16.msra.mxu0 %v10179_v20  ;;  %7557 = vmatpush1.bf16.msra.mxu1 %v10182_v21  ;;  %v10269_v20 = vld [vmem:[%s11079_s22 + $0x1720] ss:$16 sps:$4 sm:$0xff]   ;;  %v10272_v21 = vld [vmem:[%s11079_s22 + $0x1728] ss:$16 sps:$4 sm:$0xff]  }
 0x31e   : > { %6902 = vmatprep.subr.bf16.mxu0 %v10187_v22  ;;  %7558 = vmatprep.subr.bf16.mxu1 %v10190_v23  ;;  %v10277_v22 = vld [vmem:[%s11079_s22 + $0x1744] ss:$16 sps:$4 sm:$0xff]   ;;  %v10280_v23 = vld [vmem:[%s11079_s22 + $0x174c] ss:$16 sps:$4 sm:$0xff]  }
 0x321   : > { %6903 = vmatpush1.bf16.msra.mxu0 %v10185_v24  ;;  %7559 = vmatpush1.bf16.msra.mxu1 %v10188_v25  ;;  %v10275_v24 = vld [vmem:[%s11079_s22 + $0x1740] ss:$16 sps:$4 sm:$0xff]   ;;  %v10278_v25 = vld [vmem:[%s11079_s22 + $0x1748] ss:$16 sps:$4 sm:$0xff]  }
 0x322   : > { %6904 = vmatprep.subr.bf16.mxu0 %v10193_v26  ;;  %7560 = vmatprep.subr.bf16.mxu1 %v10196_v27  ;;  %v10283_v26 = vld [vmem:[%s11079_s22 + $0x1764] ss:$16 sps:$4 sm:$0xff]   ;;  %v10286_v27 = vld [vmem:[%s11079_s22 + $0x176c] ss:$16 sps:$4 sm:$0xff]  }
 0x325   : > { %6905 = vmatpush1.bf16.msra.mxu0 %v10191_v28  ;;  %7561 = vmatpush1.bf16.msra.mxu1 %v10194_v29  ;;  %v10281_v28 = vld [vmem:[%s11079_s22 + $0x1760] ss:$16 sps:$4 sm:$0xff]   ;;  %v10284_v29 = vld [vmem:[%s11079_s22 + $0x1768] ss:$16 sps:$4 sm:$0xff]  }
 0x326   : > { %6906 = vmatprep.subr.bf16.mxu0 %v10199_v30  ;;  %7562 = vmatprep.subr.bf16.mxu1 %v10202_v31  ;;  %v10289_v30 = vld [vmem:[%s11079_s22 + $0x1784] ss:$16 sps:$4 sm:$0xff]   ;;  %v10292_v31 = vld [vmem:[%s11079_s22 + $0x178c] ss:$16 sps:$4 sm:$0xff]  }
 0x329   : > { %6907 = vmatpush1.bf16.msra.mxu0 %v10197_v32  ;;  %7563 = vmatpush1.bf16.msra.mxu1 %v10200_v33  ;;  %v10287_v32 = vld [vmem:[%s11079_s22 + $0x1780] ss:$16 sps:$4 sm:$0xff]   ;;  %v10290_v33 = vld [vmem:[%s11079_s22 + $0x1788] ss:$16 sps:$4 sm:$0xff]  }
 0x32a   : > { %6908 = vmatprep.subr.bf16.mxu0 %v10205_v34  ;;  %7564 = vmatprep.subr.bf16.mxu1 %v10208_v35  ;;  %v10295_v34 = vld [vmem:[%s11079_s22 + $0x17a4] ss:$16 sps:$4 sm:$0xff]   ;;  %v10298_v35 = vld [vmem:[%s11079_s22 + $0x17ac] ss:$16 sps:$4 sm:$0xff]  }
 0x32d   : > { %6909 = vmatpush1.bf16.msra.mxu0 %v10203_v36  ;;  %7565 = vmatpush1.bf16.msra.mxu1 %v10206_v37  ;;  %v10293_v36 = vld [vmem:[%s11079_s22 + $0x17a0] ss:$16 sps:$4 sm:$0xff]   ;;  %v10296_v37 = vld [vmem:[%s11079_s22 + $0x17a8] ss:$16 sps:$4 sm:$0xff]  }
 0x32e   : > { %6910 = vmatprep.subr.bf16.mxu0 %v10211_v38  ;;  %7566 = vmatprep.subr.bf16.mxu1 %v10214_v39  ;;  %v10301_v38 = vld [vmem:[%s11079_s22 + $0x17c4] ss:$16 sps:$4 sm:$0xff]   ;;  %v10304_v39 = vld [vmem:[%s11079_s22 + $0x17cc] ss:$16 sps:$4 sm:$0xff]  }
 0x331   : > { %6911 = vmatpush1.bf16.msra.mxu0 %v10209_v40  ;;  %7567 = vmatpush1.bf16.msra.mxu1 %v10212_v41  ;;  %v10299_v40 = vld [vmem:[%s11079_s22 + $0x17c0] ss:$16 sps:$4 sm:$0xff]   ;;  %v10302_v41 = vld [vmem:[%s11079_s22 + $0x17c8] ss:$16 sps:$4 sm:$0xff]  }
 0x332   : > { %6921 = vmatprep.subr.bf16.mxu0 %v10217_v43  ;;  %7577 = vmatprep.subr.bf16.mxu1 %v10220_v44  ;;  %v10310_v43 = vld [vmem:[%s11079_s22 + $0x17ec] ss:$16 sps:$4 sm:$0xff]   ;;  %v10305_v44 = vld [vmem:[%s11079_s22 + $0x17e0] ss:$16 sps:$4 sm:$0xff]  }
 0x334   : > { %6913 = vmatmul.mubr.bf16.vlgmr.msra.gmra.mrb[0].mxu0 %v292_v45  ;;  %7569 = vmatmul.mubr.bf16.vlgmr.msra.gmra.mrb[0].mxu1 %v292_v45  ;;  %v10308_v45 = vld [vmem:[%s11079_s22 + $0x17e8] ss:$16 sps:$4 sm:$0xff]  }
 0x335   : > { %6922 = vmatpush1.bf16.msra.mxu0 %v10215_v47  ;;  %7578 = vmatpush1.bf16.msra.mxu1 %v10218_v48  ;;  %v10313_v47 = vld [vmem:[%s11079_s22 + $0x1804] ss:$16 sps:$4 sm:$0xff]   ;;  %v10316_v48 = vld [vmem:[%s11079_s22 + $0x180c] ss:$16 sps:$4 sm:$0xff]  }
 0x336   : > { %6923 = vmatprep.subr.bf16.mxu0 %v10223_v49  ;;  %7579 = vmatprep.subr.bf16.mxu1 %v10226_v50  ;;  %v294_v49 = vpack.c.bf16 %v262_v46, %v262_v46  ;;  %v265_v50 = vld [vmem:[#allocation2 + $0xc8] sm:$0xff]  ;;  %v10403_v46 = vld [vmem:[%s11079_s22 + $0x19e4] ss:$16 sps:$4 sm:$0xff]  }
 0x337   : > { %6953 = vmatprep.mubr.bf16.mxu0 %v295_v51  ;;  %7609 = vmatprep.mubr.bf16.mxu1 %v295_v51  ;;  %v10311_v51 = vld [vmem:[%s11079_s22 + $0x1800] ss:$16 sps:$4 sm:$0xff]  }
 0x339   : > { %6924 = vmatpush1.bf16.msra.mxu0 %v10221_v52  ;;  %7580 = vmatpush1.bf16.msra.mxu1 %v10224_v53  ;;  %v10314_v52 = vld [vmem:[%s11079_s22 + $0x1808] ss:$16 sps:$4 sm:$0xff]   ;;  %v10319_v53 = vld [vmem:[%s11079_s22 + $0x1824] ss:$16 sps:$4 sm:$0xff]  }
 0x33a   : > { %6925 = vmatprep.subr.bf16.mxu0 %v10229_v54  ;;  %7581 = vmatprep.subr.bf16.mxu1 %v10232_v55  ;;  %v10322_v54 = vld [vmem:[%s11079_s22 + $0x182c] ss:$16 sps:$4 sm:$0xff]   ;;  %v297_v55 = vpack.c.bf16 %v265_v50, %v265_v50  ;;  %v264_v50 = vld [vmem:[#allocation2 + $0xc0] sm:$0xff] }
 0x33d   : > { %6926 = vmatpush1.bf16.msra.mxu0 %v10227_v56  ;;  %7582 = vmatpush1.bf16.msra.mxu1 %v10230_v57  ;;  %v10317_v56 = vld [vmem:[%s11079_s22 + $0x1820] ss:$16 sps:$4 sm:$0xff]   ;;  %v10320_v57 = vld [vmem:[%s11079_s22 + $0x1828] ss:$16 sps:$4 sm:$0xff]  }
 0x33e   : > { %6927 = vmatprep.subr.bf16.mxu0 %v10235_v58  ;;  %7583 = vmatprep.subr.bf16.mxu1 %v10238_v59  ;;  %v10325_v58 = vld [vmem:[%s11079_s22 + $0x1844] ss:$16 sps:$4 sm:$0xff]   ;;  %v10328_v59 = vld [vmem:[%s11079_s22 + $0x184c] ss:$16 sps:$4 sm:$0xff]  }
 0x341   : > { %6928 = vmatpush1.bf16.msra.mxu0 %v10233_v60  ;;  %7584 = vmatpush1.bf16.msra.mxu1 %v10236_v61  ;;  %v10323_v60 = vld [vmem:[%s11079_s22 + $0x1840] ss:$16 sps:$4 sm:$0xff]   ;;  %v10326_v61 = vld [vmem:[%s11079_s22 + $0x1848] ss:$16 sps:$4 sm:$0xff]  }
 0x342   : > { %6929 = vmatprep.subr.bf16.mxu0 %v10241_v62  ;;  %7585 = vmatprep.subr.bf16.mxu1 %v10244_v63  ;;  %v10331_v62 = vld [vmem:[%s11079_s22 + $0x1864] ss:$16 sps:$4 sm:$0xff]   ;;  %v10334_v63 = vld [vmem:[%s11079_s22 + $0x186c] ss:$16 sps:$4 sm:$0xff]  }
 0x345   : > { %6930 = vmatpush1.bf16.msra.mxu0 %v10239_v0  ;;  %7586 = vmatpush1.bf16.msra.mxu1 %v10242_v1  ;;  %v10329_v0 = vld [vmem:[%s11079_s22 + $0x1860] ss:$16 sps:$4 sm:$0xff]   ;;  %v10332_v1 = vld [vmem:[%s11079_s22 + $0x1868] ss:$16 sps:$4 sm:$0xff]  }
 0x346   : > { %6931 = vmatprep.subr.bf16.mxu0 %v10247_v2  ;;  %7587 = vmatprep.subr.bf16.mxu1 %v10250_v3  ;;  %v10337_v2 = vld [vmem:[%s11079_s22 + $0x1884] ss:$16 sps:$4 sm:$0xff]   ;;  %v10340_v3 = vld [vmem:[%s11079_s22 + $0x188c] ss:$16 sps:$4 sm:$0xff]  }
 0x349   : > { %6932 = vmatpush1.bf16.msra.mxu0 %v10245_v4  ;;  %7588 = vmatpush1.bf16.msra.mxu1 %v10248_v5  ;;  %v10335_v4 = vld [vmem:[%s11079_s22 + $0x1880] ss:$16 sps:$4 sm:$0xff]   ;;  %v10338_v5 = vld [vmem:[%s11079_s22 + $0x1888] ss:$16 sps:$4 sm:$0xff]  }
 0x34a   : > { %6933 = vmatprep.subr.bf16.mxu0 %v10253_v6  ;;  %7589 = vmatprep.subr.bf16.mxu1 %v10256_v7  ;;  %v10343_v6 = vld [vmem:[%s11079_s22 + $0x18a4] ss:$16 sps:$4 sm:$0xff]   ;;  %v10346_v7 = vld [vmem:[%s11079_s22 + $0x18ac] ss:$16 sps:$4 sm:$0xff]  }
 0x34d   : > { %6934 = vmatpush1.bf16.msra.mxu0 %v10251_v8  ;;  %7590 = vmatpush1.bf16.msra.mxu1 %v10254_v9  ;;  %v10341_v8 = vld [vmem:[%s11079_s22 + $0x18a0] ss:$16 sps:$4 sm:$0xff]   ;;  %v10344_v9 = vld [vmem:[%s11079_s22 + $0x18a8] ss:$16 sps:$4 sm:$0xff]  }
 0x34e   : > { %6935 = vmatprep.subr.bf16.mxu0 %v10259_v10  ;;  %7591 = vmatprep.subr.bf16.mxu1 %v10262_v11  ;;  %v10349_v10 = vld [vmem:[%s11079_s22 + $0x18c4] ss:$16 sps:$4 sm:$0xff]   ;;  %v10352_v11 = vld [vmem:[%s11079_s22 + $0x18cc] ss:$16 sps:$4 sm:$0xff]  }
 0x351   : > { %6936 = vmatpush1.bf16.msra.mxu0 %v10257_v12  ;;  %7592 = vmatpush1.bf16.msra.mxu1 %v10260_v13  ;;  %v10347_v12 = vld [vmem:[%s11079_s22 + $0x18c0] ss:$16 sps:$4 sm:$0xff]   ;;  %v10350_v13 = vld [vmem:[%s11079_s22 + $0x18c8] ss:$16 sps:$4 sm:$0xff]  }
 0x352   : > { %6937 = vmatprep.subr.bf16.mxu0 %v10265_v14  ;;  %7593 = vmatprep.subr.bf16.mxu1 %v10268_v15  ;;  %v10355_v14 = vld [vmem:[%s11079_s22 + $0x18e4] ss:$16 sps:$4 sm:$0xff]   ;;  %v10358_v15 = vld [vmem:[%s11079_s22 + $0x18ec] ss:$16 sps:$4 sm:$0xff]  }
 0x355   : > { %6938 = vmatpush1.bf16.msra.mxu0 %v10263_v16  ;;  %7594 = vmatpush1.bf16.msra.mxu1 %v10266_v17  ;;  %v10353_v16 = vld [vmem:[%s11079_s22 + $0x18e0] ss:$16 sps:$4 sm:$0xff]   ;;  %v10356_v17 = vld [vmem:[%s11079_s22 + $0x18e8] ss:$16 sps:$4 sm:$0xff]  }
 0x356   : > { %6939 = vmatprep.subr.bf16.mxu0 %v10271_v18  ;;  %7595 = vmatprep.subr.bf16.mxu1 %v10274_v19  ;;  %v10361_v18 = vld [vmem:[%s11079_s22 + $0x1904] ss:$16 sps:$4 sm:$0xff]   ;;  %v10364_v19 = vld [vmem:[%s11079_s22 + $0x190c] ss:$16 sps:$4 sm:$0xff]  }
 0x359   : > { %6940 = vmatpush1.bf16.msra.mxu0 %v10269_v20  ;;  %7596 = vmatpush1.bf16.msra.mxu1 %v10272_v21  ;;  %v10359_v20 = vld [vmem:[%s11079_s22 + $0x1900] ss:$16 sps:$4 sm:$0xff]   ;;  %v10362_v21 = vld [vmem:[%s11079_s22 + $0x1908] ss:$16 sps:$4 sm:$0xff]  }
 0x35a   : > { %6941 = vmatprep.subr.bf16.mxu0 %v10277_v22  ;;  %7597 = vmatprep.subr.bf16.mxu1 %v10280_v23  ;;  %v10367_v22 = vld [vmem:[%s11079_s22 + $0x1924] ss:$16 sps:$4 sm:$0xff]   ;;  %v10370_v23 = vld [vmem:[%s11079_s22 + $0x192c] ss:$16 sps:$4 sm:$0xff]  }
 0x35d   : > { %6942 = vmatpush1.bf16.msra.mxu0 %v10275_v24  ;;  %7598 = vmatpush1.bf16.msra.mxu1 %v10278_v25  ;;  %v10365_v24 = vld [vmem:[%s11079_s22 + $0x1920] ss:$16 sps:$4 sm:$0xff]   ;;  %v10368_v25 = vld [vmem:[%s11079_s22 + $0x1928] ss:$16 sps:$4 sm:$0xff]  }
 0x35e   : > { %6943 = vmatprep.subr.bf16.mxu0 %v10283_v26  ;;  %7599 = vmatprep.subr.bf16.mxu1 %v10286_v27  ;;  %v10373_v26 = vld [vmem:[%s11079_s22 + $0x1944] ss:$16 sps:$4 sm:$0xff]   ;;  %v10376_v27 = vld [vmem:[%s11079_s22 + $0x194c] ss:$16 sps:$4 sm:$0xff]  }
 0x361   : > { %6944 = vmatpush1.bf16.msra.mxu0 %v10281_v28  ;;  %7600 = vmatpush1.bf16.msra.mxu1 %v10284_v29  ;;  %v10371_v28 = vld [vmem:[%s11079_s22 + $0x1940] ss:$16 sps:$4 sm:$0xff]   ;;  %v10374_v29 = vld [vmem:[%s11079_s22 + $0x1948] ss:$16 sps:$4 sm:$0xff]  }
 0x362   : > { %6945 = vmatprep.subr.bf16.mxu0 %v10289_v30  ;;  %7601 = vmatprep.subr.bf16.mxu1 %v10292_v31  ;;  %v10379_v30 = vld [vmem:[%s11079_s22 + $0x1964] ss:$16 sps:$4 sm:$0xff]   ;;  %v10382_v31 = vld [vmem:[%s11079_s22 + $0x196c] ss:$16 sps:$4 sm:$0xff]  }
 0x365   : > { %6946 = vmatpush1.bf16.msra.mxu0 %v10287_v32  ;;  %7602 = vmatpush1.bf16.msra.mxu1 %v10290_v33  ;;  %v10377_v32 = vld [vmem:[%s11079_s22 + $0x1960] ss:$16 sps:$4 sm:$0xff]   ;;  %v10380_v33 = vld [vmem:[%s11079_s22 + $0x1968] ss:$16 sps:$4 sm:$0xff]  }
 0x366   : > { %6947 = vmatprep.subr.bf16.mxu0 %v10295_v34  ;;  %7603 = vmatprep.subr.bf16.mxu1 %v10298_v35  ;;  %v10385_v34 = vld [vmem:[%s11079_s22 + $0x1984] ss:$16 sps:$4 sm:$0xff]   ;;  %v10388_v35 = vld [vmem:[%s11079_s22 + $0x198c] ss:$16 sps:$4 sm:$0xff]  }
 0x369   : > { %6948 = vmatpush1.bf16.msra.mxu0 %v10293_v36  ;;  %7604 = vmatpush1.bf16.msra.mxu1 %v10296_v37  ;;  %v10383_v36 = vld [vmem:[%s11079_s22 + $0x1980] ss:$16 sps:$4 sm:$0xff]   ;;  %v10386_v37 = vld [vmem:[%s11079_s22 + $0x1988] ss:$16 sps:$4 sm:$0xff]  }
 0x36a   : > { %6949 = vmatprep.subr.bf16.mxu0 %v10301_v38  ;;  %7605 = vmatprep.subr.bf16.mxu1 %v10304_v39  ;;  %v10391_v38 = vld [vmem:[%s11079_s22 + $0x19a4] ss:$16 sps:$4 sm:$0xff]   ;;  %v10394_v39 = vld [vmem:[%s11079_s22 + $0x19ac] ss:$16 sps:$4 sm:$0xff]  }
 0x36d   : > { %6950 = vmatpush1.bf16.msra.mxu0 %v10299_v40  ;;  %7606 = vmatpush1.bf16.msra.mxu1 %v10302_v41  ;;  %v10389_v40 = vld [vmem:[%s11079_s22 + $0x19a0] ss:$16 sps:$4 sm:$0xff]   ;;  %v10392_v41 = vld [vmem:[%s11079_s22 + $0x19a8] ss:$16 sps:$4 sm:$0xff]  }
 0x36e   : > { %6951 = vmatprep.subr.bf16.mxu0 %v10307_v42  ;;  %7607 = vmatprep.subr.bf16.mxu1 %v10310_v43  ;;  %v10397_v42 = vld [vmem:[%s11079_s22 + $0x19c4] ss:$16 sps:$4 sm:$0xff]   ;;  %v10400_v43 = vld [vmem:[%s11079_s22 + $0x19cc] ss:$16 sps:$4 sm:$0xff]  }
 0x371   : > { %6952 = vmatpush1.bf16.msra.mxu0 %v10305_v44  ;;  %7608 = vmatpush1.bf16.msra.mxu1 %v10308_v45  ;;  %v10395_v44 = vld [vmem:[%s11079_s22 + $0x19c0] ss:$16 sps:$4 sm:$0xff]   ;;  %v10398_v45 = vld [vmem:[%s11079_s22 + $0x19c8] ss:$16 sps:$4 sm:$0xff]  }
 0x372   : > { %6962 = vmatprep.subr.bf16.mxu0 %v10313_v47  ;;  %7618 = vmatprep.subr.bf16.mxu1 %v10316_v48  ;;  %v10406_v47 = vld [vmem:[%s11079_s22 + $0x19ec] ss:$16 sps:$4 sm:$0xff]   ;;  %v10401_v48 = vld [vmem:[%s11079_s22 + $0x19e0] ss:$16 sps:$4 sm:$0xff]  }
 0x374   : > { %6954 = vmatmul.mubr.bf16.vlgmr.msra.gmra.mrb[0].mxu0 %v294_v49  ;;  %7610 = vmatmul.mubr.bf16.vlgmr.msra.gmra.mrb[0].mxu1 %v294_v49  ;;  %v10404_v49 = vld [vmem:[%s11079_s22 + $0x19e8] ss:$16 sps:$4 sm:$0xff]  }
 0x375   : > { %6963 = vmatpush1.bf16.msra.mxu0 %v10311_v51  ;;  %7619 = vmatpush1.bf16.msra.mxu1 %v10314_v52  ;;  %v10409_v51 = vld [vmem:[%s11079_s22 + $0x1a04] ss:$16 sps:$4 sm:$0xff]   ;;  %v10412_v52 = vld [vmem:[%s11079_s22 + $0x1a0c] ss:$16 sps:$4 sm:$0xff]  }
 0x376   : > { %6964 = vmatprep.subr.bf16.mxu0 %v10319_v53  ;;  %7620 = vmatprep.subr.bf16.mxu1 %v10322_v54  ;;  %v296_v53 = vpack.c.bf16 %v264_v50, %v264_v50  ;;  %v267_v54 = vld [vmem:[#allocation2 + $0xd8] sm:$0xff]  ;;  %v10499_v50 = vld [vmem:[%s11079_s22 + $0x1be4] ss:$16 sps:$4 sm:$0xff]  }
 0x377   : > { %6994 = vmatprep.mubr.bf16.mxu0 %v297_v55  ;;  %7650 = vmatprep.mubr.bf16.mxu1 %v297_v55  ;;  %v10407_v55 = vld [vmem:[%s11079_s22 + $0x1a00] ss:$16 sps:$4 sm:$0xff]  }
 0x379   : > { %6965 = vmatpush1.bf16.msra.mxu0 %v10317_v56  ;;  %7621 = vmatpush1.bf16.msra.mxu1 %v10320_v57  ;;  %v10410_v56 = vld [vmem:[%s11079_s22 + $0x1a08] ss:$16 sps:$4 sm:$0xff]   ;;  %v10415_v57 = vld [vmem:[%s11079_s22 + $0x1a24] ss:$16 sps:$4 sm:$0xff]  }
 0x37a   : > { %6966 = vmatprep.subr.bf16.mxu0 %v10325_v58  ;;  %7622 = vmatprep.subr.bf16.mxu1 %v10328_v59  ;;  %v10418_v58 = vld [vmem:[%s11079_s22 + $0x1a2c] ss:$16 sps:$4 sm:$0xff]   ;;  %v299_v59 = vpack.c.bf16 %v267_v54, %v267_v54  ;;  %v266_v54 = vld [vmem:[#allocation2 + $0xd0] sm:$0xff] }
 0x37d   : > { %6967 = vmatpush1.bf16.msra.mxu0 %v10323_v60  ;;  %7623 = vmatpush1.bf16.msra.mxu1 %v10326_v61  ;;  %v10413_v60 = vld [vmem:[%s11079_s22 + $0x1a20] ss:$16 sps:$4 sm:$0xff]   ;;  %v10416_v61 = vld [vmem:[%s11079_s22 + $0x1a28] ss:$16 sps:$4 sm:$0xff]  }
 0x37e   : > { %6968 = vmatprep.subr.bf16.mxu0 %v10331_v62  ;;  %7624 = vmatprep.subr.bf16.mxu1 %v10334_v63  ;;  %v10421_v62 = vld [vmem:[%s11079_s22 + $0x1a44] ss:$16 sps:$4 sm:$0xff]   ;;  %v10424_v63 = vld [vmem:[%s11079_s22 + $0x1a4c] ss:$16 sps:$4 sm:$0xff]  }
 0x381   : > { %6969 = vmatpush1.bf16.msra.mxu0 %v10329_v0  ;;  %7625 = vmatpush1.bf16.msra.mxu1 %v10332_v1  ;;  %v10419_v0 = vld [vmem:[%s11079_s22 + $0x1a40] ss:$16 sps:$4 sm:$0xff]   ;;  %v10422_v1 = vld [vmem:[%s11079_s22 + $0x1a48] ss:$16 sps:$4 sm:$0xff]  }
 0x382   : > { %6970 = vmatprep.subr.bf16.mxu0 %v10337_v2  ;;  %7626 = vmatprep.subr.bf16.mxu1 %v10340_v3  ;;  %v10427_v2 = vld [vmem:[%s11079_s22 + $0x1a64] ss:$16 sps:$4 sm:$0xff]   ;;  %v10430_v3 = vld [vmem:[%s11079_s22 + $0x1a6c] ss:$16 sps:$4 sm:$0xff]  }
 0x385   : > { %6971 = vmatpush1.bf16.msra.mxu0 %v10335_v4  ;;  %7627 = vmatpush1.bf16.msra.mxu1 %v10338_v5  ;;  %v10425_v4 = vld [vmem:[%s11079_s22 + $0x1a60] ss:$16 sps:$4 sm:$0xff]   ;;  %v10428_v5 = vld [vmem:[%s11079_s22 + $0x1a68] ss:$16 sps:$4 sm:$0xff]  }
 0x386   : > { %6972 = vmatprep.subr.bf16.mxu0 %v10343_v6  ;;  %7628 = vmatprep.subr.bf16.mxu1 %v10346_v7  ;;  %v10433_v6 = vld [vmem:[%s11079_s22 + $0x1a84] ss:$16 sps:$4 sm:$0xff]   ;;  %v10436_v7 = vld [vmem:[%s11079_s22 + $0x1a8c] ss:$16 sps:$4 sm:$0xff]  }
 0x389   : > { %6973 = vmatpush1.bf16.msra.mxu0 %v10341_v8  ;;  %7629 = vmatpush1.bf16.msra.mxu1 %v10344_v9  ;;  %v10431_v8 = vld [vmem:[%s11079_s22 + $0x1a80] ss:$16 sps:$4 sm:$0xff]   ;;  %v10434_v9 = vld [vmem:[%s11079_s22 + $0x1a88] ss:$16 sps:$4 sm:$0xff]  }
 0x38a   : > { %6974 = vmatprep.subr.bf16.mxu0 %v10349_v10  ;;  %7630 = vmatprep.subr.bf16.mxu1 %v10352_v11  ;;  %v10439_v10 = vld [vmem:[%s11079_s22 + $0x1aa4] ss:$16 sps:$4 sm:$0xff]   ;;  %v10442_v11 = vld [vmem:[%s11079_s22 + $0x1aac] ss:$16 sps:$4 sm:$0xff]  }
 0x38d   : > { %6975 = vmatpush1.bf16.msra.mxu0 %v10347_v12  ;;  %7631 = vmatpush1.bf16.msra.mxu1 %v10350_v13  ;;  %v10437_v12 = vld [vmem:[%s11079_s22 + $0x1aa0] ss:$16 sps:$4 sm:$0xff]   ;;  %v10440_v13 = vld [vmem:[%s11079_s22 + $0x1aa8] ss:$16 sps:$4 sm:$0xff]  }
 0x38e   : > { %6976 = vmatprep.subr.bf16.mxu0 %v10355_v14  ;;  %7632 = vmatprep.subr.bf16.mxu1 %v10358_v15  ;;  %v10445_v14 = vld [vmem:[%s11079_s22 + $0x1ac4] ss:$16 sps:$4 sm:$0xff]   ;;  %v10448_v15 = vld [vmem:[%s11079_s22 + $0x1acc] ss:$16 sps:$4 sm:$0xff]  }
 0x391   : > { %6977 = vmatpush1.bf16.msra.mxu0 %v10353_v16  ;;  %7633 = vmatpush1.bf16.msra.mxu1 %v10356_v17  ;;  %v10443_v16 = vld [vmem:[%s11079_s22 + $0x1ac0] ss:$16 sps:$4 sm:$0xff]   ;;  %v10446_v17 = vld [vmem:[%s11079_s22 + $0x1ac8] ss:$16 sps:$4 sm:$0xff]  }
 0x392   : > { %6978 = vmatprep.subr.bf16.mxu0 %v10361_v18  ;;  %7634 = vmatprep.subr.bf16.mxu1 %v10364_v19  ;;  %v10451_v18 = vld [vmem:[%s11079_s22 + $0x1ae4] ss:$16 sps:$4 sm:$0xff]   ;;  %v10454_v19 = vld [vmem:[%s11079_s22 + $0x1aec] ss:$16 sps:$4 sm:$0xff]  }
 0x395   : > { %6979 = vmatpush1.bf16.msra.mxu0 %v10359_v20  ;;  %7635 = vmatpush1.bf16.msra.mxu1 %v10362_v21  ;;  %v10449_v20 = vld [vmem:[%s11079_s22 + $0x1ae0] ss:$16 sps:$4 sm:$0xff]   ;;  %v10452_v21 = vld [vmem:[%s11079_s22 + $0x1ae8] ss:$16 sps:$4 sm:$0xff]  }
 0x396   : > { %6980 = vmatprep.subr.bf16.mxu0 %v10367_v22  ;;  %7636 = vmatprep.subr.bf16.mxu1 %v10370_v23  ;;  %v10457_v22 = vld [vmem:[%s11079_s22 + $0x1b04] ss:$16 sps:$4 sm:$0xff]   ;;  %v10460_v23 = vld [vmem:[%s11079_s22 + $0x1b0c] ss:$16 sps:$4 sm:$0xff]  }
 0x399   : > { %6981 = vmatpush1.bf16.msra.mxu0 %v10365_v24  ;;  %7637 = vmatpush1.bf16.msra.mxu1 %v10368_v25  ;;  %v10455_v24 = vld [vmem:[%s11079_s22 + $0x1b00] ss:$16 sps:$4 sm:$0xff]   ;;  %v10458_v25 = vld [vmem:[%s11079_s22 + $0x1b08] ss:$16 sps:$4 sm:$0xff]  }
 0x39a   : > { %6982 = vmatprep.subr.bf16.mxu0 %v10373_v26  ;;  %7638 = vmatprep.subr.bf16.mxu1 %v10376_v27  ;;  %v10463_v26 = vld [vmem:[%s11079_s22 + $0x1b24] ss:$16 sps:$4 sm:$0xff]   ;;  %v10466_v27 = vld [vmem:[%s11079_s22 + $0x1b2c] ss:$16 sps:$4 sm:$0xff]  }
 0x39d   : > { %6983 = vmatpush1.bf16.msra.mxu0 %v10371_v28  ;;  %7639 = vmatpush1.bf16.msra.mxu1 %v10374_v29  ;;  %v10461_v28 = vld [vmem:[%s11079_s22 + $0x1b20] ss:$16 sps:$4 sm:$0xff]   ;;  %v10464_v29 = vld [vmem:[%s11079_s22 + $0x1b28] ss:$16 sps:$4 sm:$0xff]  }
 0x39e   : > { %6984 = vmatprep.subr.bf16.mxu0 %v10379_v30  ;;  %7640 = vmatprep.subr.bf16.mxu1 %v10382_v31  ;;  %v10469_v30 = vld [vmem:[%s11079_s22 + $0x1b44] ss:$16 sps:$4 sm:$0xff]   ;;  %v10472_v31 = vld [vmem:[%s11079_s22 + $0x1b4c] ss:$16 sps:$4 sm:$0xff]  }
 0x3a1   : > { %6985 = vmatpush1.bf16.msra.mxu0 %v10377_v32  ;;  %7641 = vmatpush1.bf16.msra.mxu1 %v10380_v33  ;;  %v10467_v32 = vld [vmem:[%s11079_s22 + $0x1b40] ss:$16 sps:$4 sm:$0xff]   ;;  %v10470_v33 = vld [vmem:[%s11079_s22 + $0x1b48] ss:$16 sps:$4 sm:$0xff]  }
 0x3a2   : > { %6986 = vmatprep.subr.bf16.mxu0 %v10385_v34  ;;  %7642 = vmatprep.subr.bf16.mxu1 %v10388_v35  ;;  %v10475_v34 = vld [vmem:[%s11079_s22 + $0x1b64] ss:$16 sps:$4 sm:$0xff]   ;;  %v10478_v35 = vld [vmem:[%s11079_s22 + $0x1b6c] ss:$16 sps:$4 sm:$0xff]  }
 0x3a5   : > { %6987 = vmatpush1.bf16.msra.mxu0 %v10383_v36  ;;  %7643 = vmatpush1.bf16.msra.mxu1 %v10386_v37  ;;  %v10473_v36 = vld [vmem:[%s11079_s22 + $0x1b60] ss:$16 sps:$4 sm:$0xff]   ;;  %v10476_v37 = vld [vmem:[%s11079_s22 + $0x1b68] ss:$16 sps:$4 sm:$0xff]  }
 0x3a6   : > { %6988 = vmatprep.subr.bf16.mxu0 %v10391_v38  ;;  %7644 = vmatprep.subr.bf16.mxu1 %v10394_v39  ;;  %v10481_v38 = vld [vmem:[%s11079_s22 + $0x1b84] ss:$16 sps:$4 sm:$0xff]   ;;  %v10484_v39 = vld [vmem:[%s11079_s22 + $0x1b8c] ss:$16 sps:$4 sm:$0xff]  }
 0x3a9   : > { %6989 = vmatpush1.bf16.msra.mxu0 %v10389_v40  ;;  %7645 = vmatpush1.bf16.msra.mxu1 %v10392_v41  ;;  %v10479_v40 = vld [vmem:[%s11079_s22 + $0x1b80] ss:$16 sps:$4 sm:$0xff]   ;;  %v10482_v41 = vld [vmem:[%s11079_s22 + $0x1b88] ss:$16 sps:$4 sm:$0xff]  }
 0x3aa   : > { %6990 = vmatprep.subr.bf16.mxu0 %v10397_v42  ;;  %7646 = vmatprep.subr.bf16.mxu1 %v10400_v43  ;;  %v10487_v42 = vld [vmem:[%s11079_s22 + $0x1ba4] ss:$16 sps:$4 sm:$0xff]   ;;  %v10490_v43 = vld [vmem:[%s11079_s22 + $0x1bac] ss:$16 sps:$4 sm:$0xff]  }
 0x3ad   : > { %6991 = vmatpush1.bf16.msra.mxu0 %v10395_v44  ;;  %7647 = vmatpush1.bf16.msra.mxu1 %v10398_v45  ;;  %v10485_v44 = vld [vmem:[%s11079_s22 + $0x1ba0] ss:$16 sps:$4 sm:$0xff]   ;;  %v10488_v45 = vld [vmem:[%s11079_s22 + $0x1ba8] ss:$16 sps:$4 sm:$0xff]  }
 0x3ae   : > { %6992 = vmatprep.subr.bf16.mxu0 %v10403_v46  ;;  %7648 = vmatprep.subr.bf16.mxu1 %v10406_v47  ;;  %v10493_v46 = vld [vmem:[%s11079_s22 + $0x1bc4] ss:$16 sps:$4 sm:$0xff]   ;;  %v10496_v47 = vld [vmem:[%s11079_s22 + $0x1bcc] ss:$16 sps:$4 sm:$0xff]  }
 0x3b1   : > { %6993 = vmatpush1.bf16.msra.mxu0 %v10401_v48  ;;  %7649 = vmatpush1.bf16.msra.mxu1 %v10404_v49  ;;  %v10491_v48 = vld [vmem:[%s11079_s22 + $0x1bc0] ss:$16 sps:$4 sm:$0xff]   ;;  %v10494_v49 = vld [vmem:[%s11079_s22 + $0x1bc8] ss:$16 sps:$4 sm:$0xff]  }
 0x3b2   : > { %7003 = vmatprep.subr.bf16.mxu0 %v10409_v51  ;;  %7659 = vmatprep.subr.bf16.mxu1 %v10412_v52  ;;  %v10502_v51 = vld [vmem:[%s11079_s22 + $0x1bec] ss:$16 sps:$4 sm:$0xff]   ;;  %v10497_v52 = vld [vmem:[%s11079_s22 + $0x1be0] ss:$16 sps:$4 sm:$0xff]  }
 0x3b4   : > { %6995 = vmatmul.mubr.bf16.vlgmr.msra.gmra.mrb[0].mxu0 %v296_v53  ;;  %7651 = vmatmul.mubr.bf16.vlgmr.msra.gmra.mrb[0].mxu1 %v296_v53  ;;  %v10500_v53 = vld [vmem:[%s11079_s22 + $0x1be8] ss:$16 sps:$4 sm:$0xff]  }
 0x3b5   : > { %7004 = vmatpush1.bf16.msra.mxu0 %v10407_v55  ;;  %7660 = vmatpush1.bf16.msra.mxu1 %v10410_v56  ;;  %v10505_v55 = vld [vmem:[%s11079_s22 + $0x1c04] ss:$16 sps:$4 sm:$0xff]   ;;  %v10508_v56 = vld [vmem:[%s11079_s22 + $0x1c0c] ss:$16 sps:$4 sm:$0xff]  }
 0x3b6   : > { %7005 = vmatprep.subr.bf16.mxu0 %v10415_v57  ;;  %7661 = vmatprep.subr.bf16.mxu1 %v10418_v58  ;;  %v298_v57 = vpack.c.bf16 %v266_v54, %v266_v54  ;;  %v269_v58 = vld [vmem:[#allocation2 + $0xe8] sm:$0xff]  ;;  %v10595_v54 = vld [vmem:[%s11079_s22 + $0x1de4] ss:$16 sps:$4 sm:$0xff]  }
 0x3b7   : > { %7035 = vmatprep.mubr.bf16.mxu0 %v299_v59  ;;  %7691 = vmatprep.mubr.bf16.mxu1 %v299_v59  ;;  %v10503_v59 = vld [vmem:[%s11079_s22 + $0x1c00] ss:$16 sps:$4 sm:$0xff]  }
 0x3b9   : > { %7006 = vmatpush1.bf16.msra.mxu0 %v10413_v60  ;;  %7662 = vmatpush1.bf16.msra.mxu1 %v10416_v61  ;;  %v10506_v60 = vld [vmem:[%s11079_s22 + $0x1c08] ss:$16 sps:$4 sm:$0xff]   ;;  %v10511_v61 = vld [vmem:[%s11079_s22 + $0x1c24] ss:$16 sps:$4 sm:$0xff]  }
 0x3ba   : > { %7007 = vmatprep.subr.bf16.mxu0 %v10421_v62  ;;  %7663 = vmatprep.subr.bf16.mxu1 %v10424_v63  ;;  %v10514_v62 = vld [vmem:[%s11079_s22 + $0x1c2c] ss:$16 sps:$4 sm:$0xff]   ;;  %v301_v63 = vpack.c.bf16 %v269_v58, %v269_v58  ;;  %v268_v58 = vld [vmem:[#allocation2 + $0xe0] sm:$0xff] }
 0x3bd   : > { %7008 = vmatpush1.bf16.msra.mxu0 %v10419_v0  ;;  %7664 = vmatpush1.bf16.msra.mxu1 %v10422_v1  ;;  %v10509_v0 = vld [vmem:[%s11079_s22 + $0x1c20] ss:$16 sps:$4 sm:$0xff]   ;;  %v10512_v1 = vld [vmem:[%s11079_s22 + $0x1c28] ss:$16 sps:$4 sm:$0xff]  }
 0x3be   : > { %7009 = vmatprep.subr.bf16.mxu0 %v10427_v2  ;;  %7665 = vmatprep.subr.bf16.mxu1 %v10430_v3  ;;  %v10517_v2 = vld [vmem:[%s11079_s22 + $0x1c44] ss:$16 sps:$4 sm:$0xff]   ;;  %v10520_v3 = vld [vmem:[%s11079_s22 + $0x1c4c] ss:$16 sps:$4 sm:$0xff]  }
 0x3c1   : > { %7010 = vmatpush1.bf16.msra.mxu0 %v10425_v4  ;;  %7666 = vmatpush1.bf16.msra.mxu1 %v10428_v5  ;;  %v10515_v4 = vld [vmem:[%s11079_s22 + $0x1c40] ss:$16 sps:$4 sm:$0xff]   ;;  %v10518_v5 = vld [vmem:[%s11079_s22 + $0x1c48] ss:$16 sps:$4 sm:$0xff]  }
 0x3c2   : > { %7011 = vmatprep.subr.bf16.mxu0 %v10433_v6  ;;  %7667 = vmatprep.subr.bf16.mxu1 %v10436_v7  ;;  %v10523_v6 = vld [vmem:[%s11079_s22 + $0x1c64] ss:$16 sps:$4 sm:$0xff]   ;;  %v10526_v7 = vld [vmem:[%s11079_s22 + $0x1c6c] ss:$16 sps:$4 sm:$0xff]  }
 0x3c5   : > { %7012 = vmatpush1.bf16.msra.mxu0 %v10431_v8  ;;  %7668 = vmatpush1.bf16.msra.mxu1 %v10434_v9  ;;  %v10521_v8 = vld [vmem:[%s11079_s22 + $0x1c60] ss:$16 sps:$4 sm:$0xff]   ;;  %v10524_v9 = vld [vmem:[%s11079_s22 + $0x1c68] ss:$16 sps:$4 sm:$0xff]  }
 0x3c6   : > { %7013 = vmatprep.subr.bf16.mxu0 %v10439_v10  ;;  %7669 = vmatprep.subr.bf16.mxu1 %v10442_v11  ;;  %v10529_v10 = vld [vmem:[%s11079_s22 + $0x1c84] ss:$16 sps:$4 sm:$0xff]   ;;  %v10532_v11 = vld [vmem:[%s11079_s22 + $0x1c8c] ss:$16 sps:$4 sm:$0xff]  }
 0x3c9   : > { %7014 = vmatpush1.bf16.msra.mxu0 %v10437_v12  ;;  %7670 = vmatpush1.bf16.msra.mxu1 %v10440_v13  ;;  %v10527_v12 = vld [vmem:[%s11079_s22 + $0x1c80] ss:$16 sps:$4 sm:$0xff]   ;;  %v10530_v13 = vld [vmem:[%s11079_s22 + $0x1c88] ss:$16 sps:$4 sm:$0xff]  }
 0x3ca   : > { %7015 = vmatprep.subr.bf16.mxu0 %v10445_v14  ;;  %7671 = vmatprep.subr.bf16.mxu1 %v10448_v15  ;;  %v10535_v14 = vld [vmem:[%s11079_s22 + $0x1ca4] ss:$16 sps:$4 sm:$0xff]   ;;  %v10538_v15 = vld [vmem:[%s11079_s22 + $0x1cac] ss:$16 sps:$4 sm:$0xff]  }
 0x3cd   : > { %7016 = vmatpush1.bf16.msra.mxu0 %v10443_v16  ;;  %7672 = vmatpush1.bf16.msra.mxu1 %v10446_v17  ;;  %v10533_v16 = vld [vmem:[%s11079_s22 + $0x1ca0] ss:$16 sps:$4 sm:$0xff]   ;;  %v10536_v17 = vld [vmem:[%s11079_s22 + $0x1ca8] ss:$16 sps:$4 sm:$0xff]  }
 0x3ce   : > { %7017 = vmatprep.subr.bf16.mxu0 %v10451_v18  ;;  %7673 = vmatprep.subr.bf16.mxu1 %v10454_v19  ;;  %v10541_v18 = vld [vmem:[%s11079_s22 + $0x1cc4] ss:$16 sps:$4 sm:$0xff]   ;;  %v10544_v19 = vld [vmem:[%s11079_s22 + $0x1ccc] ss:$16 sps:$4 sm:$0xff]  }
 0x3d1   : > { %7018 = vmatpush1.bf16.msra.mxu0 %v10449_v20  ;;  %7674 = vmatpush1.bf16.msra.mxu1 %v10452_v21  ;;  %v10539_v20 = vld [vmem:[%s11079_s22 + $0x1cc0] ss:$16 sps:$4 sm:$0xff]   ;;  %v10542_v21 = vld [vmem:[%s11079_s22 + $0x1cc8] ss:$16 sps:$4 sm:$0xff]  }
 0x3d2   : > { %7019 = vmatprep.subr.bf16.mxu0 %v10457_v22  ;;  %7675 = vmatprep.subr.bf16.mxu1 %v10460_v23  ;;  %v10547_v22 = vld [vmem:[%s11079_s22 + $0x1ce4] ss:$16 sps:$4 sm:$0xff]   ;;  %v10550_v23 = vld [vmem:[%s11079_s22 + $0x1cec] ss:$16 sps:$4 sm:$0xff]  }
 0x3d5   : > { %7020 = vmatpush1.bf16.msra.mxu0 %v10455_v24  ;;  %7676 = vmatpush1.bf16.msra.mxu1 %v10458_v25  ;;  %v10545_v24 = vld [vmem:[%s11079_s22 + $0x1ce0] ss:$16 sps:$4 sm:$0xff]   ;;  %v10548_v25 = vld [vmem:[%s11079_s22 + $0x1ce8] ss:$16 sps:$4 sm:$0xff]  }
 0x3d6   : > { %7021 = vmatprep.subr.bf16.mxu0 %v10463_v26  ;;  %7677 = vmatprep.subr.bf16.mxu1 %v10466_v27  ;;  %v10553_v26 = vld [vmem:[%s11079_s22 + $0x1d04] ss:$16 sps:$4 sm:$0xff]   ;;  %v10556_v27 = vld [vmem:[%s11079_s22 + $0x1d0c] ss:$16 sps:$4 sm:$0xff]  }
 0x3d9   : > { %7022 = vmatpush1.bf16.msra.mxu0 %v10461_v28  ;;  %7678 = vmatpush1.bf16.msra.mxu1 %v10464_v29  ;;  %v10551_v28 = vld [vmem:[%s11079_s22 + $0x1d00] ss:$16 sps:$4 sm:$0xff]   ;;  %v10554_v29 = vld [vmem:[%s11079_s22 + $0x1d08] ss:$16 sps:$4 sm:$0xff]  }
 0x3da   : > { %7023 = vmatprep.subr.bf16.mxu0 %v10469_v30  ;;  %7679 = vmatprep.subr.bf16.mxu1 %v10472_v31  ;;  %v10559_v30 = vld [vmem:[%s11079_s22 + $0x1d24] ss:$16 sps:$4 sm:$0xff]   ;;  %v10562_v31 = vld [vmem:[%s11079_s22 + $0x1d2c] ss:$16 sps:$4 sm:$0xff]  }
 0x3dd   : > { %7024 = vmatpush1.bf16.msra.mxu0 %v10467_v32  ;;  %7680 = vmatpush1.bf16.msra.mxu1 %v10470_v33  ;;  %v10557_v32 = vld [vmem:[%s11079_s22 + $0x1d20] ss:$16 sps:$4 sm:$0xff]   ;;  %v10560_v33 = vld [vmem:[%s11079_s22 + $0x1d28] ss:$16 sps:$4 sm:$0xff]  }
 0x3de   : > { %7025 = vmatprep.subr.bf16.mxu0 %v10475_v34  ;;  %7681 = vmatprep.subr.bf16.mxu1 %v10478_v35  ;;  %v10565_v34 = vld [vmem:[%s11079_s22 + $0x1d44] ss:$16 sps:$4 sm:$0xff]   ;;  %v10568_v35 = vld [vmem:[%s11079_s22 + $0x1d4c] ss:$16 sps:$4 sm:$0xff]  }
 0x3e1   : > { %7026 = vmatpush1.bf16.msra.mxu0 %v10473_v36  ;;  %7682 = vmatpush1.bf16.msra.mxu1 %v10476_v37  ;;  %v10563_v36 = vld [vmem:[%s11079_s22 + $0x1d40] ss:$16 sps:$4 sm:$0xff]   ;;  %v10566_v37 = vld [vmem:[%s11079_s22 + $0x1d48] ss:$16 sps:$4 sm:$0xff]  }
 0x3e2   : > { %7027 = vmatprep.subr.bf16.mxu0 %v10481_v38  ;;  %7683 = vmatprep.subr.bf16.mxu1 %v10484_v39  ;;  %v10571_v38 = vld [vmem:[%s11079_s22 + $0x1d64] ss:$16 sps:$4 sm:$0xff]   ;;  %v10574_v39 = vld [vmem:[%s11079_s22 + $0x1d6c] ss:$16 sps:$4 sm:$0xff]  }
 0x3e5   : > { %7028 = vmatpush1.bf16.msra.mxu0 %v10479_v40  ;;  %7684 = vmatpush1.bf16.msra.mxu1 %v10482_v41  ;;  %v10569_v40 = vld [vmem:[%s11079_s22 + $0x1d60] ss:$16 sps:$4 sm:$0xff]   ;;  %v10572_v41 = vld [vmem:[%s11079_s22 + $0x1d68] ss:$16 sps:$4 sm:$0xff]  }
 0x3e6   : > { %7029 = vmatprep.subr.bf16.mxu0 %v10487_v42  ;;  %7685 = vmatprep.subr.bf16.mxu1 %v10490_v43  ;;  %v10577_v42 = vld [vmem:[%s11079_s22 + $0x1d84] ss:$16 sps:$4 sm:$0xff]   ;;  %v10580_v43 = vld [vmem:[%s11079_s22 + $0x1d8c] ss:$16 sps:$4 sm:$0xff]  }
 0x3e9   : > { %7030 = vmatpush1.bf16.msra.mxu0 %v10485_v44  ;;  %7686 = vmatpush1.bf16.msra.mxu1 %v10488_v45  ;;  %v10575_v44 = vld [vmem:[%s11079_s22 + $0x1d80] ss:$16 sps:$4 sm:$0xff]   ;;  %v10578_v45 = vld [vmem:[%s11079_s22 + $0x1d88] ss:$16 sps:$4 sm:$0xff]  }
 0x3ea   : > { %7031 = vmatprep.subr.bf16.mxu0 %v10493_v46  ;;  %7687 = vmatprep.subr.bf16.mxu1 %v10496_v47  ;;  %v10583_v46 = vld [vmem:[%s11079_s22 + $0x1da4] ss:$16 sps:$4 sm:$0xff]   ;;  %v10586_v47 = vld [vmem:[%s11079_s22 + $0x1dac] ss:$16 sps:$4 sm:$0xff]  }
 0x3ed   : > { %7032 = vmatpush1.bf16.msra.mxu0 %v10491_v48  ;;  %7688 = vmatpush1.bf16.msra.mxu1 %v10494_v49  ;;  %v10581_v48 = vld [vmem:[%s11079_s22 + $0x1da0] ss:$16 sps:$4 sm:$0xff]   ;;  %v10584_v49 = vld [vmem:[%s11079_s22 + $0x1da8] ss:$16 sps:$4 sm:$0xff]  }
 0x3ee   : > { %7033 = vmatprep.subr.bf16.mxu0 %v10499_v50  ;;  %7689 = vmatprep.subr.bf16.mxu1 %v10502_v51  ;;  %v10589_v50 = vld [vmem:[%s11079_s22 + $0x1dc4] ss:$16 sps:$4 sm:$0xff]   ;;  %v10592_v51 = vld [vmem:[%s11079_s22 + $0x1dcc] ss:$16 sps:$4 sm:$0xff]  }
 0x3f1   : > { %7034 = vmatpush1.bf16.msra.mxu0 %v10497_v52  ;;  %7690 = vmatpush1.bf16.msra.mxu1 %v10500_v53  ;;  %v10587_v52 = vld [vmem:[%s11079_s22 + $0x1dc0] ss:$16 sps:$4 sm:$0xff]   ;;  %v10590_v53 = vld [vmem:[%s11079_s22 + $0x1dc8] ss:$16 sps:$4 sm:$0xff]  }
 0x3f2   : > { %7044 = vmatprep.subr.bf16.mxu0 %v10505_v55  ;;  %7700 = vmatprep.subr.bf16.mxu1 %v10508_v56  ;;  %v10598_v55 = vld [vmem:[%s11079_s22 + $0x1dec] ss:$16 sps:$4 sm:$0xff]   ;;  %v10593_v56 = vld [vmem:[%s11079_s22 + $0x1de0] ss:$16 sps:$4 sm:$0xff]  }
 0x3f4   : > { %7036 = vmatmul.mubr.bf16.vlgmr.msra.gmra.mrb[0].mxu0 %v298_v57  ;;  %7692 = vmatmul.mubr.bf16.vlgmr.msra.gmra.mrb[0].mxu1 %v298_v57  ;;  %v10596_v57 = vld [vmem:[%s11079_s22 + $0x1de8] ss:$16 sps:$4 sm:$0xff]  }
 0x3f5   : > { %7045 = vmatpush1.bf16.msra.mxu0 %v10503_v59  ;;  %7701 = vmatpush1.bf16.msra.mxu1 %v10506_v60  ;;  %v10601_v59 = vld [vmem:[%s11079_s22 + $0x1e04] ss:$16 sps:$4 sm:$0xff]   ;;  %v10604_v60 = vld [vmem:[%s11079_s22 + $0x1e0c] ss:$16 sps:$4 sm:$0xff]  }
 0x3f6   : > { %7046 = vmatprep.subr.bf16.mxu0 %v10511_v61  ;;  %7702 = vmatprep.subr.bf16.mxu1 %v10514_v62  ;;  %v300_v61 = vpack.c.bf16 %v268_v58, %v268_v58  ;;  %v271_v62 = vld [vmem:[#allocation2 + $0xf8] sm:$0xff]  ;;  %v10691_v58 = vld [vmem:[%s11079_s22 + $0x1fe4] ss:$16 sps:$4 sm:$0xff]  }
 0x3f7   : > { %7076 = vmatprep.mubr.bf16.mxu0 %v301_v63  ;;  %7732 = vmatprep.mubr.bf16.mxu1 %v301_v63  ;;  %v10599_v63 = vld [vmem:[%s11079_s22 + $0x1e00] ss:$16 sps:$4 sm:$0xff]  }
 0x3f9   : > { %7047 = vmatpush1.bf16.msra.mxu0 %v10509_v0  ;;  %7703 = vmatpush1.bf16.msra.mxu1 %v10512_v1  ;;  %v10602_v0 = vld [vmem:[%s11079_s22 + $0x1e08] ss:$16 sps:$4 sm:$0xff]   ;;  %v10607_v1 = vld [vmem:[%s11079_s22 + $0x1e24] ss:$16 sps:$4 sm:$0xff]  }
 0x3fa   : > { %7048 = vmatprep.subr.bf16.mxu0 %v10517_v2  ;;  %7704 = vmatprep.subr.bf16.mxu1 %v10520_v3  ;;  %v10610_v2 = vld [vmem:[%s11079_s22 + $0x1e2c] ss:$16 sps:$4 sm:$0xff]   ;;  %v303_v3 = vpack.c.bf16 %v271_v62, %v271_v62  ;;  %v270_v62 = vld [vmem:[#allocation2 + $0xf0] sm:$0xff] }
 0x3fd   : > { %7049 = vmatpush1.bf16.msra.mxu0 %v10515_v4  ;;  %7705 = vmatpush1.bf16.msra.mxu1 %v10518_v5  ;;  %v10605_v4 = vld [vmem:[%s11079_s22 + $0x1e20] ss:$16 sps:$4 sm:$0xff]   ;;  %v10608_v5 = vld [vmem:[%s11079_s22 + $0x1e28] ss:$16 sps:$4 sm:$0xff]  }
 0x3fe   : > { %7050 = vmatprep.subr.bf16.mxu0 %v10523_v6  ;;  %7706 = vmatprep.subr.bf16.mxu1 %v10526_v7  ;;  %v10613_v6 = vld [vmem:[%s11079_s22 + $0x1e44] ss:$16 sps:$4 sm:$0xff]   ;;  %v10616_v7 = vld [vmem:[%s11079_s22 + $0x1e4c] ss:$16 sps:$4 sm:$0xff]  }
 0x401   : > { %7051 = vmatpush1.bf16.msra.mxu0 %v10521_v8  ;;  %7707 = vmatpush1.bf16.msra.mxu1 %v10524_v9  ;;  %v10611_v8 = vld [vmem:[%s11079_s22 + $0x1e40] ss:$16 sps:$4 sm:$0xff]   ;;  %v10614_v9 = vld [vmem:[%s11079_s22 + $0x1e48] ss:$16 sps:$4 sm:$0xff]  }
 0x402   : > { %7052 = vmatprep.subr.bf16.mxu0 %v10529_v10  ;;  %7708 = vmatprep.subr.bf16.mxu1 %v10532_v11  ;;  %v10619_v10 = vld [vmem:[%s11079_s22 + $0x1e64] ss:$16 sps:$4 sm:$0xff]   ;;  %v10622_v11 = vld [vmem:[%s11079_s22 + $0x1e6c] ss:$16 sps:$4 sm:$0xff]  }
 0x405   : > { %7053 = vmatpush1.bf16.msra.mxu0 %v10527_v12  ;;  %7709 = vmatpush1.bf16.msra.mxu1 %v10530_v13  ;;  %v10617_v12 = vld [vmem:[%s11079_s22 + $0x1e60] ss:$16 sps:$4 sm:$0xff]   ;;  %v10620_v13 = vld [vmem:[%s11079_s22 + $0x1e68] ss:$16 sps:$4 sm:$0xff]  }
 0x406   : > { %7054 = vmatprep.subr.bf16.mxu0 %v10535_v14  ;;  %7710 = vmatprep.subr.bf16.mxu1 %v10538_v15  ;;  %v10625_v14 = vld [vmem:[%s11079_s22 + $0x1e84] ss:$16 sps:$4 sm:$0xff]   ;;  %v10628_v15 = vld [vmem:[%s11079_s22 + $0x1e8c] ss:$16 sps:$4 sm:$0xff]  }
 0x409   : > { %7055 = vmatpush1.bf16.msra.mxu0 %v10533_v16  ;;  %7711 = vmatpush1.bf16.msra.mxu1 %v10536_v17  ;;  %v10623_v16 = vld [vmem:[%s11079_s22 + $0x1e80] ss:$16 sps:$4 sm:$0xff]   ;;  %v10626_v17 = vld [vmem:[%s11079_s22 + $0x1e88] ss:$16 sps:$4 sm:$0xff]  }
 0x40a   : > { %7056 = vmatprep.subr.bf16.mxu0 %v10541_v18  ;;  %7712 = vmatprep.subr.bf16.mxu1 %v10544_v19  ;;  %v10631_v18 = vld [vmem:[%s11079_s22 + $0x1ea4] ss:$16 sps:$4 sm:$0xff]   ;;  %v10634_v19 = vld [vmem:[%s11079_s22 + $0x1eac] ss:$16 sps:$4 sm:$0xff]  }
 0x40d   : > { %7057 = vmatpush1.bf16.msra.mxu0 %v10539_v20  ;;  %7713 = vmatpush1.bf16.msra.mxu1 %v10542_v21  ;;  %v10629_v20 = vld [vmem:[%s11079_s22 + $0x1ea0] ss:$16 sps:$4 sm:$0xff]   ;;  %v10632_v21 = vld [vmem:[%s11079_s22 + $0x1ea8] ss:$16 sps:$4 sm:$0xff]  }
 0x40e   : > { %7058 = vmatprep.subr.bf16.mxu0 %v10547_v22  ;;  %7714 = vmatprep.subr.bf16.mxu1 %v10550_v23  ;;  %v10637_v22 = vld [vmem:[%s11079_s22 + $0x1ec4] ss:$16 sps:$4 sm:$0xff]   ;;  %v10640_v23 = vld [vmem:[%s11079_s22 + $0x1ecc] ss:$16 sps:$4 sm:$0xff]  }
 0x411   : > { %7059 = vmatpush1.bf16.msra.mxu0 %v10545_v24  ;;  %7715 = vmatpush1.bf16.msra.mxu1 %v10548_v25  ;;  %v10635_v24 = vld [vmem:[%s11079_s22 + $0x1ec0] ss:$16 sps:$4 sm:$0xff]   ;;  %v10638_v25 = vld [vmem:[%s11079_s22 + $0x1ec8] ss:$16 sps:$4 sm:$0xff]  }
 0x412   : > { %7060 = vmatprep.subr.bf16.mxu0 %v10553_v26  ;;  %7716 = vmatprep.subr.bf16.mxu1 %v10556_v27  ;;  %v10643_v26 = vld [vmem:[%s11079_s22 + $0x1ee4] ss:$16 sps:$4 sm:$0xff]   ;;  %v10646_v27 = vld [vmem:[%s11079_s22 + $0x1eec] ss:$16 sps:$4 sm:$0xff]  }
 0x415   : > { %7061 = vmatpush1.bf16.msra.mxu0 %v10551_v28  ;;  %7717 = vmatpush1.bf16.msra.mxu1 %v10554_v29  ;;  %v10641_v28 = vld [vmem:[%s11079_s22 + $0x1ee0] ss:$16 sps:$4 sm:$0xff]   ;;  %v10644_v29 = vld [vmem:[%s11079_s22 + $0x1ee8] ss:$16 sps:$4 sm:$0xff]  }
 0x416   : > { %7062 = vmatprep.subr.bf16.mxu0 %v10559_v30  ;;  %7718 = vmatprep.subr.bf16.mxu1 %v10562_v31  ;;  %v10649_v30 = vld [vmem:[%s11079_s22 + $0x1f04] ss:$16 sps:$4 sm:$0xff]   ;;  %v10652_v31 = vld [vmem:[%s11079_s22 + $0x1f0c] ss:$16 sps:$4 sm:$0xff]  }
 0x419   : > { %7063 = vmatpush1.bf16.msra.mxu0 %v10557_v32  ;;  %7719 = vmatpush1.bf16.msra.mxu1 %v10560_v33  ;;  %v10647_v32 = vld [vmem:[%s11079_s22 + $0x1f00] ss:$16 sps:$4 sm:$0xff]   ;;  %v10650_v33 = vld [vmem:[%s11079_s22 + $0x1f08] ss:$16 sps:$4 sm:$0xff]  }
 0x41a   : > { %7064 = vmatprep.subr.bf16.mxu0 %v10565_v34  ;;  %7720 = vmatprep.subr.bf16.mxu1 %v10568_v35  ;;  %v10655_v34 = vld [vmem:[%s11079_s22 + $0x1f24] ss:$16 sps:$4 sm:$0xff]   ;;  %v10658_v35 = vld [vmem:[%s11079_s22 + $0x1f2c] ss:$16 sps:$4 sm:$0xff]  }
 0x41d   : > { %7065 = vmatpush1.bf16.msra.mxu0 %v10563_v36  ;;  %7721 = vmatpush1.bf16.msra.mxu1 %v10566_v37  ;;  %v10653_v36 = vld [vmem:[%s11079_s22 + $0x1f20] ss:$16 sps:$4 sm:$0xff]   ;;  %v10656_v37 = vld [vmem:[%s11079_s22 + $0x1f28] ss:$16 sps:$4 sm:$0xff]  }
 0x41e   : > { %7066 = vmatprep.subr.bf16.mxu0 %v10571_v38  ;;  %7722 = vmatprep.subr.bf16.mxu1 %v10574_v39  ;;  %v10661_v38 = vld [vmem:[%s11079_s22 + $0x1f44] ss:$16 sps:$4 sm:$0xff]   ;;  %v10664_v39 = vld [vmem:[%s11079_s22 + $0x1f4c] ss:$16 sps:$4 sm:$0xff]  }
 0x421   : > { %7067 = vmatpush1.bf16.msra.mxu0 %v10569_v40  ;;  %7723 = vmatpush1.bf16.msra.mxu1 %v10572_v41  ;;  %v10659_v40 = vld [vmem:[%s11079_s22 + $0x1f40] ss:$16 sps:$4 sm:$0xff]   ;;  %v10662_v41 = vld [vmem:[%s11079_s22 + $0x1f48] ss:$16 sps:$4 sm:$0xff]  }
 0x422   : > { %7068 = vmatprep.subr.bf16.mxu0 %v10577_v42  ;;  %7724 = vmatprep.subr.bf16.mxu1 %v10580_v43  ;;  %v10667_v42 = vld [vmem:[%s11079_s22 + $0x1f64] ss:$16 sps:$4 sm:$0xff]   ;;  %v10670_v43 = vld [vmem:[%s11079_s22 + $0x1f6c] ss:$16 sps:$4 sm:$0xff]  }
 0x425   : > { %7069 = vmatpush1.bf16.msra.mxu0 %v10575_v44  ;;  %7725 = vmatpush1.bf16.msra.mxu1 %v10578_v45  ;;  %v10665_v44 = vld [vmem:[%s11079_s22 + $0x1f60] ss:$16 sps:$4 sm:$0xff]   ;;  %v10668_v45 = vld [vmem:[%s11079_s22 + $0x1f68] ss:$16 sps:$4 sm:$0xff]  }
 0x426   : > { %7070 = vmatprep.subr.bf16.mxu0 %v10583_v46  ;;  %7726 = vmatprep.subr.bf16.mxu1 %v10586_v47  ;;  %v10673_v46 = vld [vmem:[%s11079_s22 + $0x1f84] ss:$16 sps:$4 sm:$0xff]   ;;  %v10676_v47 = vld [vmem:[%s11079_s22 + $0x1f8c] ss:$16 sps:$4 sm:$0xff]  }
 0x429   : > { %7071 = vmatpush1.bf16.msra.mxu0 %v10581_v48  ;;  %7727 = vmatpush1.bf16.msra.mxu1 %v10584_v49  ;;  %v10671_v48 = vld [vmem:[%s11079_s22 + $0x1f80] ss:$16 sps:$4 sm:$0xff]   ;;  %v10674_v49 = vld [vmem:[%s11079_s22 + $0x1f88] ss:$16 sps:$4 sm:$0xff]  }
 0x42a   : > { %7072 = vmatprep.subr.bf16.mxu0 %v10589_v50  ;;  %7728 = vmatprep.subr.bf16.mxu1 %v10592_v51  ;;  %v10679_v50 = vld [vmem:[%s11079_s22 + $0x1fa4] ss:$16 sps:$4 sm:$0xff]   ;;  %v10682_v51 = vld [vmem:[%s11079_s22 + $0x1fac] ss:$16 sps:$4 sm:$0xff]  }
 0x42d   : > { %7073 = vmatpush1.bf16.msra.mxu0 %v10587_v52  ;;  %7729 = vmatpush1.bf16.msra.mxu1 %v10590_v53  ;;  %v10677_v52 = vld [vmem:[%s11079_s22 + $0x1fa0] ss:$16 sps:$4 sm:$0xff]   ;;  %v10680_v53 = vld [vmem:[%s11079_s22 + $0x1fa8] ss:$16 sps:$4 sm:$0xff]  }
 0x42e   : > { %7074 = vmatprep.subr.bf16.mxu0 %v10595_v54  ;;  %7730 = vmatprep.subr.bf16.mxu1 %v10598_v55  ;;  %v10685_v54 = vld [vmem:[%s11079_s22 + $0x1fc4] ss:$16 sps:$4 sm:$0xff]   ;;  %v10688_v55 = vld [vmem:[%s11079_s22 + $0x1fcc] ss:$16 sps:$4 sm:$0xff]  }
 0x431   : > { %7075 = vmatpush1.bf16.msra.mxu0 %v10593_v56  ;;  %7731 = vmatpush1.bf16.msra.mxu1 %v10596_v57  ;;  %v10683_v56 = vld [vmem:[%s11079_s22 + $0x1fc0] ss:$16 sps:$4 sm:$0xff]   ;;  %v10686_v57 = vld [vmem:[%s11079_s22 + $0x1fc8] ss:$16 sps:$4 sm:$0xff]  }
 0x432   : > { %7085 = vmatprep.subr.bf16.mxu0 %v10601_v59  ;;  %7741 = vmatprep.subr.bf16.mxu1 %v10604_v60  ;;  %v10694_v59 = vld [vmem:[%s11079_s22 + $0x1fec] ss:$16 sps:$4 sm:$0xff]   ;;  %v10689_v60 = vld [vmem:[%s11079_s22 + $0x1fe0] ss:$16 sps:$4 sm:$0xff]  }
 0x434   : > { %7077 = vmatmul.mubr.bf16.vlgmr.msra.gmra.mrb[0].mxu0 %v300_v61  ;;  %7733 = vmatmul.mubr.bf16.vlgmr.msra.gmra.mrb[0].mxu1 %v300_v61  ;;  %v10692_v61 = vld [vmem:[%s11079_s22 + $0x1fe8] ss:$16 sps:$4 sm:$0xff]  }
 0x435   : > { %7086 = vmatpush1.bf16.msra.mxu0 %v10599_v63  ;;  %7742 = vmatpush1.bf16.msra.mxu1 %v10602_v0  ;;  %v302_v63 = vpack.c.bf16 %v270_v62, %v270_v62  ;;  %v1330_v0 = vlaneseq }
 0x436   : > { %7087 = vmatprep.subr.bf16.mxu0 %v10607_v1  ;;  %7743 = vmatprep.subr.bf16.mxu1 %v10610_v2 }
 0x437   : > { %7117 = vmatprep.mubr.bf16.mxu0 %v303_v3  ;;  %7773 = vmatprep.mubr.bf16.mxu1 %v303_v3  ;;  %v1331_v1 = vshrl.u32 %v1330_v0, 7 }
 0x439   : > { %7088 = vmatpush1.bf16.msra.mxu0 %v10605_v4  ;;  %7744 = vmatpush1.bf16.msra.mxu1 %v10608_v5  ;;  %v1332_v2 = vsub.s32 0, %v1331_v1  ;;  %v1340_v3 = vsub.s32 2, %v1331_v1  ;;  %v1328_v4 = vld [vmem:[%s209_s27] sm:$0xf]  ;;  %v1336_v5 = vsub.s32 1, %v1331_v1 }
 0x43a   : > { %7089 = vmatprep.subr.bf16.mxu0 %v10613_v6  ;;  %7745 = vmatprep.subr.bf16.mxu1 %v10616_v7  ;;  %v1344_v6 = vsub.s32 3, %v1331_v1 }
 0x43b   : > { %v1333_v7 = vrot.slane %v1328_v4, %v1332_v2 }
 0x43d   : > { %7090 = vmatpush1.bf16.msra.mxu0 %v10611_v8  ;;  %7746 = vmatpush1.bf16.msra.mxu1 %v10614_v9  ;;  %v1341_v8 = vrot.slane %v1328_v4, %v1340_v3  ;;  %v1337_v9 = vrot.slane %v1328_v4, %v1336_v5 }
 0x43e   : > { %7091 = vmatprep.subr.bf16.mxu0 %v10619_v10  ;;  %7747 = vmatprep.subr.bf16.mxu1 %v10622_v11  ;;  %v1345_v10 = vrot.slane %v1328_v4, %v1344_v6 }
 0x441   : > { %7092 = vmatpush1.bf16.msra.mxu0 %v10617_v12  ;;  %7748 = vmatpush1.bf16.msra.mxu1 %v10620_v13 }
 0x442   : > { %7093 = vmatprep.subr.bf16.mxu0 %v10625_v14  ;;  %7749 = vmatprep.subr.bf16.mxu1 %v10628_v15 }
 0x445   : > { %7094 = vmatpush1.bf16.msra.mxu0 %v10623_v16  ;;  %7750 = vmatpush1.bf16.msra.mxu1 %v10626_v17 }
 0x446   : > { %7095 = vmatprep.subr.bf16.mxu0 %v10631_v18  ;;  %7751 = vmatprep.subr.bf16.mxu1 %v10634_v19 }
 0x449   : > { %7096 = vmatpush1.bf16.msra.mxu0 %v10629_v20  ;;  %7752 = vmatpush1.bf16.msra.mxu1 %v10632_v21 }
 0x44a   : > { %7097 = vmatprep.subr.bf16.mxu0 %v10637_v22  ;;  %7753 = vmatprep.subr.bf16.mxu1 %v10640_v23 }
 0x44d   : > { %7098 = vmatpush1.bf16.msra.mxu0 %v10635_v24  ;;  %7754 = vmatpush1.bf16.msra.mxu1 %v10638_v25 }
 0x44e   : > { %7099 = vmatprep.subr.bf16.mxu0 %v10643_v26  ;;  %7755 = vmatprep.subr.bf16.mxu1 %v10646_v27 }
 0x451   : > { %7100 = vmatpush1.bf16.msra.mxu0 %v10641_v28  ;;  %7756 = vmatpush1.bf16.msra.mxu1 %v10644_v29 }
 0x452   : > { %7101 = vmatprep.subr.bf16.mxu0 %v10649_v30  ;;  %7757 = vmatprep.subr.bf16.mxu1 %v10652_v31 }
 0x455   : > { %7102 = vmatpush1.bf16.msra.mxu0 %v10647_v32  ;;  %7758 = vmatpush1.bf16.msra.mxu1 %v10650_v33 }
 0x456   : > { %7103 = vmatprep.subr.bf16.mxu0 %v10655_v34  ;;  %7759 = vmatprep.subr.bf16.mxu1 %v10658_v35 }
 0x459   : > { %7104 = vmatpush1.bf16.msra.mxu0 %v10653_v36  ;;  %7760 = vmatpush1.bf16.msra.mxu1 %v10656_v37 }
 0x45a   : > { %7105 = vmatprep.subr.bf16.mxu0 %v10661_v38  ;;  %7761 = vmatprep.subr.bf16.mxu1 %v10664_v39 }
 0x45d   : > { %7106 = vmatpush1.bf16.msra.mxu0 %v10659_v40  ;;  %7762 = vmatpush1.bf16.msra.mxu1 %v10662_v41 }
 0x45e   : > { %7107 = vmatprep.subr.bf16.mxu0 %v10667_v42  ;;  %7763 = vmatprep.subr.bf16.mxu1 %v10670_v43 }
 0x461   : > { %7108 = vmatpush1.bf16.msra.mxu0 %v10665_v44  ;;  %7764 = vmatpush1.bf16.msra.mxu1 %v10668_v45 }
 0x462   : > { %7109 = vmatprep.subr.bf16.mxu0 %v10673_v46  ;;  %7765 = vmatprep.subr.bf16.mxu1 %v10676_v47 }
 0x465   : > { %7110 = vmatpush1.bf16.msra.mxu0 %v10671_v48  ;;  %7766 = vmatpush1.bf16.msra.mxu1 %v10674_v49 }
 0x466   : > { %7111 = vmatprep.subr.bf16.mxu0 %v10679_v50  ;;  %7767 = vmatprep.subr.bf16.mxu1 %v10682_v51 }
 0x469   : > { %7112 = vmatpush1.bf16.msra.mxu0 %v10677_v52  ;;  %7768 = vmatpush1.bf16.msra.mxu1 %v10680_v53 }
 0x46a   : > { %7113 = vmatprep.subr.bf16.mxu0 %v10685_v54  ;;  %7769 = vmatprep.subr.bf16.mxu1 %v10688_v55 }
 0x46d   : > { %7114 = vmatpush1.bf16.msra.mxu0 %v10683_v56  ;;  %7770 = vmatpush1.bf16.msra.mxu1 %v10686_v57 }
 0x46e   : > { %7115 = vmatprep.subr.bf16.mxu0 %v10691_v58  ;;  %7771 = vmatprep.subr.bf16.mxu1 %v10694_v59 }
 0x471   : > { %7116 = vmatpush1.bf16.msra.mxu0 %v10689_v60  ;;  %7772 = vmatpush1.bf16.msra.mxu1 %v10692_v61 }
 0x474   : > { %7118 = vmatmul.mubr.bf16.vlgmr.msra.gmra.mrb[0].mxu0 %v302_v63  ;;  %7774 = vmatmul.mubr.bf16.vlgmr.msra.gmra.mrb[0].mxu1 %v302_v63 }
 0x547   : > { %v7119_v11 = vpop.f32.mrb[0].mxu0  ;;  %v7775_v12 = vpop.f32.mrb[0].mxu1 }
 0x548   : > { %v8970_v13 = vadd.f32 %v7119_v11, %v1333_v7  ;;  %v8972_v14 = vadd.f32 %v7775_v12, %v1341_v8  ;;  %v7121_v15 = vpop.f32.mrb[1].mxu0  ;;  %v7777_v16 = vpop.f32.mrb[1].mxu1 }
 0x549   : > { %v8971_v17 = vadd.f32 %v7121_v15, %v1337_v9  ;;  %v8973_v18 = vadd.f32 %v7777_v16, %v1345_v10  ;;  %v7123_v19 = vpop.f32.mrb[2].mxu0  ;;  %v7779_v20 = vpop.f32.mrb[2].mxu1 }
 0x54a   : > { %v7782_v21 = vsub.f32 0.0, %v8970_v13  ;;  %v7784_v22 = vsub.f32 0.0, %v8972_v14  ;;  %v7124_v23 = vpop.f32.mrb[3].mxu0  ;;  %v7780_v24 = vpop.f32.mrb[3].mxu1 }
 0x54b   : > { %v7783_v25 = vsub.f32 0.0, %v8971_v17  ;;  %v7785_v26 = vsub.f32 0.0, %v8973_v18 }
 0x54c   : > { %v7786_v27 = vmul.f32 1.442695, %v7782_v21  ;;  %v7790_v28 = vmul.f32 1.442695, %v7784_v22 }
 0x54d   : > { %v7788_v29 = vmul.f32 1.442695, %v7783_v25  ;;  %v7792_v30 = vmul.f32 1.442695, %v7785_v26 }
 0x54e   : > { %10695 = vpow2.f32 %v7786_v27 }
 0x54f   : > { %10697 = vpow2.f32 %v7790_v28 }
 0x550   : > { %10699 = vpow2.f32 %v7788_v29 }
 0x551   : > { %10701 = vpow2.f32 %v7792_v30 }
 0x558   : > { %v10696_v31 = vpop.eup %10695 }
 0x559   : > { %v10698_v32 = vpop.eup %10697  ;;  %v7794_v33 = vadd.f32 1.0, %v10696_v31 }
 0x55a   : > { %v10700_v34 = vpop.eup %10699  ;;  %v7796_v35 = vadd.f32 1.0, %v10698_v32 }
 0x55b   : > { %v10702_v36 = vpop.eup %10701  ;;  %10703 = vrcp.f32 %v7794_v33  ;;  %v7795_v37 = vadd.f32 1.0, %v10700_v34 }
 0x55c   : > { %10705 = vrcp.f32 %v7796_v35  ;;  %v7797_v38 = vadd.f32 1.0, %v10702_v36 }
 0x55d   : > { %10707 = vrcp.f32 %v7795_v37 }
 0x55e   : > { %10709 = vrcp.f32 %v7797_v38 }
 0x565   : > { %v10704_v39 = vpop.eup %10703 }
 0x566   : > { %v10706_v40 = vpop.eup %10705  ;;  %7802 = vst [vmem:[%s236_s20] sm:$0xff] %v10704_v39 }
 0x567   : > { %v10708_v41 = vpop.eup %10707  ;;  %7804 = vst [vmem:[%s236_s20 + $0x10] sm:$0xff] %v10706_v40 }
 0x568   : > { %v10710_v42 = vpop.eup %10709  ;;  %7803 = vst [vmem:[%s236_s20 + $0x8] sm:$0xff] %v10708_v41 }
 0x569   : > { %7805 = vst [vmem:[%s236_s20 + $0x18] sm:$0xff] %v10710_v42 }
 0x56a   : > { %10812 = shalt.err (!%p10809_p1)
}
 0x56b   : > { %s10813_s17 = scalar_lea.hbm %s12115_s5, 512  ;;  %s10817_s21 = scalar_lea.hbm %s12162_s3, 1024 }
 0x56c   : > { %p10814_p6 = scmp.ne.s32.totalorder %s12115_s5, %s10813_s17  ;;  %p10818_p7 = scmp.lt.u32.totalorder %s12115_s5, %s12162_s3 }
 0x56d   : > { %p10819_p9 = scmp.lt.u32.totalorder %s10817_s21, %s10813_s17  ;;  %p10821_p12 = scmp.lt.u32.totalorder %s10813_s17, %s12115_s5 }
 0x56e   : > { %p10815_p5 = pnand %p10814_p6, %p12183_p4 }
 0x56f   : > { %p10820_p10 = por %p10819_p9, %p10818_p7 }
 0x570   : > { %p10816_p2 = pneg %p10815_p5 }
 0x571   : > { %p10822_p0 = por %p10821_p12, %p10820_p10 }
 0x573   : > { %p10823_p11 = pnand %p10822_p0, %p10816_p2 }
 0x575   : > { %10826 = shalt.err (!%p10823_p11)
}
 0x576   : > { %9102 = dma.vmem_to_hbm [thread:$0]  (%p12183_p4), %s12117_s23, 512, %s12115_s5, %s7807_s24  }
 0x577 PF: > { %s7833_s27 = sand.u32 1, %s10857_s12   ;;  %p12184_p13 = scmp.ne.s32.totalorder %s12173_s28, 0 }
 0x578   : > { %p12185_p3 = scmp.ge.s32.totalorder %s10869_s15, 2  ;;  %s7834_s4 = scalar_lea.sflag [#allocation4], %s7833_s27 }
 0x57a   : > { %p9116_p8 = pnand %p12185_p3, %p12184_p13 }
 0x57c   : > { %10852 = dma.done.wait (!%p9116_p8), %s7834_s4, 512  }
 0x57d   : > { %10854 = vsyncadd (!%p9116_p8), %s7834_s4, 4294966784  ;;  %p17_p1 = scmp.ge.s32.totalorder %s10919_s16, 4   ;;  %s12186_s12 = smov %s10861_s13 }
 0x57e   : > { %s12187_s13 = smov %s10865_s14  ;;  %s12188_s14 = smov %s10930_s19 }
 0x57f   : > { %s12189_s15 = smov %s10919_s16  ;;  %19 = sbr.rel (!%p17_p1) target bundleno = 6 (0x6), region = 93 }
 0x586   :  { %7839 = vsyncpa [#allocation3], 1 }
 0x587   :  { %7841 = vsyncpa [#allocation3 + $0x1], 1 }
 0x588   :  { %7842 = vsyncpa [#allocation6], 1 }
 0x589   :  { %7844 = vsyncpa [#allocation6 + $0x1], 1 }
 0x58a   :  { %7845 = vsyncpa [#allocation4], 1 }
 0x58b   :  { %7847 = vsyncpa [#allocation4 + $0x1], 1 }

</bundles_post_ra>
